<compile_context>
chip_gen: v6e
topology: v6e:2x2x1
jax: 0.10.0
libtpu: 0.0.40
codegen_flags: <defaults>
</compile_context>

<pallas_src>
import functools

import jax
import jax.numpy as jnp
import numpy as np
from jax.experimental import pallas as pl
from jax.experimental.pallas import tpu as pltpu

EPS = 1e-5           # torch.nn.LayerNorm default eps
MAX_ROW_TILE = 512   # rows per grid step (sublane axis)
MAX_E_TILE = 512     # edge-reduction tile for the target-node kernel


def _round_up(n, m):
    return ((n + m - 1) // m) * m


def _row_tile(n):
    return min(MAX_ROW_TILE, _round_up(n, 8))


def _pad_rows(x, n_pad):
    n = x.shape[0]
    if n == n_pad:
        return x
    return jnp.pad(x, ((0, n_pad - n), (0, 0)))


# --------------------------- in-kernel helpers ---------------------------
def _silu(x):
    return x * jax.nn.sigmoid(x)


def _layernorm(x, gamma, beta):
    mu = jnp.mean(x, axis=-1, keepdims=True)
    var = jnp.mean((x - mu) ** 2, axis=-1, keepdims=True)
    return (x - mu) * jax.lax.rsqrt(var + EPS) * gamma + beta


# ------------------------------- kernels ---------------------------------
def edge_kernel(u_ref, v_ref, ef_ref, ws_ref, wt_ref, we_ref, g_ref, b_ref,
                add_ref, newef_ref):
    """Fused S2E/T2E/E2E projections + u_add_v + SiLU + LayerNorm + edge residual.
    Weights are pre-transposed to [in, out] (no in-kernel transpose)."""
    h = (jnp.dot(u_ref[...], ws_ref[...], preferred_element_type=jnp.float32)
         + jnp.dot(v_ref[...], wt_ref[...], preferred_element_type=jnp.float32)
         + jnp.dot(ef_ref[...], we_ref[...], preferred_element_type=jnp.float32))
    ln = _layernorm(_silu(h), g_ref[...], b_ref[...])      # activator1
    add_ref[...] = ln
    newef_ref[...] = ef_ref[...] + ln                       # edge residual update


def tgt_kernel(a_ref, add_ref, tgt_ref, we_ref, wt_ref, g_ref, b_ref,
               out_ref, acc_ref):
    """Edge->target aggregation, tiled over the E axis (VMEM accumulator),
    then E2T/T2T projections + SiLU + LayerNorm + residual."""
    k = pl.program_id(1)

    @pl.when(k == 0)
    def _():
        acc_ref[...] = jnp.zeros_like(acc_ref)

    acc_ref[...] += jnp.dot(a_ref[...], add_ref[...],
                            preferred_element_type=jnp.float32)

    @pl.when(k == pl.num_programs(1) - 1)
    def _():
        h = (jnp.dot(acc_ref[...], we_ref[...], preferred_element_type=jnp.float32)
             + jnp.dot(tgt_ref[...], wt_ref[...], preferred_element_type=jnp.float32))
        ln = _layernorm(_silu(h), g_ref[...], b_ref[...])   # activator2
        out_ref[...] = tgt_ref[...] + ln                    # tgt residual update


def src_kernel(src_ref, w_ref, g_ref, b_ref, out_ref):
    h = jnp.dot(src_ref[...], w_ref[...], preferred_element_type=jnp.float32)
    ln = _layernorm(_silu(h), g_ref[...], b_ref[...])       # activator3
    out_ref[...] = src_ref[...] + ln                        # src residual update


# ------------------------------ wrapper ----------------------------------
def lora_n2e2n_block(src_feat, tgt_feat, edge_feat, src_idx, dst_idx,
                     params, coef=None, do_source_update=False):
    e, d = edge_feat.shape
    n_src = src_feat.shape[0]
    n_tgt = tgt_feat.shape[0]

    # Pre-transpose weights once (outside the kernels) to [in, out].
    ws2e_t = params["W_S2E"].T
    wt2e_t = params["W_T2E"].T
    we2e_t = params["W_E2E"].T
    we2t_t = params["W_E2T"].T
    wt2t_t = params["W_T2T"].T

    # Edge-count padding: keep E a multiple of 128 so the aggregation matrix's
    # E axis is lane-dense; tile the reduction axis at MAX_E_TILE.
    e_tile = MAX_E_TILE if e > MAX_E_TILE else _round_up(e, 128)
    e_pad = _round_up(e, e_tile)
    e_row_tile = min(MAX_ROW_TILE, e_pad)

    # --- glue: gather raw node features per edge.  Gather commutes with the
    #     Linear projections, so S2E/T2E are fused into edge_kernel. ---
    u_raw = _pad_rows(src_feat[src_idx], e_pad)
    v_raw = _pad_rows(tgt_feat[dst_idx], e_pad)
    ef_p = _pad_rows(edge_feat, e_pad)

    add_feat_p, new_edge_p = pl.pallas_call(
        edge_kernel,
        out_shape=(jax.ShapeDtypeStruct((e_pad, d), jnp.float32),
                   jax.ShapeDtypeStruct((e_pad, d), jnp.float32)),
        grid=(e_pad // e_row_tile,),
        in_specs=[pl.BlockSpec((e_row_tile, d), lambda i: (i, 0)),
                  pl.BlockSpec((e_row_tile, d), lambda i: (i, 0)),
                  pl.BlockSpec((e_row_tile, d), lambda i: (i, 0)),
                  pl.BlockSpec((d, d), lambda i: (0, 0)),
                  pl.BlockSpec((d, d), lambda i: (0, 0)),
                  pl.BlockSpec((d, d), lambda i: (0, 0)),
                  pl.BlockSpec((1, d), lambda i: (0, 0)),
                  pl.BlockSpec((1, d), lambda i: (0, 0))],
        out_specs=(pl.BlockSpec((e_row_tile, d), lambda i: (i, 0)),
                   pl.BlockSpec((e_row_tile, d), lambda i: (i, 0))),
        compiler_params=pltpu.CompilerParams(
            dimension_semantics=("parallel",)),
    )(u_raw, v_raw, ef_p, ws2e_t, wt2e_t, we2e_t, params["g1"], params["b1"])

    new_edge_feat = new_edge_p[:e]

    # --- glue: aggregation matrix (fn.sum if coef present, else fn.mean).
    #     Per-edge scalar coef is folded into the matrix -> no (E, D) coef
    #     tensor is ever materialized or DMA'd. ---
    # TODO(synk): replace dense one-hot matmul with a dst-sorted segmented
    #             reduction for production-size graphs (asymptotic bottleneck).
    onehot = (dst_idx[None, :] == jnp.arange(n_tgt)[:, None]).astype(jnp.float32)
    scaled_add = add_feat_p
    if coef is None:
        deg = jnp.maximum(onehot.sum(axis=1, keepdims=True), 1.0)
        agg = onehot / deg                                      # fn.mean
    else:
        coef = jnp.asarray(coef, jnp.float32)
        if coef.ndim == 2 and coef.shape[-1] == d:
            scaled_add = add_feat_p * _pad_rows(coef, e_pad)    # per-feature coef
            agg = onehot                                        # fn.sum
        else:
            agg = onehot * coef.reshape(1, e)                   # per-edge coef

    tm = _row_tile(n_tgt)
    n_tgt_pad = _round_up(n_tgt, tm)
    agg_p = jnp.pad(agg, ((0, n_tgt_pad - n_tgt), (0, e_pad - e)))
    tgt_p = _pad_rows(tgt_feat, n_tgt_pad)

    new_tgt_p = pl.pallas_call(
        tgt_kernel,
        out_shape=jax.ShapeDtypeStruct((n_tgt_pad, d), jnp.float32),
        grid=(n_tgt_pad // tm, e_pad // e_tile),
        in_specs=[pl.BlockSpec((tm, e_tile), lambda i, k: (i, k)),
                  pl.BlockSpec((e_tile, d), lambda i, k: (k, 0)),
                  pl.BlockSpec((tm, d), lambda i, k: (i, 0)),
                  pl.BlockSpec((d, d), lambda i, k: (0, 0)),
                  pl.BlockSpec((d, d), lambda i, k: (0, 0)),
                  pl.BlockSpec((1, d), lambda i, k: (0, 0)),
                  pl.BlockSpec((1, d), lambda i, k: (0, 0))],
        out_specs=pl.BlockSpec((tm, d), lambda i, k: (i, 0)),
        scratch_shapes=[pltpu.VMEM((tm, d), jnp.float32)],
        compiler_params=pltpu.CompilerParams(
            dimension_semantics=("parallel", "arbitrary")),
    )(agg_p, scaled_add, tgt_p, we2t_t, wt2t_t, params["g2"], params["b2"])
    new_tgt_feat = new_tgt_p[:n_tgt]

    # --- optional source update ---
    if do_source_update:
        ts = _row_tile(n_src)
        n_src_pad = _round_up(n_src, ts)
        src_p = _pad_rows(src_feat, n_src_pad)
        new_src_p = pl.pallas_call(
            src_kernel,
            out_shape=jax.ShapeDtypeStruct((n_src_pad, d), jnp.float32),
            grid=(n_src_pad // ts,),
            in_specs=[pl.BlockSpec((ts, d), lambda i: (i, 0)),
                      pl.BlockSpec((d, d), lambda i: (0, 0)),
                      pl.BlockSpec((1, d), lambda i: (0, 0)),
                      pl.BlockSpec((1, d), lambda i: (0, 0))],
            out_specs=pl.BlockSpec((ts, d), lambda i: (i, 0)),
            compiler_params=pltpu.CompilerParams(
                dimension_semantics=("parallel",)),
        )(src_p, params["W_S2S"].T, params["g3"], params["b3"])
        new_src_feat = new_src_p[:n_src]
    else:
        new_src_feat = src_feat

    return new_src_feat, new_edge_feat, new_tgt_feat


# --------------------------- pure-JAX reference ---------------------------
def _ref_silu_ln(x, g, b):
    s = x * jax.nn.sigmoid(x)
    mu = s.mean(-1, keepdims=True)
    var = ((s - mu) ** 2).mean(-1, keepdims=True)
    return (s - mu) / jnp.sqrt(var + EPS) * g + b


def reference(src_feat, tgt_feat, edge_feat, src_idx, dst_idx, p,
              coef=None, do_source_update=False):
    u = (src_feat @ p["W_S2E"].T)[src_idx]
    v = (tgt_feat @ p["W_T2E"].T)[dst_idx]
    add = _ref_silu_ln(u + v + edge_feat @ p["W_E2E"].T, p["g1"], p["b1"])
    new_edge = edge_feat + add
    n_tgt = tgt_feat.shape[0]
    if coef is not None:
        c = jnp.asarray(coef, jnp.float32)
        if c.ndim == 1:
            c = c[:, None]
        agg = jax.ops.segment_sum(add * c, dst_idx, num_segments=n_tgt)
    else:
        ones = jnp.ones((add.shape[0], 1))
        deg = jnp.maximum(jax.ops.segment_sum(ones, dst_idx, num_segments=n_tgt), 1.0)
        agg = jax.ops.segment_sum(add, dst_idx, num_segments=n_tgt) / deg
    tadd = _ref_silu_ln(agg @ p["W_E2T"].T + tgt_feat @ p["W_T2T"].T, p["g2"], p["b2"])
    new_tgt = tgt_feat + tadd
    if do_source_update:
        new_src = src_feat + _ref_silu_ln(src_feat @ p["W_S2S"].T, p["g3"], p["b3"])
    else:
        new_src = src_feat
    return new_src, new_edge, new_tgt


# ---------------------------------- main ----------------------------------
if __name__ == "__main__":
    D = 128        # embed_dim (module default -> lane-dense blocks)
    N_SRC = 48
    N_TGT = 32
    E = 160

    key = jax.random.PRNGKey(0)
    keys = jax.random.split(key, 16)

    bound = 1.0 / np.sqrt(D)   # torch.nn.Linear default init scale

    def init_w(k):
        return jax.random.uniform(k, (D, D), jnp.float32, -bound, bound)

    params = {
        "W_S2E": init_w(keys[0]),   # STE2E_S2E.main.weight
        "W_T2E": init_w(keys[1]),   # STE2E_T2E.main.weight
        "W_E2E": init_w(keys[2]),   # STE2E_E2E.main.weight
        "W_E2T": init_w(keys[3]),   # ET2T_E2T.main.weight
        "W_T2T": init_w(keys[4]),   # ET2T_T2T.main.weight
        "W_S2S": init_w(keys[5]),   # S2S.main.weight (do_source_update)
        "g1": jnp.ones((1, D), jnp.float32), "b1": jnp.zeros((1, D), jnp.float32),
        "g2": jnp.ones((1, D), jnp.float32), "b2": jnp.zeros((1, D), jnp.float32),
        "g3": jnp.ones((1, D), jnp.float32), "b3": jnp.zeros((1, D), jnp.float32),
    }

    src_feat = jax.random.normal(keys[6], (N_SRC, D), jnp.float32)
    tgt_feat = jax.random.normal(keys[7], (N_TGT, D), jnp.float32)
    edge_feat = jax.random.normal(keys[8], (E, D), jnp.float32)
    src_idx = jax.random.randint(keys[9], (E,), 0, N_SRC)
    # every tgt node receives at least one edge (DGL mean over in-edges)
    dst_idx = jnp.arange(E, dtype=jnp.int32) % N_TGT
    coef = jax.random.uniform(keys[10], (E, 1), jnp.float32, 0.5, 1.5)

    block = jax.jit(lora_n2e2n_block, static_argnames=("do_source_update",))

    # case 1: no 'coef' on edges -> fn.mean path, with source update
    out1 = block(src_feat, tgt_feat, edge_feat, src_idx, dst_idx, params,
                 coef=None, do_source_update=True)
    # case 2: 'coef' present -> fn.sum path, no source update
    out2 = block(src_feat, tgt_feat, edge_feat, src_idx, dst_idx, params,
                 coef=coef, do_source_update=False)
    jax.block_until_ready((out1, out2))

    ref1 = reference(src_feat, tgt_feat, edge_feat, src_idx, dst_idx, params,
                     coef=None, do_source_update=True)
    ref2 = reference(src_feat, tgt_feat, edge_feat, src_idx, dst_idx, params,
                     coef=coef, do_source_update=False)

    for got, want in list(zip(out1, ref1)) + list(zip(out2, ref2)):
        np.testing.assert_allclose(np.asarray(got), np.asarray(want),
                                   atol=1e-3, rtol=1e-3)

    print("KERNEL_OK")
</pallas_src>

<mosaic_0001>
module attributes {stable_mosaic.version = 11 : i64} {
  func.func @edge_kernel(%arg0: i32, %arg1: memref<256x128xf32, #tpu.memory_space<vmem>>, %arg2: memref<256x128xf32, #tpu.memory_space<vmem>>, %arg3: memref<256x128xf32, #tpu.memory_space<vmem>>, %arg4: memref<128x128xf32, #tpu.memory_space<vmem>>, %arg5: memref<128x128xf32, #tpu.memory_space<vmem>>, %arg6: memref<128x128xf32, #tpu.memory_space<vmem>>, %arg7: memref<1x128xf32, #tpu.memory_space<vmem>>, %arg8: memref<1x128xf32, #tpu.memory_space<vmem>>, %arg9: memref<256x128xf32, #tpu.memory_space<vmem>>, %arg10: memref<256x128xf32, #tpu.memory_space<vmem>>) attributes {dimension_semantics = [#tpu.dimension_semantics<parallel>], iteration_bounds = array<i64: 1>, scalar_prefetch = 0 : i64, scratch_operands = 0 : i64, tpu.core_type = #tpu.core_type<tc>, window_params = [{transform_indices = @transform_0, window_bounds = array<i64: 256, 128>}, {transform_indices = @transform_1, window_bounds = array<i64: 256, 128>}, {transform_indices = @transform_2, window_bounds = array<i64: 256, 128>}, {pipeline_mode = #tpu.pipeline_mode<synchronous>, transform_indices = @transform_3, window_bounds = array<i64: 128, 128>}, {pipeline_mode = #tpu.pipeline_mode<synchronous>, transform_indices = @transform_4, window_bounds = array<i64: 128, 128>}, {pipeline_mode = #tpu.pipeline_mode<synchronous>, transform_indices = @transform_5, window_bounds = array<i64: 128, 128>}, {pipeline_mode = #tpu.pipeline_mode<synchronous>, transform_indices = @transform_6, window_bounds = array<i64: 1, 128>}, {pipeline_mode = #tpu.pipeline_mode<synchronous>, transform_indices = @transform_7, window_bounds = array<i64: 1, 128>}, {transform_indices = @transform_8, window_bounds = array<i64: 256, 128>}, {transform_indices = @transform_9, window_bounds = array<i64: 256, 128>}]} {
    %c0 = arith.constant 0 : index
    %c0_0 = arith.constant 0 : index
    %0 = vector.load %arg1[%c0, %c0_0] : memref<256x128xf32, #tpu.memory_space<vmem>>, vector<256x128xf32>
    %c0_1 = arith.constant 0 : index
    %c0_2 = arith.constant 0 : index
    %1 = vector.load %arg4[%c0_1, %c0_2] : memref<128x128xf32, #tpu.memory_space<vmem>>, vector<128x128xf32>
    %cst = arith.constant dense<0.000000e+00> : vector<256x128xf32>
    %2 = tpu.matmul %0, %1, %cst {dimension_numbers = #tpu.dot_dimension_numbers<[1], [0], [0], [1], [0, 0, 1, 1], [], []>} : vector<256x128xf32>, vector<128x128xf32>, vector<256x128xf32> -> vector<256x128xf32>
    %c0_3 = arith.constant 0 : index
    %c0_4 = arith.constant 0 : index
    %3 = vector.load %arg2[%c0_3, %c0_4] : memref<256x128xf32, #tpu.memory_space<vmem>>, vector<256x128xf32>
    %c0_5 = arith.constant 0 : index
    %c0_6 = arith.constant 0 : index
    %4 = vector.load %arg5[%c0_5, %c0_6] : memref<128x128xf32, #tpu.memory_space<vmem>>, vector<128x128xf32>
    %cst_7 = arith.constant dense<0.000000e+00> : vector<256x128xf32>
    %5 = tpu.matmul %3, %4, %cst_7 {dimension_numbers = #tpu.dot_dimension_numbers<[1], [0], [0], [1], [0, 0, 1, 1], [], []>} : vector<256x128xf32>, vector<128x128xf32>, vector<256x128xf32> -> vector<256x128xf32>
    %6 = arith.addf %2, %5 : vector<256x128xf32>
    %c0_8 = arith.constant 0 : index
    %c0_9 = arith.constant 0 : index
    %7 = vector.load %arg3[%c0_8, %c0_9] : memref<256x128xf32, #tpu.memory_space<vmem>>, vector<256x128xf32>
    %c0_10 = arith.constant 0 : index
    %c0_11 = arith.constant 0 : index
    %8 = vector.load %arg6[%c0_10, %c0_11] : memref<128x128xf32, #tpu.memory_space<vmem>>, vector<128x128xf32>
    %cst_12 = arith.constant dense<0.000000e+00> : vector<256x128xf32>
    %9 = tpu.matmul %7, %8, %cst_12 {dimension_numbers = #tpu.dot_dimension_numbers<[1], [0], [0], [1], [0, 0, 1, 1], [], []>} : vector<256x128xf32>, vector<128x128xf32>, vector<256x128xf32> -> vector<256x128xf32>
    %10 = arith.addf %6, %9 : vector<256x128xf32>
    %11 = arith.negf %10 : vector<256x128xf32>
    %12 = math.exp %11 : vector<256x128xf32>
    %cst_13 = arith.constant 1.000000e+00 : f32
    %13 = vector.broadcast %cst_13 : f32 to vector<256x128xf32>
    %14 = arith.addf %13, %12 : vector<256x128xf32>
    %15 = arith.divf %13, %14 : vector<256x128xf32>
    %16 = arith.mulf %10, %15 : vector<256x128xf32>
    %c0_14 = arith.constant 0 : index
    %c0_15 = arith.constant 0 : index
    %17 = vector.load %arg7[%c0_14, %c0_15] : memref<1x128xf32, #tpu.memory_space<vmem>>, vector<1x128xf32>
    %c0_16 = arith.constant 0 : index
    %c0_17 = arith.constant 0 : index
    %18 = vector.load %arg8[%c0_16, %c0_17] : memref<1x128xf32, #tpu.memory_space<vmem>>, vector<1x128xf32>
    %cst_18 = arith.constant dense<0.000000e+00> : vector<256xf32>
    %19 = vector.multi_reduction <add>, %16, %cst_18 [1] : vector<256x128xf32> to vector<256xf32>
    %20 = vector.shape_cast %19 : vector<256xf32> to vector<256x1xf32>
    %cst_19 = arith.constant 1.280000e+02 : f32
    %21 = vector.broadcast %cst_19 : f32 to vector<256x1xf32>
    %22 = arith.divf %20, %21 : vector<256x1xf32>
    %23 = vector.broadcast %22 : vector<256x1xf32> to vector<256x128xf32>
    %24 = arith.subf %16, %23 : vector<256x128xf32>
    %25 = arith.mulf %24, %24 : vector<256x128xf32>
    %cst_20 = arith.constant dense<0.000000e+00> : vector<256xf32>
    %26 = vector.multi_reduction <add>, %25, %cst_20 [1] : vector<256x128xf32> to vector<256xf32>
    %27 = vector.shape_cast %26 : vector<256xf32> to vector<256x1xf32>
    %cst_21 = arith.constant 1.280000e+02 : f32
    %28 = vector.broadcast %cst_21 : f32 to vector<256x1xf32>
    %29 = arith.divf %27, %28 : vector<256x1xf32>
    %30 = vector.broadcast %22 : vector<256x1xf32> to vector<256x128xf32>
    %31 = arith.subf %16, %30 : vector<256x128xf32>
    %cst_22 = arith.constant 9.99999974E-6 : f32
    %32 = vector.broadcast %cst_22 : f32 to vector<256x1xf32>
    %33 = arith.addf %29, %32 : vector<256x1xf32>
    %34 = math.rsqrt %33 : vector<256x1xf32>
    %35 = vector.broadcast %34 : vector<256x1xf32> to vector<256x128xf32>
    %36 = arith.mulf %31, %35 : vector<256x128xf32>
    %37 = vector.broadcast %17 : vector<1x128xf32> to vector<256x128xf32>
    %38 = arith.mulf %36, %37 : vector<256x128xf32>
    %39 = vector.broadcast %18 : vector<1x128xf32> to vector<256x128xf32>
    %40 = arith.addf %38, %39 : vector<256x128xf32>
    %c0_23 = arith.constant 0 : index
    %c0_24 = arith.constant 0 : index
    %41 = vector.load %arg9[%c0_23, %c0_24] : memref<256x128xf32, #tpu.memory_space<vmem>>, vector<256x128xf32>
    tpu.vector_store %arg9[%c0_23, %c0_24], %40 {strides = array<i32>} : memref<256x128xf32, #tpu.memory_space<vmem>>, vector<256x128xf32>,
    %c0_25 = arith.constant 0 : index
    %c0_26 = arith.constant 0 : index
    %42 = vector.load %arg3[%c0_25, %c0_26] : memref<256x128xf32, #tpu.memory_space<vmem>>, vector<256x128xf32>
    %43 = arith.addf %42, %40 : vector<256x128xf32>
    %c0_27 = arith.constant 0 : index
    %c0_28 = arith.constant 0 : index
    %44 = vector.load %arg10[%c0_27, %c0_28] : memref<256x128xf32, #tpu.memory_space<vmem>>, vector<256x128xf32>
    tpu.vector_store %arg10[%c0_27, %c0_28], %43 {strides = array<i32>} : memref<256x128xf32, #tpu.memory_space<vmem>>, vector<256x128xf32>,
    return
  }
  func.func @transform_0(%arg0: i32) -> (i32, i32) {
    %c0_i32 = arith.constant 0 : i32
    %c0_i32_0 = arith.constant 0 : i32
    return %arg0, %c0_i32 : i32, i32
  }
  func.func @transform_1(%arg0: i32) -> (i32, i32) {
    %c0_i32 = arith.constant 0 : i32
    %c0_i32_0 = arith.constant 0 : i32
    return %arg0, %c0_i32 : i32, i32
  }
  func.func @transform_2(%arg0: i32) -> (i32, i32) {
    %c0_i32 = arith.constant 0 : i32
    %c0_i32_0 = arith.constant 0 : i32
    return %arg0, %c0_i32 : i32, i32
  }
  func.func @transform_3(%arg0: i32) -> (i32, i32) {
    %c0_i32 = arith.constant 0 : i32
    %c0_i32_0 = arith.constant 0 : i32
    %c0_i32_1 = arith.constant 0 : i32
    return %c0_i32, %c0_i32_0 : i32, i32
  }
  func.func @transform_4(%arg0: i32) -> (i32, i32) {
    %c0_i32 = arith.constant 0 : i32
    %c0_i32_0 = arith.constant 0 : i32
    %c0_i32_1 = arith.constant 0 : i32
    return %c0_i32, %c0_i32_0 : i32, i32
  }
  func.func @transform_5(%arg0: i32) -> (i32, i32) {
    %c0_i32 = arith.constant 0 : i32
    %c0_i32_0 = arith.constant 0 : i32
    %c0_i32_1 = arith.constant 0 : i32
    return %c0_i32, %c0_i32_0 : i32, i32
  }
  func.func @transform_6(%arg0: i32) -> (i32, i32) {
    %c0_i32 = arith.constant 0 : i32
    %c0_i32_0 = arith.constant 0 : i32
    %c0_i32_1 = arith.constant 0 : i32
    return %c0_i32, %c0_i32_0 : i32, i32
  }
  func.func @transform_7(%arg0: i32) -> (i32, i32) {
    %c0_i32 = arith.constant 0 : i32
    %c0_i32_0 = arith.constant 0 : i32
    %c0_i32_1 = arith.constant 0 : i32
    return %c0_i32, %c0_i32_0 : i32, i32
  }
  func.func @transform_8(%arg0: i32) -> (i32, i32) {
    %c0_i32 = arith.constant 0 : i32
    %c0_i32_0 = arith.constant 0 : i32
    return %arg0, %c0_i32 : i32, i32
  }
  func.func @transform_9(%arg0: i32) -> (i32, i32) {
    %c0_i32 = arith.constant 0 : i32
    %c0_i32_0 = arith.constant 0 : i32
    return %arg0, %c0_i32 : i32, i32
  }
}

module attributes {stable_mosaic.version = 11 : i64} {
  func.func @tgt_kernel(%arg0: i32, %arg1: i32, %arg2: memref<32x256xf32, #tpu.memory_space<vmem>>, %arg3: memref<256x128xf32, #tpu.memory_space<vmem>>, %arg4: memref<32x128xf32, #tpu.memory_space<vmem>>, %arg5: memref<128x128xf32, #tpu.memory_space<vmem>>, %arg6: memref<128x128xf32, #tpu.memory_space<vmem>>, %arg7: memref<1x128xf32, #tpu.memory_space<vmem>>, %arg8: memref<1x128xf32, #tpu.memory_space<vmem>>, %arg9: memref<32x128xf32, #tpu.memory_space<vmem>>, %arg10: memref<32x128xf32, #tpu.memory_space<vmem>>) attributes {dimension_semantics = [#tpu.dimension_semantics<parallel>, #tpu.dimension_semantics<arbitrary>], iteration_bounds = array<i64: 1, 1>, scalar_prefetch = 0 : i64, scratch_operands = 1 : i64, tpu.core_type = #tpu.core_type<tc>, window_params = [{transform_indices = @transform_0, window_bounds = array<i64: 32, 256>}, {transform_indices = @transform_1, window_bounds = array<i64: 256, 128>}, {transform_indices = @transform_2, window_bounds = array<i64: 32, 128>}, {pipeline_mode = #tpu.pipeline_mode<synchronous>, transform_indices = @transform_3, window_bounds = array<i64: 128, 128>}, {pipeline_mode = #tpu.pipeline_mode<synchronous>, transform_indices = @transform_4, window_bounds = array<i64: 128, 128>}, {pipeline_mode = #tpu.pipeline_mode<synchronous>, transform_indices = @transform_5, window_bounds = array<i64: 1, 128>}, {pipeline_mode = #tpu.pipeline_mode<synchronous>, transform_indices = @transform_6, window_bounds = array<i64: 1, 128>}, {transform_indices = @transform_7, window_bounds = array<i64: 32, 128>}]} {
    %c0_i32 = arith.constant 0 : i32
    %0 = arith.cmpi eq, %arg1, %c0_i32 : i32
    %1 = arith.extui %0 : i1 to i32
    %c0_i32_0 = arith.constant 0 : i32
    %2 = arith.cmpi ne, %1, %c0_i32_0 : i32
    scf.if %2 {
      %cst_10 = arith.constant 0.000000e+00 : f32
      %12 = vector.broadcast %cst_10 : f32 to vector<32x128xf32>
      %c0_11 = arith.constant 0 : index
      %c0_12 = arith.constant 0 : index
      %13 = vector.load %arg10[%c0_11, %c0_12] : memref<32x128xf32, #tpu.memory_space<vmem>>, vector<32x128xf32>
      tpu.vector_store %arg10[%c0_11, %c0_12], %12 {strides = array<i32>} : memref<32x128xf32, #tpu.memory_space<vmem>>, vector<32x128xf32>,
    } else {
    }
    %c0 = arith.constant 0 : index
    %c0_1 = arith.constant 0 : index
    %3 = vector.load %arg10[%c0, %c0_1] : memref<32x128xf32, #tpu.memory_space<vmem>>, vector<32x128xf32>
    %c0_2 = arith.constant 0 : index
    %c0_3 = arith.constant 0 : index
    %4 = vector.load %arg2[%c0_2, %c0_3] : memref<32x256xf32, #tpu.memory_space<vmem>>, vector<32x256xf32>
    %c0_4 = arith.constant 0 : index
    %c0_5 = arith.constant 0 : index
    %5 = vector.load %arg3[%c0_4, %c0_5] : memref<256x128xf32, #tpu.memory_space<vmem>>, vector<256x128xf32>
    %cst = arith.constant dense<0.000000e+00> : vector<32x128xf32>
    %6 = tpu.matmul %4, %5, %cst {dimension_numbers = #tpu.dot_dimension_numbers<[1], [0], [0], [1], [0, 0, 1, 1], [], []>} : vector<32x256xf32>, vector<256x128xf32>, vector<32x128xf32> -> vector<32x128xf32>
    %7 = arith.addf %3, %6 : vector<32x128xf32>
    %c0_6 = arith.constant 0 : index
    %c0_7 = arith.constant 0 : index
    %8 = vector.load %arg10[%c0_6, %c0_7] : memref<32x128xf32, #tpu.memory_space<vmem>>, vector<32x128xf32>
    tpu.vector_store %arg10[%c0_6, %c0_7], %7 {strides = array<i32>} : memref<32x128xf32, #tpu.memory_space<vmem>>, vector<32x128xf32>,
    %c0_i32_8 = arith.constant 0 : i32
    %9 = arith.cmpi eq, %arg1, %c0_i32_8 : i32
    %10 = arith.extui %9 : i1 to i32
    %c0_i32_9 = arith.constant 0 : i32
    %11 = arith.cmpi ne, %10, %c0_i32_9 : i32
    scf.if %11 {
      %c0_10 = arith.constant 0 : index
      %c0_11 = arith.constant 0 : index
      %12 = vector.load %arg10[%c0_10, %c0_11] : memref<32x128xf32, #tpu.memory_space<vmem>>, vector<32x128xf32>
      %c0_12 = arith.constant 0 : index
      %c0_13 = arith.constant 0 : index
      %13 = vector.load %arg5[%c0_12, %c0_13] : memref<128x128xf32, #tpu.memory_space<vmem>>, vector<128x128xf32>
      %cst_14 = arith.constant dense<0.000000e+00> : vector<32x128xf32>
      %14 = tpu.matmul %12, %13, %cst_14 {dimension_numbers = #tpu.dot_dimension_numbers<[1], [0], [0], [1], [0, 0, 1, 1], [], []>} : vector<32x128xf32>, vector<128x128xf32>, vector<32x128xf32> -> vector<32x128xf32>
      %c0_15 = arith.constant 0 : index
      %c0_16 = arith.constant 0 : index
      %15 = vector.load %arg4[%c0_15, %c0_16] : memref<32x128xf32, #tpu.memory_space<vmem>>, vector<32x128xf32>
      %c0_17 = arith.constant 0 : index
      %c0_18 = arith.constant 0 : index
      %16 = vector.load %arg6[%c0_17, %c0_18] : memref<128x128xf32, #tpu.memory_space<vmem>>, vector<128x128xf32>
      %cst_19 = arith.constant dense<0.000000e+00> : vector<32x128xf32>
      %17 = tpu.matmul %15, %16, %cst_19 {dimension_numbers = #tpu.dot_dimension_numbers<[1], [0], [0], [1], [0, 0, 1, 1], [], []>} : vector<32x128xf32>, vector<128x128xf32>, vector<32x128xf32> -> vector<32x128xf32>
      %18 = arith.addf %14, %17 : vector<32x128xf32>
      %19 = arith.negf %18 : vector<32x128xf32>
      %20 = math.exp %19 : vector<32x128xf32>
      %cst_20 = arith.constant 1.000000e+00 : f32
      %21 = vector.broadcast %cst_20 : f32 to vector<32x128xf32>
      %22 = arith.addf %21, %20 : vector<32x128xf32>
      %23 = arith.divf %21, %22 : vector<32x128xf32>
      %24 = arith.mulf %18, %23 : vector<32x128xf32>
      %c0_21 = arith.constant 0 : index
      %c0_22 = arith.constant 0 : index
      %25 = vector.load %arg7[%c0_21, %c0_22] : memref<1x128xf32, #tpu.memory_space<vmem>>, vector<1x128xf32>
      %c0_23 = arith.constant 0 : index
      %c0_24 = arith.constant 0 : index
      %26 = vector.load %arg8[%c0_23, %c0_24] : memref<1x128xf32, #tpu.memory_space<vmem>>, vector<1x128xf32>
      %cst_25 = arith.constant dense<0.000000e+00> : vector<32xf32>
      %27 = vector.multi_reduction <add>, %24, %cst_25 [1] : vector<32x128xf32> to vector<32xf32>
      %28 = vector.shape_cast %27 : vector<32xf32> to vector<32x1xf32>
      %cst_26 = arith.constant 1.280000e+02 : f32
      %29 = vector.broadcast %cst_26 : f32 to vector<32x1xf32>
      %30 = arith.divf %28, %29 : vector<32x1xf32>
      %31 = vector.broadcast %30 : vector<32x1xf32> to vector<32x128xf32>
      %32 = arith.subf %24, %31 : vector<32x128xf32>
      %33 = arith.mulf %32, %32 : vector<32x128xf32>
      %cst_27 = arith.constant dense<0.000000e+00> : vector<32xf32>
      %34 = vector.multi_reduction <add>, %33, %cst_27 [1] : vector<32x128xf32> to vector<32xf32>
      %35 = vector.shape_cast %34 : vector<32xf32> to vector<32x1xf32>
      %cst_28 = arith.constant 1.280000e+02 : f32
      %36 = vector.broadcast %cst_28 : f32 to vector<32x1xf32>
      %37 = arith.divf %35, %36 : vector<32x1xf32>
      %38 = vector.broadcast %30 : vector<32x1xf32> to vector<32x128xf32>
      %39 = arith.subf %24, %38 : vector<32x128xf32>
      %cst_29 = arith.constant 9.99999974E-6 : f32
      %40 = vector.broadcast %cst_29 : f32 to vector<32x1xf32>
      %41 = arith.addf %37, %40 : vector<32x1xf32>
      %42 = math.rsqrt %41 : vector<32x1xf32>
      %43 = vector.broadcast %42 : vector<32x1xf32> to vector<32x128xf32>
      %44 = arith.mulf %39, %43 : vector<32x128xf32>
      %45 = vector.broadcast %25 : vector<1x128xf32> to vector<32x128xf32>
      %46 = arith.mulf %44, %45 : vector<32x128xf32>
      %47 = vector.broadcast %26 : vector<1x128xf32> to vector<32x128xf32>
      %48 = arith.addf %46, %47 : vector<32x128xf32>
      %c0_30 = arith.constant 0 : index
      %c0_31 = arith.constant 0 : index
      %49 = vector.load %arg4[%c0_30, %c0_31] : memref<32x128xf32, #tpu.memory_space<vmem>>, vector<32x128xf32>
      %50 = arith.addf %49, %48 : vector<32x128xf32>
      %c0_32 = arith.constant 0 : index
      %c0_33 = arith.constant 0 : index
      %51 = vector.load %arg9[%c0_32, %c0_33] : memref<32x128xf32, #tpu.memory_space<vmem>>, vector<32x128xf32>
      tpu.vector_store %arg9[%c0_32, %c0_33], %50 {strides = array<i32>} : memref<32x128xf32, #tpu.memory_space<vmem>>, vector<32x128xf32>,
    } else {
    }
    return
  }
  func.func @transform_0(%arg0: i32, %arg1: i32) -> (i32, i32) {
    %c0_i32 = arith.constant 0 : i32
    return %arg0, %arg1 : i32, i32
  }
  func.func @transform_1(%arg0: i32, %arg1: i32) -> (i32, i32) {
    %c0_i32 = arith.constant 0 : i32
    %c0_i32_0 = arith.constant 0 : i32
    return %arg1, %c0_i32 : i32, i32
  }
  func.func @transform_2(%arg0: i32, %arg1: i32) -> (i32, i32) {
    %c0_i32 = arith.constant 0 : i32
    %c0_i32_0 = arith.constant 0 : i32
    return %arg0, %c0_i32 : i32, i32
  }
  func.func @transform_3(%arg0: i32, %arg1: i32) -> (i32, i32) {
    %c0_i32 = arith.constant 0 : i32
    %c0_i32_0 = arith.constant 0 : i32
    %c0_i32_1 = arith.constant 0 : i32
    return %c0_i32, %c0_i32_0 : i32, i32
  }
  func.func @transform_4(%arg0: i32, %arg1: i32) -> (i32, i32) {
    %c0_i32 = arith.constant 0 : i32
    %c0_i32_0 = arith.constant 0 : i32
    %c0_i32_1 = arith.constant 0 : i32
    return %c0_i32, %c0_i32_0 : i32, i32
  }
  func.func @transform_5(%arg0: i32, %arg1: i32) -> (i32, i32) {
    %c0_i32 = arith.constant 0 : i32
    %c0_i32_0 = arith.constant 0 : i32
    %c0_i32_1 = arith.constant 0 : i32
    return %c0_i32, %c0_i32_0 : i32, i32
  }
  func.func @transform_6(%arg0: i32, %arg1: i32) -> (i32, i32) {
    %c0_i32 = arith.constant 0 : i32
    %c0_i32_0 = arith.constant 0 : i32
    %c0_i32_1 = arith.constant 0 : i32
    return %c0_i32, %c0_i32_0 : i32, i32
  }
  func.func @transform_7(%arg0: i32, %arg1: i32) -> (i32, i32) {
    %c0_i32 = arith.constant 0 : i32
    %c0_i32_0 = arith.constant 0 : i32
    return %arg0, %c0_i32 : i32, i32
  }
}

module attributes {stable_mosaic.version = 11 : i64} {
  func.func @src_kernel(%arg0: i32, %arg1: memref<48x128xf32, #tpu.memory_space<vmem>>, %arg2: memref<128x128xf32, #tpu.memory_space<vmem>>, %arg3: memref<1x128xf32, #tpu.memory_space<vmem>>, %arg4: memref<1x128xf32, #tpu.memory_space<vmem>>, %arg5: memref<48x128xf32, #tpu.memory_space<vmem>>) attributes {dimension_semantics = [#tpu.dimension_semantics<parallel>], iteration_bounds = array<i64: 1>, scalar_prefetch = 0 : i64, scratch_operands = 0 : i64, tpu.core_type = #tpu.core_type<tc>, window_params = [{transform_indices = @transform_0, window_bounds = array<i64: 48, 128>}, {pipeline_mode = #tpu.pipeline_mode<synchronous>, transform_indices = @transform_1, window_bounds = array<i64: 128, 128>}, {pipeline_mode = #tpu.pipeline_mode<synchronous>, transform_indices = @transform_2, window_bounds = array<i64: 1, 128>}, {pipeline_mode = #tpu.pipeline_mode<synchronous>, transform_indices = @transform_3, window_bounds = array<i64: 1, 128>}, {transform_indices = @transform_4, window_bounds = array<i64: 48, 128>}]} {
    %c0 = arith.constant 0 : index
    %c0_0 = arith.constant 0 : index
    %0 = vector.load %arg1[%c0, %c0_0] : memref<48x128xf32, #tpu.memory_space<vmem>>, vector<48x128xf32>
    %c0_1 = arith.constant 0 : index
    %c0_2 = arith.constant 0 : index
    %1 = vector.load %arg2[%c0_1, %c0_2] : memref<128x128xf32, #tpu.memory_space<vmem>>, vector<128x128xf32>
    %cst = arith.constant dense<0.000000e+00> : vector<48x128xf32>
    %2 = tpu.matmul %0, %1, %cst {dimension_numbers = #tpu.dot_dimension_numbers<[1], [0], [0], [1], [0, 0, 1, 1], [], []>} : vector<48x128xf32>, vector<128x128xf32>, vector<48x128xf32> -> vector<48x128xf32>
    %3 = arith.negf %2 : vector<48x128xf32>
    %4 = math.exp %3 : vector<48x128xf32>
    %cst_3 = arith.constant 1.000000e+00 : f32
    %5 = vector.broadcast %cst_3 : f32 to vector<48x128xf32>
    %6 = arith.addf %5, %4 : vector<48x128xf32>
    %7 = arith.divf %5, %6 : vector<48x128xf32>
    %8 = arith.mulf %2, %7 : vector<48x128xf32>
    %c0_4 = arith.constant 0 : index
    %c0_5 = arith.constant 0 : index
    %9 = vector.load %arg3[%c0_4, %c0_5] : memref<1x128xf32, #tpu.memory_space<vmem>>, vector<1x128xf32>
    %c0_6 = arith.constant 0 : index
    %c0_7 = arith.constant 0 : index
    %10 = vector.load %arg4[%c0_6, %c0_7] : memref<1x128xf32, #tpu.memory_space<vmem>>, vector<1x128xf32>
    %cst_8 = arith.constant dense<0.000000e+00> : vector<48xf32>
    %11 = vector.multi_reduction <add>, %8, %cst_8 [1] : vector<48x128xf32> to vector<48xf32>
    %12 = vector.shape_cast %11 : vector<48xf32> to vector<48x1xf32>
    %cst_9 = arith.constant 1.280000e+02 : f32
    %13 = vector.broadcast %cst_9 : f32 to vector<48x1xf32>
    %14 = arith.divf %12, %13 : vector<48x1xf32>
    %15 = vector.broadcast %14 : vector<48x1xf32> to vector<48x128xf32>
    %16 = arith.subf %8, %15 : vector<48x128xf32>
    %17 = arith.mulf %16, %16 : vector<48x128xf32>
    %cst_10 = arith.constant dense<0.000000e+00> : vector<48xf32>
    %18 = vector.multi_reduction <add>, %17, %cst_10 [1] : vector<48x128xf32> to vector<48xf32>
    %19 = vector.shape_cast %18 : vector<48xf32> to vector<48x1xf32>
    %cst_11 = arith.constant 1.280000e+02 : f32
    %20 = vector.broadcast %cst_11 : f32 to vector<48x1xf32>
    %21 = arith.divf %19, %20 : vector<48x1xf32>
    %22 = vector.broadcast %14 : vector<48x1xf32> to vector<48x128xf32>
    %23 = arith.subf %8, %22 : vector<48x128xf32>
    %cst_12 = arith.constant 9.99999974E-6 : f32
    %24 = vector.broadcast %cst_12 : f32 to vector<48x1xf32>
    %25 = arith.addf %21, %24 : vector<48x1xf32>
    %26 = math.rsqrt %25 : vector<48x1xf32>
    %27 = vector.broadcast %26 : vector<48x1xf32> to vector<48x128xf32>
    %28 = arith.mulf %23, %27 : vector<48x128xf32>
    %29 = vector.broadcast %9 : vector<1x128xf32> to vector<48x128xf32>
    %30 = arith.mulf %28, %29 : vector<48x128xf32>
    %31 = vector.broadcast %10 : vector<1x128xf32> to vector<48x128xf32>
    %32 = arith.addf %30, %31 : vector<48x128xf32>
    %c0_13 = arith.constant 0 : index
    %c0_14 = arith.constant 0 : index
    %33 = vector.load %arg1[%c0_13, %c0_14] : memref<48x128xf32, #tpu.memory_space<vmem>>, vector<48x128xf32>
    %34 = arith.addf %33, %32 : vector<48x128xf32>
    %c0_15 = arith.constant 0 : index
    %c0_16 = arith.constant 0 : index
    %35 = vector.load %arg5[%c0_15, %c0_16] : memref<48x128xf32, #tpu.memory_space<vmem>>, vector<48x128xf32>
    tpu.vector_store %arg5[%c0_15, %c0_16], %34 {strides = array<i32>} : memref<48x128xf32, #tpu.memory_space<vmem>>, vector<48x128xf32>,
    return
  }
  func.func @transform_0(%arg0: i32) -> (i32, i32) {
    %c0_i32 = arith.constant 0 : i32
    %c0_i32_0 = arith.constant 0 : i32
    return %arg0, %c0_i32 : i32, i32
  }
  func.func @transform_1(%arg0: i32) -> (i32, i32) {
    %c0_i32 = arith.constant 0 : i32
    %c0_i32_0 = arith.constant 0 : i32
    %c0_i32_1 = arith.constant 0 : i32
    return %c0_i32, %c0_i32_0 : i32, i32
  }
  func.func @transform_2(%arg0: i32) -> (i32, i32) {
    %c0_i32 = arith.constant 0 : i32
    %c0_i32_0 = arith.constant 0 : i32
    %c0_i32_1 = arith.constant 0 : i32
    return %c0_i32, %c0_i32_0 : i32, i32
  }
  func.func @transform_3(%arg0: i32) -> (i32, i32) {
    %c0_i32 = arith.constant 0 : i32
    %c0_i32_0 = arith.constant 0 : i32
    %c0_i32_1 = arith.constant 0 : i32
    return %c0_i32, %c0_i32_0 : i32, i32
  }
  func.func @transform_4(%arg0: i32) -> (i32, i32) {
    %c0_i32 = arith.constant 0 : i32
    %c0_i32_0 = arith.constant 0 : i32
    return %arg0, %c0_i32 : i32, i32
  }
}

</mosaic_0001>

<bundles_post_ra>
// kernel: lora_n2e2n_block.4
= control target key start
LH: loop header
LB: loop body
LE: loop exit
PB: predicated region body
PF: predicated region fallthrough
CT: control target
= control target key end

     0   :  { %s1047_s0 = inlined_call_operand.vmem [shape: f32[32,256], index: 0, kind: input, shape index: {}]   ;;  %s1048_s1 = inlined_call_operand.vmem [shape: f32[256,128], index: 1, kind: input, shape index: {}]   ;;  %s1049_s2 = inlined_call_operand.vmem [shape: f32[32,128], index: 2, kind: input, shape index: {}]   ;;  %s1050_s3 = inlined_call_operand.vmem [shape: f32[128,128], index: 3, kind: input, shape index: {}]   ;;  %s1051_s4 = inlined_call_operand.vmem [shape: f32[128,128], index: 4, kind: input, shape index: {}]   ;;  %s1052_s5 = inlined_call_operand.vmem [shape: f32[1,128], index: 5, kind: input, shape index: {}]   ;;  %s1053_s6 = inlined_call_operand.vmem [shape: f32[1,128], index: 6, kind: input, shape index: {}]   ;;  %s1054_s7 = inlined_call_operand.hbm [shape: f32[32,128], index: 7, kind: output, shape index: {}]  }
   0x1   :  { %v78_v0 = vld [vmem:[%s1048_s1 + $0xf8] sm:$0xff]  ;;  %v77_v2 = vld [vmem:[%s1048_s1 + $0xf0] sm:$0xff]  ;;  %v76_v4 = vld [vmem:[%s1048_s1 + $0xe8] sm:$0xff] }
   0x2   :  { %v62_v1 = vld [vmem:[%s1048_s1 + $0x78] sm:$0xff]  ;;  %510 = vmatprep.subr.mxu0 %v78_v0  ;;  %v61_v3 = vld [vmem:[%s1048_s1 + $0x70] sm:$0xff]  ;;  %v60_v5 = vld [vmem:[%s1048_s1 + $0x68] sm:$0xff] }
   0x3   :  { %511 = vmatpush3.msra.mxu0 %v62_v1  ;;  %v75_v6 = vld [vmem:[%s1048_s1 + $0xe0] sm:$0xff]  ;;  %v74_v8 = vld [vmem:[%s1048_s1 + $0xd8] sm:$0xff]  ;;  %v73_v10 = vld [vmem:[%s1048_s1 + $0xd0] sm:$0xff] }
   0x4   :  { %512 = vmatprep.subr.mxu0 %v77_v2  ;;  %v59_v7 = vld [vmem:[%s1048_s1 + $0x60] sm:$0xff]  ;;  %v58_v9 = vld [vmem:[%s1048_s1 + $0x58] sm:$0xff]  ;;  %v57_v11 = vld [vmem:[%s1048_s1 + $0x50] sm:$0xff] }
   0x5   :  { %513 = vmatpush3.msra.mxu0 %v61_v3  ;;  %v72_v12 = vld [vmem:[%s1048_s1 + $0xc8] sm:$0xff]  ;;  %v71_v15 = vld [vmem:[%s1048_s1 + $0xc0] sm:$0xff]  ;;  %v214_v17 = vld [vmem:[%s1051_s4 + $0x78] sm:$0xff] }
   0x6   :  { %514 = vmatprep.subr.mxu0 %v76_v4  ;;  %v40_v13 = vld [vmem:[%s1047_s0 + $0x8] sm:$0xff]  ;;  %v55_v16 = vld [vmem:[%s1048_s1 + $0x40] sm:$0xff]  ;;  %v213_v18 = vld [vmem:[%s1051_s4 + $0x70] sm:$0xff]  ;;  %594 = vmatprep.subr.mxu1 %v214_v17 }
   0x7   :  { %515 = vmatpush3.msra.mxu0 %v60_v5  ;;  %v56_v14 = vld [vmem:[%s1048_s1 + $0x48] sm:$0xff]  ;;  %143 = vmatprep.mubr.f32.mxu0 %v40_v13  ;;  %v70_v19 = vld [vmem:[%s1048_s1 + $0xb8] sm:$0xff]  ;;  %v69_v22 = vld [vmem:[%s1048_s1 + $0xb0] sm:$0xff] }
   0x8   :  { %516 = vmatprep.subr.mxu0 %v75_v6  ;;  %v54_v20 = vld [vmem:[%s1048_s1 + $0x38] sm:$0xff]  ;;  %595 = vmatpush3.msra.mxu1 %v214_v17  ;;  %v212_v21 = vld [vmem:[%s1051_s4 + $0x68] sm:$0xff]  ;;  %v53_v23 = vld [vmem:[%s1048_s1 + $0x30] sm:$0xff] }
   0x9   :  { %517 = vmatpush3.msra.mxu0 %v59_v7  ;;  %596 = vmatprep.subr.mxu1 %v213_v18  ;;  %v211_v24 = vld [vmem:[%s1051_s4 + $0x60] sm:$0xff]  ;;  %v68_v25 = vld [vmem:[%s1048_s1 + $0xa8] sm:$0xff]  ;;  %v210_v27 = vld [vmem:[%s1051_s4 + $0x58] sm:$0xff] }
   0xa   :  { %518 = vmatprep.subr.mxu0 %v74_v8  ;;  %597 = vmatpush3.msra.mxu1 %v213_v18  ;;  %v52_v26 = vld [vmem:[%s1048_s1 + $0x28] sm:$0xff]  ;;  %v67_v28 = vld [vmem:[%s1048_s1 + $0xa0] sm:$0xff]  ;;  %v209_v30 = vld [vmem:[%s1051_s4 + $0x50] sm:$0xff] }
   0xb   :  { %519 = vmatpush3.msra.mxu0 %v58_v9  ;;  %598 = vmatprep.subr.mxu1 %v212_v21  ;;  %v51_v29 = vld [vmem:[%s1048_s1 + $0x20] sm:$0xff]  ;;  %v66_v31 = vld [vmem:[%s1048_s1 + $0x98] sm:$0xff]  ;;  %v208_v33 = vld [vmem:[%s1051_s4 + $0x48] sm:$0xff] }
   0xc   :  { %520 = vmatprep.subr.mxu0 %v73_v10  ;;  %599 = vmatpush3.msra.mxu1 %v212_v21  ;;  %v50_v32 = vld [vmem:[%s1048_s1 + $0x18] sm:$0xff] }
   0xd   :  { %521 = vmatpush3.msra.mxu0 %v57_v11  ;;  %600 = vmatprep.subr.mxu1 %v211_v24 }
   0xe   :  { %522 = vmatprep.subr.mxu0 %v72_v12  ;;  %601 = vmatpush3.msra.mxu1 %v211_v24 }
   0xf   :  { %523 = vmatpush3.msra.mxu0 %v56_v14  ;;  %602 = vmatprep.subr.mxu1 %v210_v27 }
  0x10   :  { %524 = vmatprep.subr.mxu0 %v71_v15  ;;  %603 = vmatpush3.msra.mxu1 %v210_v27 }
  0x11   :  { %525 = vmatpush3.msra.mxu0 %v55_v16 }
  0x12   :  { %526 = vmatprep.subr.mxu0 %v70_v19 }
  0x13   :  { %527 = vmatpush3.msra.mxu0 %v54_v20 }
  0x14   :  { %528 = vmatprep.subr.mxu0 %v69_v22 }
  0x15   :  { %529 = vmatpush3.msra.mxu0 %v53_v23 }
  0x16   :  { %530 = vmatprep.subr.mxu0 %v68_v25 }
  0x17   :  { %531 = vmatpush3.msra.mxu0 %v52_v26 }
  0x18   :  { %532 = vmatprep.subr.mxu0 %v67_v28 }
  0x19   :  { %12 = vsyncpa [#allocation4], 0  ;;  %533 = vmatpush3.msra.mxu0 %v51_v29  ;;  %v65_v34 = vld [vmem:[%s1048_s1 + $0x90] sm:$0xff]  ;;  %604 = vmatprep.subr.mxu1 %v209_v30  ;;  %v207_v36 = vld [vmem:[%s1051_s4 + $0x40] sm:$0xff] }
  0x1a   :  { %534 = vmatprep.subr.mxu0 %v66_v31  ;;  %v49_v35 = vld [vmem:[%s1048_s1 + $0x10] sm:$0xff]  ;;  %605 = vmatpush3.msra.mxu1 %v209_v30  ;;  %v64_v37 = vld [vmem:[%s1048_s1 + $0x88] sm:$0xff]  ;;  %v206_v39 = vld [vmem:[%s1051_s4 + $0x38] sm:$0xff] }
  0x1b   :  { %535 = vmatpush3.msra.mxu0 %v50_v32  ;;  %606 = vmatprep.subr.mxu1 %v208_v33  ;;  %v48_v38 = vld [vmem:[%s1048_s1 + $0x8] sm:$0xff]  ;;  %v63_v40 = vld [vmem:[%s1048_s1 + $0x80] sm:$0xff]  ;;  %v205_v42 = vld [vmem:[%s1051_s4 + $0x30] sm:$0xff] }
  0x1c   :  { %536 = vmatprep.subr.mxu0 %v65_v34  ;;  %607 = vmatpush3.msra.mxu1 %v208_v33  ;;  %v47_v41 = vld [vmem:[%s1048_s1] sm:$0xff]  ;;  %v42_v44 = vld [vmem:[%s1047_s0 + $0x18] sm:$0xff]  ;;  %v204_v45 = vld [vmem:[%s1051_s4 + $0x28] sm:$0xff] }
  0x1d   :  { %537 = vmatpush3.msra.mxu0 %v49_v35  ;;  %608 = vmatprep.subr.mxu1 %v207_v36  ;;  %v39_v43 = vld [vmem:[%s1047_s0] sm:$0xff]  ;;  %v194_v46 = vld [vmem:[%s1050_s3 + $0x78] sm:$0xff]  ;;  %v41_v48 = vld [vmem:[%s1047_s0 + $0x10] sm:$0xff] }
  0x1e   :  { %538 = vmatprep.subr.mxu0 %v64_v37  ;;  %609 = vmatpush3.msra.mxu1 %v207_v36  ;;  %v203_v47 = vld [vmem:[%s1051_s4 + $0x20] sm:$0xff]  ;;  %v44_v49 = vld [vmem:[%s1047_s0 + $0x28] sm:$0xff]  ;;  %v202_v50 = vld [vmem:[%s1051_s4 + $0x18] sm:$0xff] }
  0x1f   :  { %539 = vmatpush3.msra.mxu0 %v48_v38  ;;  %610 = vmatprep.subr.mxu1 %v206_v39  ;;  %v193_v51 = vld [vmem:[%s1050_s3 + $0x70] sm:$0xff]  ;;  %v43_v53 = vld [vmem:[%s1047_s0 + $0x20] sm:$0xff]  ;;  %v46_v54 = vld [vmem:[%s1047_s0 + $0x38] sm:$0xff] }
  0x20   :  { %540 = vmatprep.subr.mxu0 %v63_v40  ;;  %611 = vmatpush3.msra.mxu1 %v206_v39  ;;  %v201_v52 = vld [vmem:[%s1051_s4 + $0x10] sm:$0xff]  ;;  %v200_v55 = vld [vmem:[%s1051_s4 + $0x8] sm:$0xff]  ;;  %v199_v57 = vld [vmem:[%s1051_s4] sm:$0xff] }
  0x21   :  { %541 = vmatpush3.msra.mxu0 %v47_v41  ;;  %612 = vmatprep.subr.mxu1 %v205_v42  ;;  %v192_v56 = vld [vmem:[%s1050_s3 + $0x68] sm:$0xff]  ;;  %v45_v58 = vld [vmem:[%s1047_s0 + $0x30] sm:$0xff]  ;;  %v974_v59 = vld [vmem:[%s1049_s2] sm:$0xff] }
  0x22   :  { %144 = vmatmul.mubr.f32.vlgmr.msra.gmra.mxu0 %v39_v43  ;;  %613 = vmatpush3.msra.mxu1 %v205_v42  ;;  %v191_v60 = vld [vmem:[%s1050_s3 + $0x60] sm:$0xff]  ;;  %v982_v61 = vld [vmem:[%s1049_s2 + $0x8] sm:$0xff]  ;;  %v190_v62 = vld [vmem:[%s1050_s3 + $0x58] sm:$0xff] }
  0x23   :  { %148 = vmatprep.mubr.f32.mxu0 %v42_v44  ;;  %614 = vmatprep.subr.mxu1 %v204_v45  ;;  %v189_v63 = vld [vmem:[%s1050_s3 + $0x50] sm:$0xff]  ;;  %v188_v0 = vld [vmem:[%s1050_s3 + $0x48] sm:$0xff]  ;;  %v187_v1 = vld [vmem:[%s1050_s3 + $0x40] sm:$0xff] }
  0x24   :  { %615 = vmatpush3.msra.mxu1 %v204_v45  ;;  %632 = vmatprep.subr.mxu0 %v194_v46  ;;  %v186_v2 = vld [vmem:[%s1050_s3 + $0x38] sm:$0xff]  ;;  %v185_v3 = vld [vmem:[%s1050_s3 + $0x30] sm:$0xff]  ;;  %v184_v4 = vld [vmem:[%s1050_s3 + $0x28] sm:$0xff] }
  0x25   :  { %616 = vmatprep.subr.mxu1 %v203_v47  ;;  %633 = vmatpush3.msra.mxu0 %v194_v46  ;;  %v183_v5 = vld [vmem:[%s1050_s3 + $0x20] sm:$0xff]  ;;  %v182_v6 = vld [vmem:[%s1050_s3 + $0x18] sm:$0xff]  ;;  %v181_v7 = vld [vmem:[%s1050_s3 + $0x10] sm:$0xff] }
  0x26   :  { %149 = vmatmul.mubr.f32.gmra.mxu0 %v41_v48  ;;  %617 = vmatpush3.msra.mxu1 %v203_v47  ;;  %v180_v8 = vld [vmem:[%s1050_s3 + $0x8] sm:$0xff]  ;;  %v179_v9 = vld [vmem:[%s1050_s3] sm:$0xff]  ;;  %v1025_v10 = vld [vmem:[%s1049_s2 + $0x10] sm:$0xff] }
  0x27   :  { %153 = vmatprep.mubr.f32.mxu0 %v44_v49  ;;  %618 = vmatprep.subr.mxu1 %v202_v50  ;;  %v1031_v11 = vld [vmem:[%s1049_s2 + $0x18] sm:$0xff] }
  0x28   :  { %619 = vmatpush3.msra.mxu1 %v202_v50  ;;  %634 = vmatprep.subr.mxu0 %v193_v51 }
  0x29   :  { %620 = vmatprep.subr.mxu1 %v201_v52  ;;  %635 = vmatpush3.msra.mxu0 %v193_v51 }
  0x2a   :  { %154 = vmatmul.mubr.f32.gmra.mxu0 %v43_v53  ;;  %621 = vmatpush3.msra.mxu1 %v201_v52 }
  0x2b   :  { %158 = vmatprep.mubr.f32.mxu0 %v46_v54  ;;  %622 = vmatprep.subr.mxu1 %v200_v55 }
  0x2c   :  { %623 = vmatpush3.msra.mxu1 %v200_v55  ;;  %636 = vmatprep.subr.mxu0 %v192_v56 }
  0x2d   :  { %624 = vmatprep.subr.mxu1 %v199_v57  ;;  %637 = vmatpush3.msra.mxu0 %v192_v56 }
  0x2e   :  { %159 = vmatmul.mubr.f32.gmra.mxu0 %v45_v58  ;;  %625 = vmatpush3.msra.mxu1 %v199_v57 }
  0x2f   :  { %626 = vmatprep.mubr.f32.mxu1 %v974_v59  ;;  %638 = vmatprep.subr.mxu0 %v191_v60 }
  0x30   :  { %627 = vmatmul.mubr.f32.vlgmr.msra.gmra.mxu1 %v982_v61  ;;  %639 = vmatpush3.msra.mxu0 %v191_v60 }
  0x31   :  { %670 = vmatprep.subr.mxu1 %v194_v46  ;;  %640 = vmatprep.subr.mxu0 %v190_v62 }
  0x32   :  { %686 = vmatpush3.msra.mxu1 %v194_v46  ;;  %641 = vmatpush3.msra.mxu0 %v190_v62 }
  0x33   :  { %671 = vmatprep.subr.mxu1 %v193_v51  ;;  %642 = vmatprep.subr.mxu0 %v189_v63 }
  0x34   :  { %687 = vmatpush3.msra.mxu1 %v193_v51  ;;  %643 = vmatpush3.msra.mxu0 %v189_v63 }
  0x35   :  { %672 = vmatprep.subr.mxu1 %v192_v56  ;;  %644 = vmatprep.subr.mxu0 %v188_v0 }
  0x36   :  { %688 = vmatpush3.msra.mxu1 %v192_v56  ;;  %645 = vmatpush3.msra.mxu0 %v188_v0 }
  0x37   :  { %673 = vmatprep.subr.mxu1 %v191_v60  ;;  %646 = vmatprep.subr.mxu0 %v187_v1 }
  0x38   :  { %689 = vmatpush3.msra.mxu1 %v191_v60  ;;  %647 = vmatpush3.msra.mxu0 %v187_v1 }
  0x39   :  { %674 = vmatprep.subr.mxu1 %v190_v62  ;;  %648 = vmatprep.subr.mxu0 %v186_v2 }
  0x3a   :  { %690 = vmatpush3.msra.mxu1 %v190_v62  ;;  %649 = vmatpush3.msra.mxu0 %v186_v2 }
  0x3b   :  { %675 = vmatprep.subr.mxu1 %v189_v63  ;;  %650 = vmatprep.subr.mxu0 %v185_v3 }
  0x3c   :  { %691 = vmatpush3.msra.mxu1 %v189_v63  ;;  %651 = vmatpush3.msra.mxu0 %v185_v3 }
  0x3d   :  { %676 = vmatprep.subr.mxu1 %v188_v0  ;;  %652 = vmatprep.subr.mxu0 %v184_v4 }
  0x3e   :  { %692 = vmatpush3.msra.mxu1 %v188_v0  ;;  %653 = vmatpush3.msra.mxu0 %v184_v4 }
  0x3f   :  { %677 = vmatprep.subr.mxu1 %v187_v1  ;;  %654 = vmatprep.subr.mxu0 %v183_v5 }
  0x40   :  { %693 = vmatpush3.msra.mxu1 %v187_v1  ;;  %655 = vmatpush3.msra.mxu0 %v183_v5 }
  0x41   :  { %678 = vmatprep.subr.mxu1 %v186_v2  ;;  %656 = vmatprep.subr.mxu0 %v182_v6 }
  0x42   :  { %694 = vmatpush3.msra.mxu1 %v186_v2  ;;  %657 = vmatpush3.msra.mxu0 %v182_v6 }
  0x43   :  { %679 = vmatprep.subr.mxu1 %v185_v3  ;;  %658 = vmatprep.subr.mxu0 %v181_v7 }
  0x44   :  { %695 = vmatpush3.msra.mxu1 %v185_v3  ;;  %659 = vmatpush3.msra.mxu0 %v181_v7 }
  0x45   :  { %680 = vmatprep.subr.mxu1 %v184_v4  ;;  %660 = vmatprep.subr.mxu0 %v180_v8 }
  0x46   :  { %696 = vmatpush3.msra.mxu1 %v184_v4  ;;  %661 = vmatpush3.msra.mxu0 %v180_v8 }
  0x47   :  { %681 = vmatprep.subr.mxu1 %v183_v5  ;;  %662 = vmatprep.subr.mxu0 %v179_v9 }
  0x48   :  { %697 = vmatpush3.msra.mxu1 %v183_v5  ;;  %663 = vmatpush3.msra.mxu0 %v179_v9 }
  0x49   :  { %682 = vmatprep.subr.mxu1 %v182_v6  ;;  %629 = vmatprep.mubr.f32.mxu1 %v1025_v10 }
  0x4a   :  { %698 = vmatpush3.msra.mxu1 %v182_v6 }
  0x4b   :  { %683 = vmatprep.subr.mxu1 %v181_v7  ;;  %630 = vmatmul.mubr.f32.gmra.mxu1 %v1031_v11 }
  0x4c   :  { %699 = vmatpush3.msra.mxu1 %v181_v7 }
  0x4d   :  { %684 = vmatprep.subr.mxu1 %v180_v8 }
  0x4e   :  { %700 = vmatpush3.msra.mxu1 %v180_v8 }
  0x4f   :  { %685 = vmatprep.subr.mxu1 %v179_v9 }
  0x50   :  { %701 = vmatpush3.msra.mxu1 %v179_v9 }
  0xe2   :  { %v542_v12 = vpop.f32.mrf.mxu0 }
  0xe4   :  { %v543_v13 = vpop.f32.mrf.mxu0 }
  0xe5   :  { %v544_v14 = vadd.f32 %v543_v13, %v542_v12 }
  0xe6   :  { %v545_v15 = vpop.f32.mrf.mxu0 }
  0xe7   :  { %664 = vmatprep.mubr.f32.mxu0 %v544_v14 }
  0xe8   :  { %v546_v16 = vpop.f32.mrf.mxu0 }
  0xe9   :  { %v547_v17 = vadd.f32 %v546_v16, %v545_v15 }
  0xea   :  { %v548_v18 = vpop.f32.mrf.mxu0 }
  0xeb   :  { %665 = vmatmul.mubr.f32.vlgmr.msra.gmra.mxu0 %v547_v17 }
  0xec   :  { %v549_v19 = vpop.f32.mrf.mxu0 }
  0xed   :  { %v550_v20 = vadd.f32 %v549_v19, %v548_v18 }
  0xee   :  { %v551_v21 = vpop.f32.mrf.mxu0 }
  0xef   :  { %667 = vmatprep.mubr.f32.mxu1 %v550_v20 }
  0xf0   :  { %v552_v22 = vpop.f32.mrf.mxu0  ;;  %v628_v24 = vpop.f32.mrf.mxu1 }
  0xf1   :  { %v553_v23 = vadd.f32 %v552_v22, %v551_v21 }
  0xf2   :  { %v281_v25 = vpop.f32.mrf.mxu1 }
  0xf3   :  { %668 = vmatmul.mubr.f32.vlgmr.msra.gmra.mxu1 %v553_v23 }
 0x10b   :  { %v631_v28 = vpop.f32.mrf.mxu1 }
 0x10d   :  { %v291_v33 = vpop.f32.mrf.mxu1 }
 0x1ab   :  { %v666_v26 = vpop.f32.mrf.mxu0 }
 0x1ac   :  { %v372_v27 = vadd.f32 %v666_v26, %v628_v24 }
 0x1ad   :  { %v366_v29 = vpop.f32.mrf.mxu0 }
 0x1ae   :  { %v505_v30 = vmul.f32 -1.442695, %v372_v27  ;;  %v367_v31 = vadd.f32 %v366_v29, %v281_v25  ;;  %v508_v25 = vld [vmem:[%s1052_s5] ss:$0 sm:$0xff]  ;;  %s751_s5 = smov [#allocation3]  }
 0x1b0   :  { %705 = vpow2.f32 %v505_v30  ;;  %v504_v32 = vmul.f32 -1.442695, %v367_v31 }
 0x1b2   :  { %707 = vpow2.f32 %v504_v32 }
 0x1b3   :  { %v669_v34 = vpop.f32.mrf.mxu1 }
 0x1b4   :  { %v382_v35 = vadd.f32 %v669_v34, %v631_v28 }
 0x1b5   :  { %v376_v36 = vpop.f32.mrf.mxu1 }
 0x1b6   :  { %v507_v37 = vmul.f32 -1.442695, %v382_v35  ;;  %v377_v38 = vadd.f32 %v376_v36, %v291_v33 }
 0x1b8   :  { %709 = vpow2.f32 %v507_v37  ;;  %v506_v39 = vmul.f32 -1.442695, %v377_v38 }
 0x1ba   :  { %711 = vpow2.f32 %v506_v39 }
 0x1bd   :  { %v706_v40 = vpop.eup %705 }
 0x1be   :  { %v398_v42 = vadd.f32 1.0, %v706_v40 }
 0x1bf   :  { %v708_v41 = vpop.eup %707 }
 0x1c0   :  { %v397_v43 = vadd.f32 1.0, %v708_v41 }
 0x1c2   :  { %713 = vrcp.f32 %v397_v43 }
 0x1c3   :  { %715 = vrcp.f32 %v398_v42 }
 0x1c5   :  { %v710_v44 = vpop.eup %709 }
 0x1c6   :  { %v400_v46 = vadd.f32 1.0, %v710_v44 }
 0x1c7   :  { %v712_v45 = vpop.eup %711 }
 0x1c8   :  { %v399_v47 = vadd.f32 1.0, %v712_v45 }
 0x1ca   :  { %717 = vrcp.f32 %v399_v47 }
 0x1cb   :  { %719 = vrcp.f32 %v400_v46 }
 0x1cf   :  { %v714_v48 = vpop.eup %713 }
 0x1d0   :  { %v409_v49 = vmul.f32 %v714_v48, %v367_v31  ;;  %v716_v50 = vpop.eup %715 }
 0x1d1   :  { %v410_v51 = vmul.f32 %v716_v50, %v372_v27  ;;  %v509_v27 = vld [vmem:[%s1053_s6] ss:$0 sm:$0xff]  ;;  %s493_s6 = sshll.u32 %s751_s5, 4  ;;  %s494_s6 = int_to_ptr.vmem [resolvable:$true] %s493_s6 }
 0x1d2   :  { %415 = vadd.xlane.f32.xlu0 %v409_v49  ;;  %s729_s10 = scalar_lea.vmem %s494_s6, 512  ;;  %p734_p1 = scmp.lt.s32.totalorder %s494_s6, %s494_s6 }
 0x1d3   :  { %p730_p0 = scmp.ne.s32.totalorder %s494_s6, %s729_s10  ;;  %p735_p2 = scmp.lt.s32.totalorder %s729_s10, %s729_s10 }
 0x1d5   :  { %p736_p3 = por %p735_p2, %p734_p1 }
 0x1d6   :  { %417 = vadd.xlane.f32.xlu0 %v410_v51 }
 0x1d7   :  { %v718_v52 = vpop.eup %717  ;;  %p737_p4 = pnand %p736_p3, %p730_p0 }
 0x1d8   :  { %v411_v53 = vmul.f32 %v718_v52, %v377_v38  ;;  %v720_v54 = vpop.eup %719 }
 0x1d9   :  { %v412_v55 = vmul.f32 %v720_v54, %v382_v35 }
 0x1da   :  { %419 = vadd.xlane.f32.xlu1 %v411_v53 }
 0x1de   :  { %421 = vadd.xlane.f32.xlu1 %v412_v55 }
 0x25b   :  { %v416_v56 = vpop.xlane.xlu0 %415 }
 0x25c   :  { %v424_v57 = vmul.f32 0.0078125, %v416_v56 }
 0x25e   :  { %v428_v58 = vsub.f32 %v409_v49, %v424_v57 }
 0x25f   :  { %v418_v60 = vpop.xlane.xlu0 %417 }
 0x260   :  { %v425_v62 = vmul.f32 0.0078125, %v418_v60  ;;  %v432_v63 = vmul.f32 %v428_v58, %v428_v58 }
 0x262   :  { %v429_v0 = vsub.f32 %v410_v51, %v425_v62  ;;  %436 = vadd.xlane.f32.xlu0 %v432_v63 }
 0x263   :  { %v420_v1 = vpop.xlane.xlu1 %419 }
 0x264   :  { %v426_v2 = vmul.f32 0.0078125, %v420_v1  ;;  %v433_v3 = vmul.f32 %v429_v0, %v429_v0 }
 0x266   :  { %v430_v4 = vsub.f32 %v411_v53, %v426_v2  ;;  %438 = vadd.xlane.f32.xlu1 %v433_v3 }
 0x267   :  { %v422_v5 = vpop.xlane.xlu1 %421 }
 0x268   :  { %v427_v6 = vmul.f32 0.0078125, %v422_v5  ;;  %v434_v7 = vmul.f32 %v430_v4, %v430_v4 }
 0x26a   :  { %v431_v8 = vsub.f32 %v412_v55, %v427_v6  ;;  %440 = vadd.xlane.f32.xlu0 %v434_v7 }
 0x26c   :  { %v435_v9 = vmul.f32 %v431_v8, %v431_v8 }
 0x26e   :  { %442 = vadd.xlane.f32.xlu1 %v435_v9 }
 0x2eb   :  { %v437_v12 = vpop.xlane.xlu0 %436 }
 0x2ec   :  { %v444_v13 = vmul.f32 0.0078125, %v437_v12 }
 0x2ee   :  { %v448_v14 = vadd.f32 1e-05, %v444_v13 }
 0x2ef   :  { %v439_v15 = vpop.xlane.xlu1 %438 }
 0x2f0   :  { %721 = vrsqrt.f32 %v448_v14  ;;  %v445_v16 = vmul.f32 0.0078125, %v439_v15 }
 0x2f2   :  { %v449_v17 = vadd.f32 1e-05, %v445_v16 }
 0x2f3   :  { %v441_v18 = vpop.xlane.xlu0 %440 }
 0x2f4   :  { %723 = vrsqrt.f32 %v449_v17  ;;  %v446_v19 = vmul.f32 0.0078125, %v441_v18 }
 0x2f6   :  { %v450_v20 = vadd.f32 1e-05, %v446_v19 }
 0x2f7   :  { %v443_v21 = vpop.xlane.xlu1 %442 }
 0x2f8   :  { %725 = vrsqrt.f32 %v450_v20  ;;  %v447_v22 = vmul.f32 0.0078125, %v443_v21 }
 0x2fa   :  { %v451_v23 = vadd.f32 1e-05, %v447_v22 }
 0x2fc   :  { %727 = vrsqrt.f32 %v451_v23 }
 0x2fd   :  { %v722_v24 = vpop.eup %721 }
 0x2fe   :  { %v456_v26 = vmul.f32 %v722_v24, %v428_v58 }
 0x300   :  { %v466_v28 = vmul.f32 %v508_v25, %v456_v26 }
 0x301   :  { %v724_v29 = vpop.eup %723 }
 0x302   :  { %v457_v30 = vmul.f32 %v724_v29, %v429_v0  ;;  %v476_v31 = vadd.f32 %v509_v27, %v466_v28 }
 0x304   :  { %v467_v32 = vmul.f32 %v508_v25, %v457_v30  ;;  %v480_v33 = vadd.f32 %v476_v31, %v974_v59 }
 0x305   :  { %v726_v34 = vpop.eup %725 }
 0x306   :  { %v458_v35 = vmul.f32 %v726_v34, %v430_v4  ;;  %v477_v36 = vadd.f32 %v509_v27, %v467_v32  ;;  %484 = vst [vmem:[#allocation3] sm:$0xff] %v480_v33 }
 0x308   :  { %v468_v37 = vmul.f32 %v508_v25, %v458_v35  ;;  %v481_v38 = vadd.f32 %v477_v36, %v982_v61 }
 0x309   :  { %v728_v39 = vpop.eup %727 }
 0x30a   :  { %v459_v40 = vmul.f32 %v728_v39, %v431_v8  ;;  %v478_v41 = vadd.f32 %v509_v27, %v468_v37  ;;  %485 = vst [vmem:[#allocation3 + $0x8] sm:$0xff] %v481_v38 }
 0x30c   :  { %v469_v42 = vmul.f32 %v508_v25, %v459_v40  ;;  %v482_v43 = vadd.f32 %v478_v41, %v1025_v10 }
 0x30e   :  { %v479_v44 = vadd.f32 %v509_v27, %v469_v42  ;;  %486 = vst [vmem:[#allocation3 + $0x10] sm:$0xff] %v482_v43 }
 0x310   :  { %v483_v59 = vadd.f32 %v479_v44, %v1031_v11 }
 0x312   :  { %487 = vst [vmem:[#allocation3 + $0x18] sm:$0xff] %v483_v59 }
 0x313   :  { %740 = shalt.err (!%p737_p4)
}
 0x314   :  { %s752_s11 = smov 128   ;;  %s753_s12 = smov 8  }
 0x315   :  { %499 = dma.vmem_to_hbm [thread:$0]  %s494_s6, 512, %s1054_s7, [#allocation4], %s752_s11, %s752_s11, %s753_s12  }
 0x316   :  { %749 = dma.done.wait [#allocation4], 512  }
 0x317   :  { %750 = vsyncadd [#allocation4], 4294966784 }
 0x318   :  { %503 = vsyncpa [#allocation4], 1 }

// kernel: lora_n2e2n_block.5
= control target key start
LH: loop header
LB: loop body
LE: loop exit
PB: predicated region body
PF: predicated region fallthrough
CT: control target
= control target key end

     0   :  { %s589_s0 = inlined_call_operand.vmem [shape: f32[48,128], index: 0, kind: input, shape index: {}]   ;;  %s590_s1 = inlined_call_operand.vmem [shape: f32[128,128], index: 1, kind: input, shape index: {}]   ;;  %s591_s2 = inlined_call_operand.vmem [shape: f32[1,128], index: 2, kind: input, shape index: {}]   ;;  %s592_s3 = inlined_call_operand.vmem [shape: f32[1,128], index: 3, kind: input, shape index: {}]   ;;  %s593_s4 = inlined_call_operand.hbm [shape: f32[48,128], index: 4, kind: output, shape index: {}]  }
   0x1   :  { %v39_v0 = vld [vmem:[%s590_s1 + $0x78] sm:$0xff]  ;;  %v38_v1 = vld [vmem:[%s590_s1 + $0x70] sm:$0xff]  ;;  %v37_v2 = vld [vmem:[%s590_s1 + $0x68] sm:$0xff] }
   0x2   :  { %328 = vmatprep.subr.mxu0 %v39_v0  ;;  %369 = vmatprep.subr.mxu1 %v39_v0  ;;  %v36_v3 = vld [vmem:[%s590_s1 + $0x60] sm:$0xff]  ;;  %v35_v4 = vld [vmem:[%s590_s1 + $0x58] sm:$0xff] }
   0x3   :  { %329 = vmatpush3.msra.mxu0 %v39_v0  ;;  %385 = vmatpush3.msra.mxu1 %v39_v0 }
   0x4   :  { %330 = vmatprep.subr.mxu0 %v38_v1  ;;  %370 = vmatprep.subr.mxu1 %v38_v1 }
   0x5   :  { %331 = vmatpush3.msra.mxu0 %v38_v1  ;;  %386 = vmatpush3.msra.mxu1 %v38_v1 }
   0x6   :  { %332 = vmatprep.subr.mxu0 %v37_v2  ;;  %371 = vmatprep.subr.mxu1 %v37_v2 }
   0x7   :  { %333 = vmatpush3.msra.mxu0 %v37_v2  ;;  %387 = vmatpush3.msra.mxu1 %v37_v2 }
   0x8   :  { %334 = vmatprep.subr.mxu0 %v36_v3  ;;  %372 = vmatprep.subr.mxu1 %v36_v3 }
   0x9   :  { %9 = vsyncpa [#allocation3], 0  ;;  %335 = vmatpush3.msra.mxu0 %v36_v3  ;;  %388 = vmatpush3.msra.mxu1 %v36_v3  ;;  %v34_v5 = vld [vmem:[%s590_s1 + $0x50] sm:$0xff]  ;;  %v33_v6 = vld [vmem:[%s590_s1 + $0x48] sm:$0xff] }
   0xa   :  { %336 = vmatprep.subr.mxu0 %v35_v4  ;;  %373 = vmatprep.subr.mxu1 %v35_v4  ;;  %v32_v7 = vld [vmem:[%s590_s1 + $0x40] sm:$0xff]  ;;  %v31_v8 = vld [vmem:[%s590_s1 + $0x38] sm:$0xff]  ;;  %v30_v9 = vld [vmem:[%s590_s1 + $0x30] sm:$0xff] }
   0xb   :  { %337 = vmatpush3.msra.mxu0 %v35_v4  ;;  %389 = vmatpush3.msra.mxu1 %v35_v4  ;;  %v29_v10 = vld [vmem:[%s590_s1 + $0x28] sm:$0xff]  ;;  %v28_v11 = vld [vmem:[%s590_s1 + $0x20] sm:$0xff]  ;;  %v27_v12 = vld [vmem:[%s590_s1 + $0x18] sm:$0xff] }
   0xc   :  { %338 = vmatprep.subr.mxu0 %v34_v5  ;;  %374 = vmatprep.subr.mxu1 %v34_v5  ;;  %v26_v13 = vld [vmem:[%s590_s1 + $0x10] sm:$0xff]  ;;  %v25_v14 = vld [vmem:[%s590_s1 + $0x8] sm:$0xff]  ;;  %v24_v15 = vld [vmem:[%s590_s1] sm:$0xff] }
   0xd   :  { %339 = vmatpush3.msra.mxu0 %v34_v5  ;;  %390 = vmatpush3.msra.mxu1 %v34_v5  ;;  %v541_v16 = vld [vmem:[%s589_s0] sm:$0xff]  ;;  %v546_v17 = vld [vmem:[%s589_s0 + $0x10] sm:$0xff]  ;;  %v551_v18 = vld [vmem:[%s589_s0 + $0x8] sm:$0xff] }
   0xe   :  { %340 = vmatprep.subr.mxu0 %v33_v6  ;;  %375 = vmatprep.subr.mxu1 %v33_v6  ;;  %v556_v19 = vld [vmem:[%s589_s0 + $0x18] sm:$0xff]  ;;  %v561_v20 = vld [vmem:[%s589_s0 + $0x20] sm:$0xff]  ;;  %v571_v21 = vld [vmem:[%s589_s0 + $0x28] sm:$0xff] }
   0xf   :  { %341 = vmatpush3.msra.mxu0 %v33_v6  ;;  %391 = vmatpush3.msra.mxu1 %v33_v6 }
  0x10   :  { %342 = vmatprep.subr.mxu0 %v32_v7  ;;  %376 = vmatprep.subr.mxu1 %v32_v7 }
  0x11   :  { %343 = vmatpush3.msra.mxu0 %v32_v7  ;;  %392 = vmatpush3.msra.mxu1 %v32_v7 }
  0x12   :  { %344 = vmatprep.subr.mxu0 %v31_v8  ;;  %377 = vmatprep.subr.mxu1 %v31_v8 }
  0x13   :  { %345 = vmatpush3.msra.mxu0 %v31_v8  ;;  %393 = vmatpush3.msra.mxu1 %v31_v8 }
  0x14   :  { %346 = vmatprep.subr.mxu0 %v30_v9  ;;  %378 = vmatprep.subr.mxu1 %v30_v9 }
  0x15   :  { %347 = vmatpush3.msra.mxu0 %v30_v9  ;;  %394 = vmatpush3.msra.mxu1 %v30_v9 }
  0x16   :  { %348 = vmatprep.subr.mxu0 %v29_v10  ;;  %379 = vmatprep.subr.mxu1 %v29_v10 }
  0x17   :  { %349 = vmatpush3.msra.mxu0 %v29_v10  ;;  %395 = vmatpush3.msra.mxu1 %v29_v10 }
  0x18   :  { %350 = vmatprep.subr.mxu0 %v28_v11  ;;  %380 = vmatprep.subr.mxu1 %v28_v11 }
  0x19   :  { %351 = vmatpush3.msra.mxu0 %v28_v11  ;;  %396 = vmatpush3.msra.mxu1 %v28_v11 }
  0x1a   :  { %352 = vmatprep.subr.mxu0 %v27_v12  ;;  %381 = vmatprep.subr.mxu1 %v27_v12 }
  0x1b   :  { %353 = vmatpush3.msra.mxu0 %v27_v12  ;;  %397 = vmatpush3.msra.mxu1 %v27_v12 }
  0x1c   :  { %354 = vmatprep.subr.mxu0 %v26_v13  ;;  %382 = vmatprep.subr.mxu1 %v26_v13 }
  0x1d   :  { %355 = vmatpush3.msra.mxu0 %v26_v13  ;;  %398 = vmatpush3.msra.mxu1 %v26_v13 }
  0x1e   :  { %356 = vmatprep.subr.mxu0 %v25_v14  ;;  %383 = vmatprep.subr.mxu1 %v25_v14 }
  0x1f   :  { %357 = vmatpush3.msra.mxu0 %v25_v14  ;;  %399 = vmatpush3.msra.mxu1 %v25_v14 }
  0x20   :  { %358 = vmatprep.subr.mxu0 %v24_v15  ;;  %384 = vmatprep.subr.mxu1 %v24_v15 }
  0x21   :  { %359 = vmatpush3.msra.mxu0 %v24_v15  ;;  %400 = vmatpush3.msra.mxu1 %v24_v15 }
  0x22   :  { %360 = vmatprep.mubr.f32.mxu0 %v541_v16  ;;  %363 = vmatprep.mubr.f32.mxu1 %v546_v17 }
  0x23   :  { %361 = vmatmul.mubr.f32.vlgmr.msra.gmra.mxu0 %v551_v18  ;;  %364 = vmatmul.mubr.f32.vlgmr.msra.gmra.mxu1 %v556_v19 }
  0x24   :  { %366 = vmatprep.mubr.f32.mxu1 %v561_v20 }
  0x27   :  { %367 = vmatmul.mubr.f32.gmra.mxu1 %v571_v21 }
  0xe3   :  { %v362_v22 = vpop.f32.mrf.mxu0  ;;  %v365_v23 = vpop.f32.mrf.mxu1 }
  0xe4   :  { %v299_v24 = vmul.f32 -1.442695, %v362_v22  ;;  %v301_v25 = vmul.f32 -1.442695, %v365_v23 }
  0xe5   :  { %v106_v26 = vpop.f32.mrf.mxu0  ;;  %v116_v27 = vpop.f32.mrf.mxu1 }
  0xe6   :  { %404 = vpow2.f32 %v299_v24  ;;  %v298_v28 = vmul.f32 -1.442695, %v106_v26  ;;  %v300_v29 = vmul.f32 -1.442695, %v116_v27 }
  0xe7   :  { %406 = vpow2.f32 %v301_v25  ;;  %v368_v30 = vpop.f32.mrf.mxu1 }
  0xe8   :  { %408 = vpow2.f32 %v298_v28  ;;  %v303_v31 = vmul.f32 -1.442695, %v368_v30 }
  0xe9   :  { %410 = vpow2.f32 %v300_v29  ;;  %v126_v32 = vpop.f32.mrf.mxu1 }
  0xea   :  { %412 = vpow2.f32 %v303_v31  ;;  %v302_v33 = vmul.f32 -1.442695, %v126_v32 }
  0xec   :  { %414 = vpow2.f32 %v302_v33 }
  0xf3   :  { %v405_v34 = vpop.eup %404 }
  0xf4   :  { %v407_v35 = vpop.eup %406  ;;  %v154_v36 = vadd.f32 1.0, %v405_v34 }
  0xf5   :  { %v409_v37 = vpop.eup %408  ;;  %v156_v38 = vadd.f32 1.0, %v407_v35 }
  0xf6   :  { %v411_v39 = vpop.eup %410  ;;  %416 = vrcp.f32 %v154_v36  ;;  %v153_v40 = vadd.f32 1.0, %v409_v37 }
  0xf7   :  { %v413_v41 = vpop.eup %412  ;;  %418 = vrcp.f32 %v156_v38  ;;  %v155_v42 = vadd.f32 1.0, %v411_v39 }
  0xf8   :  { %420 = vrcp.f32 %v153_v40  ;;  %v158_v44 = vadd.f32 1.0, %v413_v41 }
  0xf9   :  { %v415_v43 = vpop.eup %414  ;;  %422 = vrcp.f32 %v155_v42 }
  0xfa   :  { %v157_v45 = vadd.f32 1.0, %v415_v43  ;;  %v304_v43 = vld [vmem:[%s591_s2] ss:$0 sm:$0xff]  ;;  %s462_s2 = smov [#allocation2]  }
  0xfc   :  { %424 = vrcp.f32 %v157_v45  ;;  %v305_v45 = vld [vmem:[%s592_s3] ss:$0 sm:$0xff]  ;;  %s287_s3 = sshll.u32 %s462_s2, 4  ;;  %s288_s3 = int_to_ptr.vmem [resolvable:$true] %s287_s3 }
  0xfd   :  { %426 = vrcp.f32 %v158_v44  ;;  %s440_s9 = scalar_lea.vmem %s288_s3, 768  ;;  %p445_p1 = scmp.lt.s32.totalorder %s288_s3, %s288_s3 }
  0xfe   :  { %p441_p0 = scmp.ne.s32.totalorder %s288_s3, %s440_s9  ;;  %p446_p2 = scmp.lt.s32.totalorder %s440_s9, %s440_s9 }
 0x100   :  { %p447_p3 = por %p446_p2, %p445_p1 }
 0x102   :  { %p448_p4 = pnand %p447_p3, %p441_p0 }
 0x103   :  { %v417_v46 = vpop.eup %416 }
 0x104   :  { %v419_v47 = vpop.eup %418  ;;  %v172_v48 = vmul.f32 %v417_v46, %v362_v22 }
 0x105   :  { %v421_v49 = vpop.eup %420  ;;  %v174_v50 = vmul.f32 %v419_v47, %v365_v23 }
 0x106   :  { %v423_v51 = vpop.eup %422  ;;  %181 = vadd.xlane.f32.xlu0 %v172_v48  ;;  %v171_v52 = vmul.f32 %v421_v49, %v106_v26 }
 0x107   :  { %185 = vadd.xlane.f32.xlu1 %v174_v50  ;;  %v173_v54 = vmul.f32 %v423_v51, %v116_v27 }
 0x109   :  { %v425_v53 = vpop.eup %424 }
 0x10a   :  { %v427_v55 = vpop.eup %426  ;;  %179 = vadd.xlane.f32.xlu0 %v171_v52  ;;  %v175_v56 = vmul.f32 %v425_v53, %v126_v32 }
 0x10b   :  { %183 = vadd.xlane.f32.xlu1 %v173_v54  ;;  %v176_v57 = vmul.f32 %v427_v55, %v368_v30 }
 0x10e   :  { %187 = vadd.xlane.f32.xlu0 %v175_v56 }
 0x10f   :  { %189 = vadd.xlane.f32.xlu1 %v176_v57 }
 0x18f   :  { %v182_v58 = vpop.xlane.xlu0 %181 }
 0x190   :  { %v186_v59 = vpop.xlane.xlu1 %185  ;;  %v193_v60 = vmul.f32 0.0078125, %v182_v58 }
 0x191   :  { %v195_v61 = vmul.f32 0.0078125, %v186_v59 }
 0x192   :  { %v199_v62 = vsub.f32 %v172_v48, %v193_v60 }
 0x193   :  { %v180_v63 = vpop.xlane.xlu0 %179  ;;  %v201_v0 = vsub.f32 %v174_v50, %v195_v61 }
 0x194   :  { %v184_v1 = vpop.xlane.xlu1 %183  ;;  %v192_v2 = vmul.f32 0.0078125, %v180_v63  ;;  %v205_v3 = vmul.f32 %v199_v62, %v199_v62 }
 0x195   :  { %v194_v4 = vmul.f32 0.0078125, %v184_v1  ;;  %v207_v10 = vmul.f32 %v201_v0, %v201_v0 }
 0x196   :  { %v198_v5 = vsub.f32 %v171_v52, %v192_v2  ;;  %212 = vadd.xlane.f32.xlu1 %v205_v3 }
 0x197   :  { %v188_v6 = vpop.xlane.xlu0 %187  ;;  %v200_v7 = vsub.f32 %v173_v54, %v194_v4 }
 0x198   :  { %v190_v8 = vpop.xlane.xlu1 %189  ;;  %v196_v9 = vmul.f32 0.0078125, %v188_v6  ;;  %v204_v11 = vmul.f32 %v198_v5, %v198_v5 }
 0x199   :  { %v197_v12 = vmul.f32 0.0078125, %v190_v8  ;;  %v206_v15 = vmul.f32 %v200_v7, %v200_v7 }
 0x19a   :  { %216 = vadd.xlane.f32.xlu1 %v207_v10  ;;  %210 = vadd.xlane.f32.xlu0 %v204_v11  ;;  %v202_v14 = vsub.f32 %v175_v56, %v196_v9 }
 0x19b   :  { %v203_v13 = vsub.f32 %v176_v57, %v197_v12 }
 0x19c   :  { %v208_v23 = vmul.f32 %v202_v14, %v202_v14 }
 0x19d   :  { %v209_v22 = vmul.f32 %v203_v13, %v203_v13 }
 0x19e   :  { %214 = vadd.xlane.f32.xlu0 %v206_v15 }
 0x19f   :  { %220 = vadd.xlane.f32.xlu1 %v209_v22 }
 0x1a2   :  { %218 = vadd.xlane.f32.xlu0 %v208_v23 }
 0x21f   :  { %v213_v24 = vpop.xlane.xlu1 %212 }
 0x220   :  { %v223_v25 = vmul.f32 0.0078125, %v213_v24 }
 0x222   :  { %v229_v26 = vadd.f32 1e-05, %v223_v25 }
 0x223   :  { %v217_v27 = vpop.xlane.xlu1 %216  ;;  %v211_v28 = vpop.xlane.xlu0 %210 }
 0x224   :  { %428 = vrsqrt.f32 %v229_v26  ;;  %v225_v29 = vmul.f32 0.0078125, %v217_v27  ;;  %v222_v30 = vmul.f32 0.0078125, %v211_v28 }
 0x226   :  { %v231_v31 = vadd.f32 1e-05, %v225_v29  ;;  %v228_v32 = vadd.f32 1e-05, %v222_v30 }
 0x227   :  { %v215_v33 = vpop.xlane.xlu0 %214 }
 0x228   :  { %430 = vrsqrt.f32 %v231_v31  ;;  %v221_v34 = vpop.xlane.xlu1 %220  ;;  %v224_v35 = vmul.f32 0.0078125, %v215_v33 }
 0x229   :  { %432 = vrsqrt.f32 %v228_v32  ;;  %v227_v36 = vmul.f32 0.0078125, %v221_v34 }
 0x22a   :  { %v230_v37 = vadd.f32 1e-05, %v224_v35 }
 0x22b   :  { %v233_v38 = vadd.f32 1e-05, %v227_v36  ;;  %v219_v39 = vpop.xlane.xlu0 %218 }
 0x22c   :  { %434 = vrsqrt.f32 %v230_v37  ;;  %v226_v40 = vmul.f32 0.0078125, %v219_v39 }
 0x22d   :  { %436 = vrsqrt.f32 %v233_v38 }
 0x22e   :  { %v232_v41 = vadd.f32 1e-05, %v226_v40 }
 0x230   :  { %438 = vrsqrt.f32 %v232_v41 }
 0x231   :  { %v429_v42 = vpop.eup %428 }
 0x232   :  { %v241_v44 = vmul.f32 %v429_v42, %v199_v62 }
 0x234   :  { %v253_v46 = vmul.f32 %v304_v43, %v241_v44 }
 0x235   :  { %v431_v47 = vpop.eup %430 }
 0x236   :  { %v433_v48 = vpop.eup %432  ;;  %v265_v49 = vadd.f32 %v305_v45, %v253_v46  ;;  %v243_v50 = vmul.f32 %v431_v47, %v201_v0 }
 0x237   :  { %v240_v51 = vmul.f32 %v433_v48, %v198_v5 }
 0x238   :  { %v271_v52 = vadd.f32 %v265_v49, %v551_v18  ;;  %v255_v53 = vmul.f32 %v304_v43, %v243_v50 }
 0x239   :  { %v435_v54 = vpop.eup %434  ;;  %v252_v55 = vmul.f32 %v304_v43, %v240_v51 }
 0x23a   :  { %v437_v56 = vpop.eup %436  ;;  %277 = vst [vmem:[#allocation2 + $0x8] sm:$0xff] %v271_v52  ;;  %v267_v57 = vadd.f32 %v305_v45, %v255_v53  ;;  %v242_v58 = vmul.f32 %v435_v54, %v200_v7 }
 0x23b   :  { %v264_v59 = vadd.f32 %v305_v45, %v252_v55  ;;  %v245_v60 = vmul.f32 %v437_v56, %v203_v13 }
 0x23c   :  { %v273_v61 = vadd.f32 %v267_v57, %v556_v19  ;;  %v254_v62 = vmul.f32 %v304_v43, %v242_v58 }
 0x23d   :  { %v439_v63 = vpop.eup %438  ;;  %v270_v1 = vadd.f32 %v264_v59, %v541_v16  ;;  %v257_v2 = vmul.f32 %v304_v43, %v245_v60 }
 0x23e   :  { %279 = vst [vmem:[#allocation2 + $0x18] sm:$0xff] %v273_v61  ;;  %v266_v0 = vadd.f32 %v305_v45, %v254_v62  ;;  %v244_v3 = vmul.f32 %v439_v63, %v202_v14 }
 0x23f   :  { %276 = vst [vmem:[#allocation2] sm:$0xff] %v270_v1  ;;  %v269_v18 = vadd.f32 %v305_v45, %v257_v2 }
 0x240   :  { %v272_v4 = vadd.f32 %v266_v0, %v546_v17  ;;  %v256_v5 = vmul.f32 %v304_v43, %v244_v3 }
 0x241   :  { %v275_v6 = vadd.f32 %v269_v18, %v571_v21 }
 0x242   :  { %278 = vst [vmem:[#allocation2 + $0x10] sm:$0xff] %v272_v4  ;;  %v268_v7 = vadd.f32 %v305_v45, %v256_v5 }
 0x243   :  { %281 = vst [vmem:[#allocation2 + $0x28] sm:$0xff] %v275_v6 }
 0x244   :  { %v274_v19 = vadd.f32 %v268_v7, %v561_v20 }
 0x246   :  { %280 = vst [vmem:[#allocation2 + $0x20] sm:$0xff] %v274_v19 }
 0x247   :  { %451 = shalt.err (!%p448_p4)
}
 0x248   :  { %s463_s10 = smov 128   ;;  %s464_s11 = smov 8  }
 0x249   :  { %293 = dma.vmem_to_hbm [thread:$0]  %s288_s3, 768, %s593_s4, [#allocation3], %s463_s10, %s463_s10, %s464_s11  }
 0x24a   :  { %460 = dma.done.wait [#allocation3], 768  }
 0x24b   :  { %461 = vsyncadd [#allocation3], 4294966528 }
 0x24c   :  { %297 = vsyncpa [#allocation3], 1 }

// kernel: lora_n2e2n_block.3
= control target key start
LH: loop header
LB: loop body
LE: loop exit
PB: predicated region body
PF: predicated region fallthrough
CT: control target
= control target key end

     0   :  { %s3644_s4 = inlined_call_operand.vmem [shape: f32[128,128], index: 4, kind: input, shape index: {}]   ;;  %s3645_s1 = inlined_call_operand.vmem [shape: f32[256,128], index: 1, kind: input, shape index: {}]   ;;  %s3646_s3 = inlined_call_operand.vmem [shape: f32[128,128], index: 3, kind: input, shape index: {}]   ;;  %s3647_s5 = inlined_call_operand.vmem [shape: f32[128,128], index: 5, kind: input, shape index: {}]   ;;  %s3648_s0 = inlined_call_operand.vmem [shape: f32[256,128], index: 0, kind: input, shape index: {}]   ;;  %s3649_s2 = inlined_call_operand.vmem [shape: f32[256,128], index: 2, kind: input, shape index: {}]   ;;  %s3650_s6 = inlined_call_operand.vmem [shape: f32[1,128], index: 6, kind: input, shape index: {}]   ;;  %s3651_s7 = inlined_call_operand.vmem [shape: f32[1,128], index: 7, kind: input, shape index: {}]   ;;  %s3652_s8 = inlined_call_operand.vmem [shape: f32[256,128], index: 8, kind: output, shape index: {0}]   ;;  %s3653_s9 = inlined_call_operand.vmem [shape: f32[256,128], index: 9, kind: output, shape index: {1}]  }
   0x1   :  { %v126_v0 = vld [vmem:[%s3644_s4 + $0x78] sm:$0xff]  ;;  %v125_v1 = vld [vmem:[%s3644_s4 + $0x70] sm:$0xff]  ;;  %v124_v2 = vld [vmem:[%s3644_s4 + $0x68] sm:$0xff] }
   0x2   :  { %2091 = vmatprep.subr.mxu1 %v126_v0  ;;  %1851 = vmatprep.subr.mxu0 %v126_v0  ;;  %v123_v3 = vld [vmem:[%s3644_s4 + $0x60] sm:$0xff]  ;;  %v122_v4 = vld [vmem:[%s3644_s4 + $0x58] sm:$0xff]  ;;  %v121_v5 = vld [vmem:[%s3644_s4 + $0x50] sm:$0xff] }
   0x3   :  { %2107 = vmatpush3.msra.mxu1 %v126_v0  ;;  %1852 = vmatpush3.msra.mxu0 %v126_v0  ;;  %v120_v6 = vld [vmem:[%s3644_s4 + $0x48] sm:$0xff]  ;;  %v119_v7 = vld [vmem:[%s3644_s4 + $0x40] sm:$0xff]  ;;  %v118_v8 = vld [vmem:[%s3644_s4 + $0x38] sm:$0xff] }
   0x4   :  { %2092 = vmatprep.subr.mxu1 %v125_v1  ;;  %1853 = vmatprep.subr.mxu0 %v125_v1  ;;  %v117_v9 = vld [vmem:[%s3644_s4 + $0x30] sm:$0xff]  ;;  %v116_v10 = vld [vmem:[%s3644_s4 + $0x28] sm:$0xff]  ;;  %v115_v11 = vld [vmem:[%s3644_s4 + $0x20] sm:$0xff] }
   0x5   :  { %2108 = vmatpush3.msra.mxu1 %v125_v1  ;;  %1854 = vmatpush3.msra.mxu0 %v125_v1  ;;  %v114_v12 = vld [vmem:[%s3644_s4 + $0x18] sm:$0xff]  ;;  %v113_v13 = vld [vmem:[%s3644_s4 + $0x10] sm:$0xff]  ;;  %v112_v14 = vld [vmem:[%s3644_s4 + $0x8] sm:$0xff] }
   0x6   :  { %2093 = vmatprep.subr.mxu1 %v124_v2  ;;  %1855 = vmatprep.subr.mxu0 %v124_v2  ;;  %v111_v15 = vld [vmem:[%s3644_s4] sm:$0xff]  ;;  %v96_v18 = vld [vmem:[%s3645_s1 + $0x88] sm:$0xff]  ;;  %v78_v19 = vld [vmem:[%s3646_s3 + $0x78] sm:$0xff] }
   0x7   :  { %2109 = vmatpush3.msra.mxu1 %v124_v2  ;;  %1856 = vmatpush3.msra.mxu0 %v124_v2  ;;  %v95_v16 = vld [vmem:[%s3645_s1 + $0x80] sm:$0xff]  ;;  %v80_v20 = vld [vmem:[%s3645_s1 + $0x8] sm:$0xff]  ;;  %v624_v21 = vld [vmem:[%s3647_s5 + $0x78] sm:$0xff] }
   0x8   :  { %2094 = vmatprep.subr.mxu1 %v123_v3  ;;  %1857 = vmatprep.subr.mxu0 %v123_v3  ;;  %v79_v17 = vld [vmem:[%s3645_s1] sm:$0xff]  ;;  %v77_v22 = vld [vmem:[%s3646_s3 + $0x70] sm:$0xff]  ;;  %v98_v26 = vld [vmem:[%s3645_s1 + $0x98] sm:$0xff] }
   0x9   :  { %2110 = vmatpush3.msra.mxu1 %v123_v3  ;;  %1858 = vmatpush3.msra.mxu0 %v123_v3  ;;  %v97_v23 = vld [vmem:[%s3645_s1 + $0x90] sm:$0xff]  ;;  %v76_v27 = vld [vmem:[%s3646_s3 + $0x68] sm:$0xff]  ;;  %v82_v28 = vld [vmem:[%s3645_s1 + $0x18] sm:$0xff] }
   0xa   :  { %2095 = vmatprep.subr.mxu1 %v122_v4  ;;  %1859 = vmatprep.subr.mxu0 %v122_v4  ;;  %v623_v24 = vld [vmem:[%s3647_s5 + $0x70] sm:$0xff]  ;;  %v622_v29 = vld [vmem:[%s3647_s5 + $0x68] sm:$0xff]  ;;  %v75_v30 = vld [vmem:[%s3646_s3 + $0x60] sm:$0xff] }
   0xb   :  { %2111 = vmatpush3.msra.mxu1 %v122_v4  ;;  %1860 = vmatpush3.msra.mxu0 %v122_v4  ;;  %v81_v25 = vld [vmem:[%s3645_s1 + $0x10] sm:$0xff]  ;;  %v99_v31 = vld [vmem:[%s3645_s1 + $0xa0] sm:$0xff]  ;;  %v100_v34 = vld [vmem:[%s3645_s1 + $0xa8] sm:$0xff] }
   0xc   :  { %2096 = vmatprep.subr.mxu1 %v121_v5  ;;  %1861 = vmatprep.subr.mxu0 %v121_v5  ;;  %v621_v32 = vld [vmem:[%s3647_s5 + $0x60] sm:$0xff]  ;;  %v74_v35 = vld [vmem:[%s3646_s3 + $0x58] sm:$0xff]  ;;  %v84_v36 = vld [vmem:[%s3645_s1 + $0x28] sm:$0xff] }
   0xd   :  { %2112 = vmatpush3.msra.mxu1 %v121_v5  ;;  %1862 = vmatpush3.msra.mxu0 %v121_v5  ;;  %v83_v33 = vld [vmem:[%s3645_s1 + $0x20] sm:$0xff]  ;;  %v620_v37 = vld [vmem:[%s3647_s5 + $0x58] sm:$0xff]  ;;  %v73_v38 = vld [vmem:[%s3646_s3 + $0x50] sm:$0xff] }
   0xe   :  { %2097 = vmatprep.subr.mxu1 %v120_v6  ;;  %1863 = vmatprep.subr.mxu0 %v120_v6  ;;  %v101_v39 = vld [vmem:[%s3645_s1 + $0xb0] sm:$0xff]  ;;  %v102_v42 = vld [vmem:[%s3645_s1 + $0xb8] sm:$0xff]  ;;  %v72_v43 = vld [vmem:[%s3646_s3 + $0x48] sm:$0xff] }
   0xf   :  { %2113 = vmatpush3.msra.mxu1 %v120_v6  ;;  %1864 = vmatpush3.msra.mxu0 %v120_v6  ;;  %v619_v40 = vld [vmem:[%s3647_s5 + $0x50] sm:$0xff]  ;;  %v86_v44 = vld [vmem:[%s3645_s1 + $0x38] sm:$0xff]  ;;  %v618_v45 = vld [vmem:[%s3647_s5 + $0x48] sm:$0xff] }
  0x10   :  { %2098 = vmatprep.subr.mxu1 %v119_v7  ;;  %1865 = vmatprep.subr.mxu0 %v119_v7  ;;  %v85_v41 = vld [vmem:[%s3645_s1 + $0x30] sm:$0xff]  ;;  %v71_v46 = vld [vmem:[%s3646_s3 + $0x40] sm:$0xff]  ;;  %v104_v50 = vld [vmem:[%s3645_s1 + $0xc8] sm:$0xff] }
  0x11   :  { %2114 = vmatpush3.msra.mxu1 %v119_v7  ;;  %1866 = vmatpush3.msra.mxu0 %v119_v7  ;;  %v103_v47 = vld [vmem:[%s3645_s1 + $0xc0] sm:$0xff]  ;;  %v70_v51 = vld [vmem:[%s3646_s3 + $0x38] sm:$0xff]  ;;  %v88_v52 = vld [vmem:[%s3645_s1 + $0x48] sm:$0xff] }
  0x12   :  { %2099 = vmatprep.subr.mxu1 %v118_v8  ;;  %1867 = vmatprep.subr.mxu0 %v118_v8  ;;  %v617_v48 = vld [vmem:[%s3647_s5 + $0x40] sm:$0xff]  ;;  %v616_v53 = vld [vmem:[%s3647_s5 + $0x38] sm:$0xff]  ;;  %v69_v54 = vld [vmem:[%s3646_s3 + $0x30] sm:$0xff] }
  0x13   :  { %2115 = vmatpush3.msra.mxu1 %v118_v8  ;;  %1868 = vmatpush3.msra.mxu0 %v118_v8  ;;  %v87_v49 = vld [vmem:[%s3645_s1 + $0x40] sm:$0xff]  ;;  %v105_v55 = vld [vmem:[%s3645_s1 + $0xd0] sm:$0xff]  ;;  %v106_v58 = vld [vmem:[%s3645_s1 + $0xd8] sm:$0xff] }
  0x14   :  { %2100 = vmatprep.subr.mxu1 %v117_v9  ;;  %1869 = vmatprep.subr.mxu0 %v117_v9  ;;  %v615_v56 = vld [vmem:[%s3647_s5 + $0x30] sm:$0xff]  ;;  %v68_v59 = vld [vmem:[%s3646_s3 + $0x28] sm:$0xff]  ;;  %v90_v60 = vld [vmem:[%s3645_s1 + $0x58] sm:$0xff] }
  0x15   :  { %2116 = vmatpush3.msra.mxu1 %v117_v9  ;;  %1870 = vmatpush3.msra.mxu0 %v117_v9  ;;  %v89_v57 = vld [vmem:[%s3645_s1 + $0x50] sm:$0xff]  ;;  %v614_v61 = vld [vmem:[%s3647_s5 + $0x28] sm:$0xff]  ;;  %v67_v62 = vld [vmem:[%s3646_s3 + $0x20] sm:$0xff] }
  0x16   :  { %2101 = vmatprep.subr.mxu1 %v116_v10  ;;  %1871 = vmatprep.subr.mxu0 %v116_v10  ;;  %v107_v63 = vld [vmem:[%s3645_s1 + $0xe0] sm:$0xff]  ;;  %v108_v2 = vld [vmem:[%s3645_s1 + $0xe8] sm:$0xff]  ;;  %v66_v3 = vld [vmem:[%s3646_s3 + $0x18] sm:$0xff] }
  0x17   :  { %2117 = vmatpush3.msra.mxu1 %v116_v10  ;;  %1872 = vmatpush3.msra.mxu0 %v116_v10  ;;  %v613_v0 = vld [vmem:[%s3647_s5 + $0x20] sm:$0xff]  ;;  %v92_v4 = vld [vmem:[%s3645_s1 + $0x68] sm:$0xff]  ;;  %v612_v5 = vld [vmem:[%s3647_s5 + $0x18] sm:$0xff] }
  0x18   :  { %2102 = vmatprep.subr.mxu1 %v115_v11  ;;  %1873 = vmatprep.subr.mxu0 %v115_v11  ;;  %v91_v1 = vld [vmem:[%s3645_s1 + $0x60] sm:$0xff]  ;;  %v65_v6 = vld [vmem:[%s3646_s3 + $0x10] sm:$0xff]  ;;  %v110_v10 = vld [vmem:[%s3645_s1 + $0xf8] sm:$0xff] }
  0x19   :  { %2118 = vmatpush3.msra.mxu1 %v115_v11  ;;  %1874 = vmatpush3.msra.mxu0 %v115_v11  ;;  %v109_v7 = vld [vmem:[%s3645_s1 + $0xf0] sm:$0xff]  ;;  %v64_v11 = vld [vmem:[%s3646_s3 + $0x8] sm:$0xff] }
  0x1a   :  { %2103 = vmatprep.subr.mxu1 %v114_v12  ;;  %1875 = vmatprep.subr.mxu0 %v114_v12  ;;  %v611_v8 = vld [vmem:[%s3647_s5 + $0x10] sm:$0xff] }
  0x1b   :  { %2119 = vmatpush3.msra.mxu1 %v114_v12  ;;  %1876 = vmatpush3.msra.mxu0 %v114_v12  ;;  %v93_v9 = vld [vmem:[%s3645_s1 + $0x70] sm:$0xff]  ;;  %v94_v12 = vld [vmem:[%s3645_s1 + $0x78] sm:$0xff] }
  0x1c   :  { %2104 = vmatprep.subr.mxu1 %v113_v13  ;;  %1877 = vmatprep.subr.mxu0 %v113_v13 }
  0x1d   :  { %2120 = vmatpush3.msra.mxu1 %v113_v13  ;;  %1878 = vmatpush3.msra.mxu0 %v113_v13  ;;  %v610_v13 = vld [vmem:[%s3647_s5 + $0x8] sm:$0xff] }
  0x1e   :  { %2105 = vmatprep.subr.mxu1 %v112_v14  ;;  %1879 = vmatprep.subr.mxu0 %v112_v14 }
  0x1f   :  { %2121 = vmatpush3.msra.mxu1 %v112_v14  ;;  %1880 = vmatpush3.msra.mxu0 %v112_v14  ;;  %v63_v14 = vld [vmem:[%s3646_s3] sm:$0xff] }
  0x20   :  { %2106 = vmatprep.subr.mxu1 %v111_v15  ;;  %1881 = vmatprep.subr.mxu0 %v111_v15 }
  0x21   :  { %2122 = vmatpush3.msra.mxu1 %v111_v15  ;;  %1907 = vmatprep.mubr.f32.mxu1 %v95_v16  ;;  %v609_v16 = vld [vmem:[%s3647_s5] sm:$0xff] }
  0x22   :  { %1882 = vmatpush3.msra.mxu0 %v111_v15  ;;  %1883 = vmatprep.mubr.f32.mxu0 %v79_v17  ;;  %v31_v15 = vld [vmem:[%s3648_s0] sm:$0xff]  ;;  %v32_v17 = vld [vmem:[%s3648_s0 + $0x8] sm:$0xff] }
  0x23   :  { %1908 = vmatmul.mubr.f32.vlgmr.msra.gmra.mxu1 %v96_v18  ;;  %1931 = vmatprep.subr.mxu1 %v78_v19  ;;  %v577_v18 = vld [vmem:[%s3649_s2] sm:$0xff] }
  0x24   :  { %1884 = vmatmul.mubr.f32.vlgmr.msra.gmra.mxu0 %v80_v20  ;;  %1932 = vmatpush3.msra.mxu1 %v78_v19  ;;  %v33_v19 = vld [vmem:[%s3648_s0 + $0x10] sm:$0xff]  ;;  %v578_v20 = vld [vmem:[%s3649_s2 + $0x8] sm:$0xff] }
  0x25   :  { %2011 = vmatprep.subr.mxu0 %v624_v21  ;;  %1933 = vmatprep.subr.mxu1 %v77_v22 }
  0x26   :  { %2012 = vmatpush3.msra.mxu0 %v624_v21  ;;  %1910 = vmatprep.mubr.f32.mxu1 %v97_v23  ;;  %v579_v21 = vld [vmem:[%s3649_s2 + $0x10] sm:$0xff]  ;;  %v35_v23 = vld [vmem:[%s3648_s0 + $0x20] sm:$0xff] }
  0x27   :  { %1934 = vmatpush3.msra.mxu1 %v77_v22  ;;  %2013 = vmatprep.subr.mxu0 %v623_v24  ;;  %v34_v22 = vld [vmem:[%s3648_s0 + $0x18] sm:$0xff] }
  0x28   :  { %1886 = vmatprep.mubr.f32.mxu0 %v81_v25  ;;  %1911 = vmatmul.mubr.f32.gmra.mxu1 %v98_v26  ;;  %v581_v25 = vld [vmem:[%s3649_s2 + $0x20] sm:$0xff]  ;;  %v36_v26 = vld [vmem:[%s3648_s0 + $0x28] sm:$0xff] }
  0x29   :  { %1935 = vmatprep.subr.mxu1 %v76_v27  ;;  %2014 = vmatpush3.msra.mxu0 %v623_v24  ;;  %v580_v24 = vld [vmem:[%s3649_s2 + $0x18] sm:$0xff] }
  0x2a   :  { %1887 = vmatmul.mubr.f32.gmra.mxu0 %v82_v28  ;;  %1936 = vmatpush3.msra.mxu1 %v76_v27  ;;  %v37_v27 = vld [vmem:[%s3648_s0 + $0x30] sm:$0xff]  ;;  %v582_v28 = vld [vmem:[%s3649_s2 + $0x28] sm:$0xff] }
  0x2b   :  { %2015 = vmatprep.subr.mxu0 %v622_v29  ;;  %1937 = vmatprep.subr.mxu1 %v75_v30 }
  0x2c   :  { %2016 = vmatpush3.msra.mxu0 %v622_v29  ;;  %1913 = vmatprep.mubr.f32.mxu1 %v99_v31  ;;  %v583_v29 = vld [vmem:[%s3649_s2 + $0x30] sm:$0xff]  ;;  %v39_v31 = vld [vmem:[%s3648_s0 + $0x40] sm:$0xff] }
  0x2d   :  { %1938 = vmatpush3.msra.mxu1 %v75_v30  ;;  %2017 = vmatprep.subr.mxu0 %v621_v32  ;;  %v38_v30 = vld [vmem:[%s3648_s0 + $0x38] sm:$0xff] }
  0x2e   :  { %1889 = vmatprep.mubr.f32.mxu0 %v83_v33  ;;  %1914 = vmatmul.mubr.f32.gmra.mxu1 %v100_v34  ;;  %v585_v33 = vld [vmem:[%s3649_s2 + $0x40] sm:$0xff]  ;;  %v40_v34 = vld [vmem:[%s3648_s0 + $0x48] sm:$0xff] }
  0x2f   :  { %1939 = vmatprep.subr.mxu1 %v74_v35  ;;  %2018 = vmatpush3.msra.mxu0 %v621_v32  ;;  %v584_v32 = vld [vmem:[%s3649_s2 + $0x38] sm:$0xff] }
  0x30   :  { %1890 = vmatmul.mubr.f32.gmra.mxu0 %v84_v36  ;;  %1940 = vmatpush3.msra.mxu1 %v74_v35  ;;  %v41_v35 = vld [vmem:[%s3648_s0 + $0x50] sm:$0xff]  ;;  %v586_v36 = vld [vmem:[%s3649_s2 + $0x48] sm:$0xff] }
  0x31   :  { %2019 = vmatprep.subr.mxu0 %v620_v37  ;;  %1941 = vmatprep.subr.mxu1 %v73_v38 }
  0x32   :  { %2020 = vmatpush3.msra.mxu0 %v620_v37  ;;  %1916 = vmatprep.mubr.f32.mxu1 %v101_v39  ;;  %v587_v37 = vld [vmem:[%s3649_s2 + $0x50] sm:$0xff]  ;;  %v43_v39 = vld [vmem:[%s3648_s0 + $0x60] sm:$0xff] }
  0x33   :  { %1942 = vmatpush3.msra.mxu1 %v73_v38  ;;  %2021 = vmatprep.subr.mxu0 %v619_v40  ;;  %v42_v38 = vld [vmem:[%s3648_s0 + $0x58] sm:$0xff] }
  0x34   :  { %1892 = vmatprep.mubr.f32.mxu0 %v85_v41  ;;  %1917 = vmatmul.mubr.f32.gmra.mxu1 %v102_v42  ;;  %v589_v41 = vld [vmem:[%s3649_s2 + $0x60] sm:$0xff]  ;;  %v44_v42 = vld [vmem:[%s3648_s0 + $0x68] sm:$0xff] }
  0x35   :  { %1943 = vmatprep.subr.mxu1 %v72_v43  ;;  %2022 = vmatpush3.msra.mxu0 %v619_v40  ;;  %v588_v40 = vld [vmem:[%s3649_s2 + $0x58] sm:$0xff] }
  0x36   :  { %1893 = vmatmul.mubr.f32.gmra.mxu0 %v86_v44  ;;  %1944 = vmatpush3.msra.mxu1 %v72_v43  ;;  %v45_v43 = vld [vmem:[%s3648_s0 + $0x70] sm:$0xff]  ;;  %v590_v44 = vld [vmem:[%s3649_s2 + $0x68] sm:$0xff] }
  0x37   :  { %2023 = vmatprep.subr.mxu0 %v618_v45  ;;  %1945 = vmatprep.subr.mxu1 %v71_v46 }
  0x38   :  { %2024 = vmatpush3.msra.mxu0 %v618_v45  ;;  %1919 = vmatprep.mubr.f32.mxu1 %v103_v47  ;;  %v591_v45 = vld [vmem:[%s3649_s2 + $0x70] sm:$0xff]  ;;  %v47_v47 = vld [vmem:[%s3648_s0 + $0x80] sm:$0xff] }
  0x39   :  { %1946 = vmatpush3.msra.mxu1 %v71_v46  ;;  %2025 = vmatprep.subr.mxu0 %v617_v48  ;;  %v46_v46 = vld [vmem:[%s3648_s0 + $0x78] sm:$0xff] }
  0x3a   :  { %1895 = vmatprep.mubr.f32.mxu0 %v87_v49  ;;  %1920 = vmatmul.mubr.f32.gmra.mxu1 %v104_v50  ;;  %v593_v49 = vld [vmem:[%s3649_s2 + $0x80] sm:$0xff]  ;;  %v48_v50 = vld [vmem:[%s3648_s0 + $0x88] sm:$0xff] }
  0x3b   :  { %1947 = vmatprep.subr.mxu1 %v70_v51  ;;  %2026 = vmatpush3.msra.mxu0 %v617_v48  ;;  %v592_v48 = vld [vmem:[%s3649_s2 + $0x78] sm:$0xff] }
  0x3c   :  { %1896 = vmatmul.mubr.f32.gmra.mxu0 %v88_v52  ;;  %1948 = vmatpush3.msra.mxu1 %v70_v51  ;;  %v49_v51 = vld [vmem:[%s3648_s0 + $0x90] sm:$0xff]  ;;  %v594_v52 = vld [vmem:[%s3649_s2 + $0x88] sm:$0xff] }
  0x3d   :  { %2027 = vmatprep.subr.mxu0 %v616_v53  ;;  %1949 = vmatprep.subr.mxu1 %v69_v54 }
  0x3e   :  { %2028 = vmatpush3.msra.mxu0 %v616_v53  ;;  %1922 = vmatprep.mubr.f32.mxu1 %v105_v55  ;;  %v595_v53 = vld [vmem:[%s3649_s2 + $0x90] sm:$0xff]  ;;  %v51_v55 = vld [vmem:[%s3648_s0 + $0xa0] sm:$0xff] }
  0x3f   :  { %1950 = vmatpush3.msra.mxu1 %v69_v54  ;;  %2029 = vmatprep.subr.mxu0 %v615_v56  ;;  %v50_v54 = vld [vmem:[%s3648_s0 + $0x98] sm:$0xff] }
  0x40   :  { %1898 = vmatprep.mubr.f32.mxu0 %v89_v57  ;;  %1923 = vmatmul.mubr.f32.gmra.mxu1 %v106_v58  ;;  %v597_v57 = vld [vmem:[%s3649_s2 + $0xa0] sm:$0xff]  ;;  %v52_v58 = vld [vmem:[%s3648_s0 + $0xa8] sm:$0xff] }
  0x41   :  { %1951 = vmatprep.subr.mxu1 %v68_v59  ;;  %2030 = vmatpush3.msra.mxu0 %v615_v56  ;;  %v596_v56 = vld [vmem:[%s3649_s2 + $0x98] sm:$0xff] }
  0x42   :  { %1899 = vmatmul.mubr.f32.gmra.mxu0 %v90_v60  ;;  %1952 = vmatpush3.msra.mxu1 %v68_v59  ;;  %v53_v59 = vld [vmem:[%s3648_s0 + $0xb0] sm:$0xff]  ;;  %v598_v60 = vld [vmem:[%s3649_s2 + $0xa8] sm:$0xff] }
  0x43   :  { %2031 = vmatprep.subr.mxu0 %v614_v61  ;;  %1953 = vmatprep.subr.mxu1 %v67_v62 }
  0x44   :  { %2032 = vmatpush3.msra.mxu0 %v614_v61  ;;  %1925 = vmatprep.mubr.f32.mxu1 %v107_v63  ;;  %v599_v61 = vld [vmem:[%s3649_s2 + $0xb0] sm:$0xff]  ;;  %v55_v63 = vld [vmem:[%s3648_s0 + $0xc0] sm:$0xff] }
  0x45   :  { %1954 = vmatpush3.msra.mxu1 %v67_v62  ;;  %2033 = vmatprep.subr.mxu0 %v613_v0  ;;  %v54_v62 = vld [vmem:[%s3648_s0 + $0xb8] sm:$0xff] }
  0x46   :  { %1901 = vmatprep.mubr.f32.mxu0 %v91_v1  ;;  %1926 = vmatmul.mubr.f32.gmra.mxu1 %v108_v2  ;;  %v601_v1 = vld [vmem:[%s3649_s2 + $0xc0] sm:$0xff]  ;;  %v56_v2 = vld [vmem:[%s3648_s0 + $0xc8] sm:$0xff] }
  0x47   :  { %1955 = vmatprep.subr.mxu1 %v66_v3  ;;  %2034 = vmatpush3.msra.mxu0 %v613_v0  ;;  %v600_v0 = vld [vmem:[%s3649_s2 + $0xb8] sm:$0xff] }
  0x48   :  { %1902 = vmatmul.mubr.f32.gmra.mxu0 %v92_v4  ;;  %1956 = vmatpush3.msra.mxu1 %v66_v3  ;;  %v57_v3 = vld [vmem:[%s3648_s0 + $0xd0] sm:$0xff]  ;;  %v602_v4 = vld [vmem:[%s3649_s2 + $0xc8] sm:$0xff] }
  0x49   :  { %2035 = vmatprep.subr.mxu0 %v612_v5  ;;  %1957 = vmatprep.subr.mxu1 %v65_v6 }
  0x4a   :  { %2036 = vmatpush3.msra.mxu0 %v612_v5  ;;  %1928 = vmatprep.mubr.f32.mxu1 %v109_v7  ;;  %v603_v5 = vld [vmem:[%s3649_s2 + $0xd0] sm:$0xff]  ;;  %v59_v7 = vld [vmem:[%s3648_s0 + $0xe0] sm:$0xff] }
  0x4b   :  { %1958 = vmatpush3.msra.mxu1 %v65_v6  ;;  %2037 = vmatprep.subr.mxu0 %v611_v8  ;;  %v58_v6 = vld [vmem:[%s3648_s0 + $0xd8] sm:$0xff] }
  0x4c   :  { %1904 = vmatprep.mubr.f32.mxu0 %v93_v9  ;;  %1929 = vmatmul.mubr.f32.gmra.mxu1 %v110_v10  ;;  %v605_v9 = vld [vmem:[%s3649_s2 + $0xe0] sm:$0xff]  ;;  %v60_v10 = vld [vmem:[%s3648_s0 + $0xe8] sm:$0xff] }
  0x4d   :  { %1959 = vmatprep.subr.mxu1 %v64_v11  ;;  %2038 = vmatpush3.msra.mxu0 %v611_v8  ;;  %v604_v8 = vld [vmem:[%s3649_s2 + $0xd8] sm:$0xff] }
  0x4e   :  { %1905 = vmatmul.mubr.f32.gmra.mxu0 %v94_v12  ;;  %1960 = vmatpush3.msra.mxu1 %v64_v11  ;;  %v61_v11 = vld [vmem:[%s3648_s0 + $0xf0] sm:$0xff]  ;;  %v606_v12 = vld [vmem:[%s3649_s2 + $0xe8] sm:$0xff] }
  0x4f   :  { %2039 = vmatprep.subr.mxu0 %v610_v13  ;;  %1961 = vmatprep.subr.mxu1 %v63_v14 }
  0x50   :  { %2040 = vmatpush3.msra.mxu0 %v610_v13  ;;  %1962 = vmatpush3.msra.mxu1 %v63_v14  ;;  %v607_v13 = vld [vmem:[%s3649_s2 + $0xf0] sm:$0xff]  ;;  %v62_v14 = vld [vmem:[%s3648_s0 + $0xf8] sm:$0xff] }
  0x51   :  { %1963 = vmatprep.mubr.f32.mxu1 %v31_v15  ;;  %2041 = vmatprep.subr.mxu0 %v609_v16  ;;  %v608_v15 = vld [vmem:[%s3649_s2 + $0xf8] sm:$0xff] }
  0x52   :  { %1964 = vmatmul.mubr.f32.vlgmr.msra.gmra.mxu1 %v32_v17  ;;  %2042 = vmatpush3.msra.mxu0 %v609_v16 }
  0x53   :  { %2043 = vmatprep.mubr.f32.mxu0 %v577_v18  ;;  %1966 = vmatprep.mubr.f32.mxu1 %v33_v19 }
  0x54   :  { %2044 = vmatmul.mubr.f32.vlgmr.msra.gmra.mxu0 %v578_v20 }
  0x55   :  { %2046 = vmatprep.mubr.f32.mxu0 %v579_v21 }
  0x56   :  { %1967 = vmatmul.mubr.f32.gmra.mxu1 %v34_v22 }
  0x57   :  { %1969 = vmatprep.mubr.f32.mxu1 %v35_v23 }
  0x58   :  { %2047 = vmatmul.mubr.f32.gmra.mxu0 %v580_v24 }
  0x59   :  { %2049 = vmatprep.mubr.f32.mxu0 %v581_v25 }
  0x5a   :  { %1970 = vmatmul.mubr.f32.gmra.mxu1 %v36_v26 }
  0x5b   :  { %1972 = vmatprep.mubr.f32.mxu1 %v37_v27 }
  0x5c   :  { %2050 = vmatmul.mubr.f32.gmra.mxu0 %v582_v28 }
  0x5d   :  { %2052 = vmatprep.mubr.f32.mxu0 %v583_v29 }
  0x5e   :  { %1973 = vmatmul.mubr.f32.gmra.mxu1 %v38_v30 }
  0x5f   :  { %1975 = vmatprep.mubr.f32.mxu1 %v39_v31 }
  0x60   :  { %2053 = vmatmul.mubr.f32.gmra.mxu0 %v584_v32 }
  0x61   :  { %2055 = vmatprep.mubr.f32.mxu0 %v585_v33 }
  0x62   :  { %1976 = vmatmul.mubr.f32.gmra.mxu1 %v40_v34 }
  0x63   :  { %1978 = vmatprep.mubr.f32.mxu1 %v41_v35 }
  0x64   :  { %2056 = vmatmul.mubr.f32.gmra.mxu0 %v586_v36 }
  0x65   :  { %2058 = vmatprep.mubr.f32.mxu0 %v587_v37 }
  0x66   :  { %1979 = vmatmul.mubr.f32.gmra.mxu1 %v42_v38 }
  0x67   :  { %1981 = vmatprep.mubr.f32.mxu1 %v43_v39 }
  0x68   :  { %2059 = vmatmul.mubr.f32.gmra.mxu0 %v588_v40 }
  0x69   :  { %2061 = vmatprep.mubr.f32.mxu0 %v589_v41 }
  0x6a   :  { %1982 = vmatmul.mubr.f32.gmra.mxu1 %v44_v42 }
  0x6b   :  { %1984 = vmatprep.mubr.f32.mxu1 %v45_v43 }
  0x6c   :  { %2062 = vmatmul.mubr.f32.gmra.mxu0 %v590_v44 }
  0x6d   :  { %2064 = vmatprep.mubr.f32.mxu0 %v591_v45 }
  0x6e   :  { %1985 = vmatmul.mubr.f32.gmra.mxu1 %v46_v46 }
  0x6f   :  { %1987 = vmatprep.mubr.f32.mxu1 %v47_v47 }
  0x70   :  { %2065 = vmatmul.mubr.f32.gmra.mxu0 %v592_v48 }
  0x71   :  { %2067 = vmatprep.mubr.f32.mxu0 %v593_v49 }
  0x72   :  { %1988 = vmatmul.mubr.f32.gmra.mxu1 %v48_v50 }
  0x73   :  { %1990 = vmatprep.mubr.f32.mxu1 %v49_v51 }
  0x74   :  { %2068 = vmatmul.mubr.f32.gmra.mxu0 %v594_v52 }
  0x75   :  { %2070 = vmatprep.mubr.f32.mxu0 %v595_v53 }
  0x76   :  { %1991 = vmatmul.mubr.f32.gmra.mxu1 %v50_v54 }
  0x77   :  { %1993 = vmatprep.mubr.f32.mxu1 %v51_v55 }
  0x78   :  { %2071 = vmatmul.mubr.f32.gmra.mxu0 %v596_v56 }
  0x79   :  { %2073 = vmatprep.mubr.f32.mxu0 %v597_v57 }
  0x7a   :  { %1994 = vmatmul.mubr.f32.gmra.mxu1 %v52_v58 }
  0x7b   :  { %1996 = vmatprep.mubr.f32.mxu1 %v53_v59 }
  0x7c   :  { %2074 = vmatmul.mubr.f32.gmra.mxu0 %v598_v60 }
  0x7d   :  { %2076 = vmatprep.mubr.f32.mxu0 %v599_v61 }
  0x7e   :  { %1997 = vmatmul.mubr.f32.gmra.mxu1 %v54_v62 }
  0x7f   :  { %1999 = vmatprep.mubr.f32.mxu1 %v55_v63 }
  0x80   :  { %2077 = vmatmul.mubr.f32.gmra.mxu0 %v600_v0 }
  0x81   :  { %2079 = vmatprep.mubr.f32.mxu0 %v601_v1 }
  0x82   :  { %2000 = vmatmul.mubr.f32.gmra.mxu1 %v56_v2 }
  0x83   :  { %2002 = vmatprep.mubr.f32.mxu1 %v57_v3 }
  0x84   :  { %2080 = vmatmul.mubr.f32.gmra.mxu0 %v602_v4 }
  0x85   :  { %2082 = vmatprep.mubr.f32.mxu0 %v603_v5 }
  0x86   :  { %2003 = vmatmul.mubr.f32.gmra.mxu1 %v58_v6 }
  0x87   :  { %2005 = vmatprep.mubr.f32.mxu1 %v59_v7 }
  0x88   :  { %2083 = vmatmul.mubr.f32.gmra.mxu0 %v604_v8 }
  0x89   :  { %2085 = vmatprep.mubr.f32.mxu0 %v605_v9 }
  0x8a   :  { %2006 = vmatmul.mubr.f32.gmra.mxu1 %v60_v10 }
  0x8b   :  { %2008 = vmatprep.mubr.f32.mxu1 %v61_v11 }
  0x8c   :  { %2086 = vmatmul.mubr.f32.gmra.mxu0 %v606_v12 }
  0x8d   :  { %2088 = vmatprep.mubr.f32.mxu0 %v607_v13 }
  0x8e   :  { %2009 = vmatmul.mubr.f32.gmra.mxu1 %v62_v14 }
  0x90   :  { %2089 = vmatmul.mubr.f32.gmra.mxu0 %v608_v15 }
  0xe3   :  { %v2797_v16 = vpop.f32.mrf.mxu1 }
  0xe4   :  { %v1885_v17 = vpop.f32.mrf.mxu0 }
  0xe5   :  { %v2799_v18 = vpop.f32.mrf.mxu1 }
  0xe6   :  { %v193_v19 = vpop.f32.mrf.mxu0 }
  0xe8   :  { %v2801_v20 = vpop.f32.mrf.mxu1 }
  0xea   :  { %v1888_v21 = vpop.f32.mrf.mxu0  ;;  %v2803_v22 = vpop.f32.mrf.mxu1 }
  0xec   :  { %v203_v23 = vpop.f32.mrf.mxu0 }
  0xee   :  { %v2805_v24 = vpop.f32.mrf.mxu1 }
  0xf0   :  { %v1891_v25 = vpop.f32.mrf.mxu0  ;;  %v2807_v26 = vpop.f32.mrf.mxu1 }
  0xf2   :  { %v213_v27 = vpop.f32.mrf.mxu0 }
  0xf4   :  { %v2809_v28 = vpop.f32.mrf.mxu1 }
  0xf6   :  { %v1894_v29 = vpop.f32.mrf.mxu0  ;;  %v2811_v30 = vpop.f32.mrf.mxu1 }
  0xf8   :  { %v223_v31 = vpop.f32.mrf.mxu0 }
  0xfa   :  { %v2813_v32 = vpop.f32.mrf.mxu1 }
  0xfc   :  { %v1897_v33 = vpop.f32.mrf.mxu0  ;;  %v2815_v34 = vpop.f32.mrf.mxu1 }
  0xfe   :  { %v2817_v35 = vpop.f32.mrf.mxu0 }
 0x100   :  { %v2819_v36 = vpop.f32.mrf.mxu1 }
 0x102   :  { %v2821_v37 = vpop.f32.mrf.mxu0  ;;  %v2823_v38 = vpop.f32.mrf.mxu1 }
 0x104   :  { %v2825_v39 = vpop.f32.mrf.mxu0 }
 0x106   :  { %v2827_v40 = vpop.f32.mrf.mxu1 }
 0x108   :  { %v2829_v41 = vpop.f32.mrf.mxu0  ;;  %v2831_v42 = vpop.f32.mrf.mxu1 }
 0x10a   :  { %v2833_v43 = vpop.f32.mrf.mxu0 }
 0x10c   :  { %v2835_v44 = vpop.f32.mrf.mxu1 }
 0x10e   :  { %v2837_v45 = vpop.f32.mrf.mxu0  ;;  %v2839_v46 = vpop.f32.mrf.mxu1 }
 0x110   :  { %v2841_v47 = vpop.f32.mrf.mxu0 }
 0x112   :  { %v1965_v48 = vpop.f32.mrf.mxu1 }
 0x113   :  { %v424_v49 = vadd.f32 %v1965_v48, %v1885_v17 }
 0x114   :  { %v2045_v50 = vpop.f32.mrf.mxu0  ;;  %v418_v51 = vpop.f32.mrf.mxu1 }
 0x115   :  { %v2843_v52 = vadd.f32 %v2045_v50, %v424_v49  ;;  %v419_v53 = vadd.f32 %v418_v51, %v193_v19 }
 0x116   :  { %v691_v54 = vpop.f32.mrf.mxu0  ;;  %v1968_v55 = vpop.f32.mrf.mxu1 }
 0x117   :  { %v1674_v56 = vmul.f32 -1.442695, %v2843_v52  ;;  %v2846_v57 = vadd.f32 %v691_v54, %v419_v53  ;;  %v434_v58 = vadd.f32 %v1968_v55, %v1888_v21 }
 0x118   :  { %v2048_v59 = vpop.f32.mrf.mxu0  ;;  %v428_v60 = vpop.f32.mrf.mxu1 }
 0x119   :  { %2123 = vpow2.f32 %v1674_v56  ;;  %v1673_v61 = vmul.f32 -1.442695, %v2846_v57  ;;  %v2849_v62 = vadd.f32 %v2048_v59, %v434_v58  ;;  %v429_v63 = vadd.f32 %v428_v60, %v203_v23 }
 0x11a   :  { %v701_v0 = vpop.f32.mrf.mxu0  ;;  %v1971_v1 = vpop.f32.mrf.mxu1 }
 0x11b   :  { %2125 = vpow2.f32 %v1673_v61  ;;  %v1676_v2 = vmul.f32 -1.442695, %v2849_v62  ;;  %v2852_v3 = vadd.f32 %v701_v0, %v429_v63  ;;  %v444_v4 = vadd.f32 %v1971_v1, %v1891_v25 }
 0x11c   :  { %v438_v5 = vpop.f32.mrf.mxu1  ;;  %v2051_v6 = vpop.f32.mrf.mxu0 }
 0x11d   :  { %2127 = vpow2.f32 %v1676_v2  ;;  %v1675_v7 = vmul.f32 -1.442695, %v2852_v3  ;;  %v439_v8 = vadd.f32 %v438_v5, %v213_v27  ;;  %v2855_v9 = vadd.f32 %v2051_v6, %v444_v4 }
 0x11e   :  { %v1974_v10 = vpop.f32.mrf.mxu1  ;;  %v711_v11 = vpop.f32.mrf.mxu0 }
 0x11f   :  { %2129 = vpow2.f32 %v1675_v7  ;;  %v1678_v12 = vmul.f32 -1.442695, %v2855_v9  ;;  %v454_v13 = vadd.f32 %v1974_v10, %v1894_v29  ;;  %v2858_v14 = vadd.f32 %v711_v11, %v439_v8 }
 0x120   :  { %v448_v15 = vpop.f32.mrf.mxu1  ;;  %v2054_v17 = vpop.f32.mrf.mxu0 }
 0x121   :  { %2131 = vpow2.f32 %v1678_v12  ;;  %v1677_v19 = vmul.f32 -1.442695, %v2858_v14  ;;  %v449_v21 = vadd.f32 %v448_v15, %v223_v31  ;;  %v2861_v23 = vadd.f32 %v2054_v17, %v454_v13 }
 0x122   :  { %v1977_v25 = vpop.f32.mrf.mxu1  ;;  %v721_v27 = vpop.f32.mrf.mxu0 }
 0x123   :  { %2133 = vpow2.f32 %v1677_v19  ;;  %v1680_v48 = vmul.f32 -1.442695, %v2861_v23  ;;  %v464_v49 = vadd.f32 %v1977_v25, %v1897_v33  ;;  %v2864_v50 = vadd.f32 %v721_v27, %v449_v21 }
 0x124   :  { %v458_v51 = vpop.f32.mrf.mxu1  ;;  %v2057_v29 = vpop.f32.mrf.mxu0 }
 0x125   :  { %2135 = vpow2.f32 %v1680_v48  ;;  %v1679_v53 = vmul.f32 -1.442695, %v2864_v50  ;;  %v459_v54 = vadd.f32 %v458_v51, %v2817_v35  ;;  %v2868_v55 = vadd.f32 %v2057_v29, %v464_v49 }
 0x126   :  { %v2124_v31 = vpop.eup %2123  ;;  %v1980_v56 = vpop.f32.mrf.mxu1 }
 0x127   :  { %v731_v58 = vpop.f32.mrf.mxu0  ;;  %v979_v59 = vadd.f32 1.0, %v2124_v31  ;;  %2137 = vpow2.f32 %v1679_v53  ;;  %v1682_v60 = vmul.f32 -1.442695, %v2868_v55  ;;  %v474_v33 = vadd.f32 %v1980_v56, %v2821_v37 }
 0x128   :  { %v2126_v61 = vpop.eup %2125  ;;  %v2872_v63 = vadd.f32 %v731_v58, %v459_v54  ;;  %v468_v0 = vpop.f32.mrf.mxu1 }
 0x129   :  { %v2060_v1 = vpop.f32.mrf.mxu0  ;;  %2139 = vrcp.f32 %v979_v59  ;;  %v978_v2 = vadd.f32 1.0, %v2126_v61  ;;  %v469_v35 = vadd.f32 %v468_v0, %v2825_v39 }
 0x12a   :  { %v2875_v4 = vadd.f32 %v2060_v1, %v474_v33  ;;  %v2128_v5 = vpop.eup %2127  ;;  %2141 = vpow2.f32 %v1682_v60  ;;  %v1681_v6 = vmul.f32 -1.442695, %v2872_v63  ;;  %v1983_v7 = vpop.f32.mrf.mxu1 }
 0x12b   :  { %v741_v8 = vpop.f32.mrf.mxu0  ;;  %2143 = vrcp.f32 %v978_v2  ;;  %v981_v10 = vadd.f32 1.0, %v2128_v5  ;;  %v484_v11 = vadd.f32 %v1983_v7, %v2829_v41 }
 0x12c   :  { %v1684_v37 = vmul.f32 -1.442695, %v2875_v4  ;;  %v2130_v12 = vpop.eup %2129  ;;  %2145 = vpow2.f32 %v1681_v6  ;;  %v2880_v13 = vadd.f32 %v741_v8, %v469_v35  ;;  %v478_v15 = vpop.f32.mrf.mxu1 }
 0x12d   :  { %v2063_v39 = vpop.f32.mrf.mxu0  ;;  %2147 = vrcp.f32 %v981_v10  ;;  %v980_v17 = vadd.f32 1.0, %v2130_v12  ;;  %v479_v19 = vadd.f32 %v478_v15, %v2833_v43 }
 0x12e   :  { %v2883_v21 = vadd.f32 %v2063_v39, %v484_v11  ;;  %v2132_v25 = vpop.eup %2131  ;;  %2149 = vpow2.f32 %v1684_v37  ;;  %v1683_v27 = vmul.f32 -1.442695, %v2880_v13  ;;  %v1986_v48 = vpop.f32.mrf.mxu1 }
 0x12f   :  { %v751_v49 = vpop.f32.mrf.mxu0  ;;  %2151 = vrcp.f32 %v980_v17  ;;  %v983_v41 = vadd.f32 1.0, %v2132_v25  ;;  %v494_v29 = vadd.f32 %v1986_v48, %v2837_v45 }
 0x130   :  { %v1686_v51 = vmul.f32 -1.442695, %v2883_v21  ;;  %v2134_v53 = vpop.eup %2133  ;;  %2153 = vpow2.f32 %v1683_v27  ;;  %v2888_v54 = vadd.f32 %v751_v49, %v479_v19  ;;  %v488_v31 = vpop.f32.mrf.mxu1 }
 0x131   :  { %v2066_v43 = vpop.f32.mrf.mxu0  ;;  %2155 = vrcp.f32 %v983_v41  ;;  %v982_v56 = vadd.f32 1.0, %v2134_v53  ;;  %v489_v58 = vadd.f32 %v488_v31, %v2841_v47 }
 0x132   :  { %v2891_v59 = vadd.f32 %v2066_v43, %v494_v29  ;;  %v2136_v60 = vpop.eup %2135  ;;  %2157 = vpow2.f32 %v1686_v51  ;;  %v1685_v33 = vmul.f32 -1.442695, %v2888_v54  ;;  %v1989_v61 = vpop.f32.mrf.mxu1 }
 0x133   :  { %v761_v0 = vpop.f32.mrf.mxu0  ;;  %2159 = vrcp.f32 %v982_v56  ;;  %v985_v45 = vadd.f32 1.0, %v2136_v60  ;;  %v504_v2 = vadd.f32 %v1989_v61, %v2797_v16 }
 0x134   :  { %v1688_v1 = vmul.f32 -1.442695, %v2891_v59  ;;  %v2138_v35 = vpop.eup %2137  ;;  %2161 = vpow2.f32 %v1685_v33  ;;  %v2896_v5 = vadd.f32 %v761_v0, %v489_v58  ;;  %v498_v6 = vpop.f32.mrf.mxu1 }
 0x135   :  { %v2069_v47 = vpop.f32.mrf.mxu0  ;;  %2163 = vrcp.f32 %v985_v45  ;;  %v984_v7 = vadd.f32 1.0, %v2138_v35  ;;  %v499_v8 = vadd.f32 %v498_v6, %v2799_v18 }
 0x136   :  { %v2899_v10 = vadd.f32 %v2069_v47, %v504_v2  ;;  %v2140_v37 = vpop.eup %2139  ;;  %2165 = vpow2.f32 %v1688_v1  ;;  %v1687_v11 = vmul.f32 -1.442695, %v2896_v5  ;;  %v1992_v12 = vpop.f32.mrf.mxu1 }
 0x137   :  { %v771_v15 = vpop.f32.mrf.mxu0  ;;  %v2142_v39 = vpop.eup %2141  ;;  %2167 = vrcp.f32 %v984_v7  ;;  %v514_v17 = vadd.f32 %v1992_v12, %v2801_v20  ;;  %v2907_v49 = vmul.f32 %v2140_v37, %v2843_v52 }
 0x138   :  { %v1690_v16 = vmul.f32 -1.442695, %v2899_v10  ;;  %v2904_v19 = vadd.f32 %v771_v15, %v499_v8  ;;  %v2144_v25 = vpop.eup %2143  ;;  %v987_v27 = vadd.f32 1.0, %v2142_v39  ;;  %2169 = vpow2.f32 %v1687_v11  ;;  %v508_v18 = vpop.f32.mrf.mxu1 }
 0x139   :  { %v2072_v48 = vpop.f32.mrf.mxu0  ;;  %v2146_v41 = vpop.eup %2145  ;;  %v509_v29 = vadd.f32 %v508_v18, %v2803_v22  ;;  %1110 = vadd.xlane.f32.xlu0 %v2907_v49  ;;  %v2922_v2 = vmul.f32 %v2144_v25, %v2846_v57 }
 0x13a   :  { %2171 = vpow2.f32 %v1690_v16  ;;  %v1689_v51 = vmul.f32 -1.442695, %v2904_v19  ;;  %v2911_v53 = vadd.f32 %v2072_v48, %v514_v17  ;;  %v2148_v31 = vpop.eup %2147  ;;  %v986_v20 = vadd.f32 1.0, %v2146_v41  ;;  %v1995_v43 = vpop.f32.mrf.mxu1 }
 0x13b   :  { %2173 = vrcp.f32 %v987_v27  ;;  %v781_v56 = vpop.f32.mrf.mxu0  ;;  %v2150_v58 = vpop.eup %2149  ;;  %v524_v60 = vadd.f32 %v1995_v43, %v2805_v24  ;;  %v2919_v1 = vmul.f32 %v2148_v31, %v2849_v62 }
 0x13c   :  { %2175 = vpow2.f32 %v1689_v51  ;;  %v1692_v52 = vmul.f32 -1.442695, %v2911_v53  ;;  %v2916_v33 = vadd.f32 %v781_v56, %v509_v29  ;;  %v2152_v61 = vpop.eup %2151  ;;  %v989_v22 = vadd.f32 1.0, %v2150_v58  ;;  %v518_v0 = vpop.f32.mrf.mxu1 }
 0x13d   :  { %2177 = vrcp.f32 %v986_v20  ;;  %v2075_v45 = vpop.f32.mrf.mxu0  ;;  %v2154_v35 = vpop.eup %2153  ;;  %v519_v47 = vadd.f32 %v518_v0, %v2807_v26  ;;  %1114 = vadd.xlane.f32.xlu1 %v2919_v1  ;;  %1108 = vadd.xlane.f32.xlu0 %v2922_v2  ;;  %v2935_v25 = vmul.f32 %v2152_v61, %v2852_v3 }
 0x13e   :  { %2179 = vpow2.f32 %v1692_v52  ;;  %v1691_v6 = vmul.f32 -1.442695, %v2916_v33  ;;  %v2926_v24 = vadd.f32 %v2075_v45, %v524_v60  ;;  %v2156_v7 = vpop.eup %2155  ;;  %v988_v8 = vadd.f32 1.0, %v2154_v35  ;;  %v1998_v62 = vpop.f32.mrf.mxu1 }
 0x13f   :  { %2181 = vrcp.f32 %v989_v22  ;;  %v791_v37 = vpop.f32.mrf.mxu0  ;;  %v2158_v11 = vpop.eup %2157  ;;  %v534_v12 = vadd.f32 %v1998_v62, %v2809_v28  ;;  %v2951_v22 = vmul.f32 %v2156_v7, %v2855_v9 }
 0x140   :  { %2183 = vpow2.f32 %v1691_v6  ;;  %v1694_v57 = vmul.f32 -1.442695, %v2926_v24  ;;  %v2932_v15 = vadd.f32 %v791_v37, %v519_v47  ;;  %v2160_v26 = vpop.eup %2159  ;;  %v991_v39 = vadd.f32 1.0, %v2158_v11  ;;  %v528_v16 = vpop.f32.mrf.mxu1 }
 0x141   :  { %2185 = vrcp.f32 %v988_v8  ;;  %v2078_v17 = vpop.f32.mrf.mxu0  ;;  %v2162_v27 = vpop.eup %2161  ;;  %v529_v48 = vadd.f32 %v528_v16, %v2811_v30  ;;  %1112 = vadd.xlane.f32.xlu1 %v2935_v25  ;;  %v2943_v20 = vmul.f32 %v2160_v26, %v2858_v14 }
 0x142   :  { %2187 = vpow2.f32 %v1694_v57  ;;  %v1693_v18 = vmul.f32 -1.442695, %v2932_v15  ;;  %v2939_v41 = vadd.f32 %v2078_v17, %v534_v12  ;;  %v2164_v51 = vpop.eup %2163  ;;  %v990_v28 = vadd.f32 1.0, %v2162_v27  ;;  %v2001_v29 = vpop.f32.mrf.mxu1 }
 0x143   :  { %2189 = vrcp.f32 %v991_v39  ;;  %v801_v31 = vpop.f32.mrf.mxu0  ;;  %v2166_v3 = vpop.eup %2165  ;;  %v544_v56 = vadd.f32 %v2001_v29, %v2813_v32  ;;  %1116 = vadd.xlane.f32.xlu0 %v2943_v20  ;;  %v2967_v39 = vmul.f32 %v2164_v51, %v2861_v23 }
 0x144   :  { %2191 = vpow2.f32 %v1693_v18  ;;  %v1696_v43 = vmul.f32 -1.442695, %v2939_v41  ;;  %v2947_v58 = vadd.f32 %v801_v31, %v529_v48  ;;  %v2168_v30 = vpop.eup %2167  ;;  %v993_v52 = vadd.f32 1.0, %v2166_v3  ;;  %v538_v60 = vpop.f32.mrf.mxu1 }
 0x145   :  { %2193 = vrcp.f32 %v990_v28  ;;  %v2081_v61 = vpop.f32.mrf.mxu0  ;;  %v2170_v14 = vpop.eup %2169  ;;  %v539_v45 = vadd.f32 %v538_v60, %v2815_v34  ;;  %1118 = vadd.xlane.f32.xlu1 %v2951_v22  ;;  %v2959_v62 = vmul.f32 %v2168_v30, %v2864_v50 }
 0x146   :  { %2195 = vpow2.f32 %v1696_v43  ;;  %v1695_v0 = vmul.f32 -1.442695, %v2947_v58  ;;  %v2955_v35 = vadd.f32 %v2081_v61, %v544_v56  ;;  %v992_v6 = vadd.f32 1.0, %v2170_v14  ;;  %v2004_v47 = vpop.f32.mrf.mxu1 }
 0x147   :  { %v2172_v32 = vpop.eup %2171  ;;  %2197 = vrcp.f32 %v993_v52  ;;  %v811_v8 = vpop.f32.mrf.mxu0  ;;  %v554_v11 = vadd.f32 %v2004_v47, %v2819_v36  ;;  %1120 = vadd.xlane.f32.xlu0 %v2959_v62 }
 0x148   :  { %v2174_v9 = vpop.eup %2173  ;;  %v995_v7 = vadd.f32 1.0, %v2172_v32  ;;  %2199 = vpow2.f32 %v1695_v0  ;;  %v1698_v37 = vmul.f32 -1.442695, %v2955_v35  ;;  %v2963_v57 = vadd.f32 %v811_v8, %v539_v45  ;;  %v548_v12 = vpop.f32.mrf.mxu1 }
 0x149   :  { %v2176_v34 = vpop.eup %2175  ;;  %2201 = vrcp.f32 %v992_v6  ;;  %v2084_v26 = vpop.f32.mrf.mxu0  ;;  %v549_v17 = vadd.f32 %v548_v12, %v2823_v38  ;;  %1122 = vadd.xlane.f32.xlu1 %v2967_v39  ;;  %v2983_v52 = vmul.f32 %v2174_v9, %v2868_v55 }
 0x14a   :  { %v2178_v50 = vpop.eup %2177  ;;  %2203 = vrcp.f32 %v995_v7  ;;  %v994_v16 = vadd.f32 1.0, %v2176_v34  ;;  %v2970_v27 = vadd.f32 %v2084_v26, %v554_v11  ;;  %v1697_v36 = vmul.f32 -1.442695, %v2963_v57  ;;  %v2007_v48 = vpop.f32.mrf.mxu1 }
 0x14b   :  { %v2180_v18 = vpop.eup %2179  ;;  %2205 = vpow2.f32 %v1698_v37  ;;  %v821_v28 = vpop.f32.mrf.mxu0  ;;  %v2975_v29 = vmul.f32 %v2178_v50, %v2872_v63  ;;  %v564_v38 = vadd.f32 %v2007_v48, %v2827_v40 }
 0x14c   :  { %v2182_v23 = vpop.eup %2181  ;;  %2207 = vrcp.f32 %v994_v16  ;;  %v997_v51 = vadd.f32 1.0, %v2180_v18  ;;  %v1700_v31 = vmul.f32 -1.442695, %v2970_v27  ;;  %v2979_v43 = vadd.f32 %v821_v28, %v549_v17  ;;  %v558_v56 = vpop.f32.mrf.mxu1 }
 0x14d   :  { %v2184_v3 = vpop.eup %2183  ;;  %2209 = vpow2.f32 %v1697_v36  ;;  %1124 = vadd.xlane.f32.xlu0 %v2975_v29  ;;  %v2087_v30 = vpop.f32.mrf.mxu0  ;;  %v559_v61 = vadd.f32 %v558_v56, %v2831_v42  ;;  %1126 = vadd.xlane.f32.xlu1 %v2983_v52  ;;  %v2999_v34 = vmul.f32 %v2182_v23, %v2875_v4 }
 0x14e   :  { %v2186_v63 = vpop.eup %2185  ;;  %2211 = vrcp.f32 %v997_v51  ;;  %v996_v60 = vadd.f32 1.0, %v2184_v3  ;;  %v2986_v14 = vadd.f32 %v2087_v30, %v564_v38  ;;  %v1699_v40 = vmul.f32 -1.442695, %v2979_v43  ;;  %v2010_v45 = vpop.f32.mrf.mxu1 }
 0x14f   :  { %v2188_v0 = vpop.eup %2187  ;;  %2213 = vpow2.f32 %v1700_v31  ;;  %v831_v32 = vpop.f32.mrf.mxu0  ;;  %v2991_v6 = vmul.f32 %v2186_v63, %v2880_v13  ;;  %v574_v42 = vadd.f32 %v2010_v45, %v2835_v44 }
 0x150   :  { %v2190_v55 = vpop.eup %2189  ;;  %2215 = vrcp.f32 %v996_v60  ;;  %v999_v47 = vadd.f32 1.0, %v2188_v0  ;;  %v1702_v8 = vmul.f32 -1.442695, %v2986_v14  ;;  %v2995_v7 = vadd.f32 %v831_v32, %v559_v61  ;;  %v568_v37 = vpop.f32.mrf.mxu1 }
 0x151   :  { %v2192_v9 = vpop.eup %2191  ;;  %2217 = vpow2.f32 %v1699_v40  ;;  %1128 = vadd.xlane.f32.xlu0 %v2991_v6  ;;  %v2090_v11 = vpop.f32.mrf.mxu0  ;;  %v569_v26 = vadd.f32 %v568_v37, %v2839_v46  ;;  %1130 = vadd.xlane.f32.xlu1 %v2999_v34  ;;  %v3014_v23 = vmul.f32 %v2190_v55, %v2883_v21 }
 0x152   :  { %v2194_v13 = vpop.eup %2193  ;;  %2219 = vrcp.f32 %v999_v47  ;;  %v998_v12 = vadd.f32 1.0, %v2192_v9  ;;  %v3002_v50 = vadd.f32 %v2090_v11, %v574_v42  ;;  %v1701_v44 = vmul.f32 -1.442695, %v2995_v7 }
 0x153   :  { %v2196_v16 = vpop.eup %2195  ;;  %2221 = vpow2.f32 %v1702_v8  ;;  %v841_v17 = vpop.f32.mrf.mxu0  ;;  %v3007_v18 = vmul.f32 %v2194_v13, %v2888_v54 }
 0x154   :  { %v2198_v36 = vpop.eup %2197  ;;  %2223 = vrcp.f32 %v998_v12  ;;  %v1001_v4 = vadd.f32 1.0, %v2196_v16  ;;  %v1704_v48 = vmul.f32 -1.442695, %v3002_v50  ;;  %v3010_v28 = vadd.f32 %v841_v17, %v569_v26 }
 0x155   :  { %v2200_v46 = vpop.eup %2199  ;;  %2225 = vpow2.f32 %v1701_v44  ;;  %1132 = vadd.xlane.f32.xlu0 %v3007_v18  ;;  %1134 = vadd.xlane.f32.xlu1 %v3014_v23  ;;  %v3023_v21 = vmul.f32 %v2198_v36, %v2891_v59 }
 0x156   :  { %v2202_v51 = vpop.eup %2201  ;;  %2227 = vrcp.f32 %v1001_v4  ;;  %v1000_v31 = vadd.f32 1.0, %v2200_v46  ;;  %v1703_v54 = vmul.f32 -1.442695, %v3010_v28 }
 0x157   :  { %v2204_v38 = vpop.eup %2203  ;;  %2229 = vpow2.f32 %v1704_v48  ;;  %v3019_v3 = vmul.f32 %v2202_v51, %v2896_v5 }
 0x158   :  { %v2206_v56 = vpop.eup %2205  ;;  %2231 = vrcp.f32 %v1000_v31  ;;  %v3031_v55 = vmul.f32 %v2204_v38, %v2899_v10 }
 0x159   :  { %v2208_v30 = vpop.eup %2207  ;;  %v1003_v63 = vadd.f32 1.0, %v2206_v56  ;;  %2233 = vpow2.f32 %v1703_v54  ;;  %1136 = vadd.xlane.f32.xlu0 %v3019_v3  ;;  %1138 = vadd.xlane.f32.xlu1 %v3023_v21 }
 0x15a   :  { %v2210_v60 = vpop.eup %2209  ;;  %v3026_v61 = vmul.f32 %v2208_v30, %v2904_v19 }
 0x15b   :  { %v2212_v0 = vpop.eup %2211  ;;  %v1002_v40 = vadd.f32 1.0, %v2210_v60  ;;  %2235 = vrcp.f32 %v1003_v63 }
 0x15c   :  { %v2214_v5 = vpop.eup %2213  ;;  %v3039_v11 = vmul.f32 %v2212_v0, %v2911_v53 }
 0x15d   :  { %v2216_v45 = vpop.eup %2215  ;;  %2237 = vrcp.f32 %v1002_v40  ;;  %v1005_v32 = vadd.f32 1.0, %v2214_v5  ;;  %1140 = vadd.xlane.f32.xlu0 %v3026_v61  ;;  %1142 = vadd.xlane.f32.xlu1 %v3031_v55 }
 0x15e   :  { %v2218_v59 = vpop.eup %2217  ;;  %v3034_v47 = vmul.f32 %v2216_v45, %v2916_v33 }
 0x15f   :  { %v2220_v19 = vpop.eup %2219  ;;  %v1004_v8 = vadd.f32 1.0, %v2218_v59  ;;  %2239 = vrcp.f32 %v1005_v32 }
 0x160   :  { %v2222_v42 = vpop.eup %2221  ;;  %v3047_v17 = vmul.f32 %v2220_v19, %v2926_v24 }
 0x161   :  { %v2224_v9 = vpop.eup %2223  ;;  %2241 = vrcp.f32 %v1004_v8  ;;  %v1007_v37 = vadd.f32 1.0, %v2222_v42  ;;  %1144 = vadd.xlane.f32.xlu0 %v3034_v47  ;;  %1146 = vadd.xlane.f32.xlu1 %v3039_v11 }
 0x162   :  { %v2226_v10 = vpop.eup %2225  ;;  %v3042_v13 = vmul.f32 %v2224_v9, %v2932_v15 }
 0x163   :  { %v2228_v33 = vpop.eup %2227  ;;  %v1006_v12 = vadd.f32 1.0, %v2226_v10  ;;  %2243 = vrcp.f32 %v1007_v37 }
 0x164   :  { %v2230_v26 = vpop.eup %2229  ;;  %v3055_v48 = vmul.f32 %v2228_v33, %v2939_v41 }
 0x165   :  { %v2232_v16 = vpop.eup %2231  ;;  %2245 = vrcp.f32 %v1006_v12  ;;  %v1009_v44 = vadd.f32 1.0, %v2230_v26  ;;  %1148 = vadd.xlane.f32.xlu0 %v3042_v13  ;;  %1150 = vadd.xlane.f32.xlu1 %v3047_v17 }
 0x166   :  { %v2234_v53 = vpop.eup %2233  ;;  %v3050_v36 = vmul.f32 %v2232_v16, %v2947_v58 }
 0x167   :  { %v1008_v15 = vadd.f32 1.0, %v2234_v53  ;;  %2247 = vrcp.f32 %v1009_v44 }
 0x168   :  { %v2236_v4 = vpop.eup %2235 }
 0x169   :  { %2249 = vrcp.f32 %v1008_v15  ;;  %1152 = vadd.xlane.f32.xlu0 %v3050_v36  ;;  %1154 = vadd.xlane.f32.xlu1 %v3055_v48  ;;  %v3063_v58 = vmul.f32 %v2236_v4, %v2955_v35 }
 0x16a   :  { %v2238_v46 = vpop.eup %2237 }
 0x16b   :  { %v3059_v24 = vmul.f32 %v2238_v46, %v2963_v57 }
 0x16c   :  { %v2240_v51 = vpop.eup %2239 }
 0x16d   :  { %1156 = vadd.xlane.f32.xlu0 %v3059_v24  ;;  %1158 = vadd.xlane.f32.xlu1 %v3063_v58  ;;  %v3071_v38 = vmul.f32 %v2240_v51, %v2970_v27 }
 0x16e   :  { %v2242_v31 = vpop.eup %2241 }
 0x16f   :  { %v3067_v54 = vmul.f32 %v2242_v31, %v2979_v43 }
 0x170   :  { %v2244_v41 = vpop.eup %2243 }
 0x171   :  { %1160 = vadd.xlane.f32.xlu0 %v3067_v54  ;;  %1162 = vadd.xlane.f32.xlu1 %v3071_v38  ;;  %v3079_v30 = vmul.f32 %v2244_v41, %v2986_v14 }
 0x172   :  { %v2246_v57 = vpop.eup %2245 }
 0x173   :  { %v3075_v56 = vmul.f32 %v2246_v57, %v2995_v7 }
 0x174   :  { %v2248_v35 = vpop.eup %2247 }
 0x175   :  { %1164 = vadd.xlane.f32.xlu0 %v3075_v56  ;;  %1166 = vadd.xlane.f32.xlu1 %v3079_v30  ;;  %v3087_v27 = vmul.f32 %v2248_v35, %v3002_v50 }
 0x176   :  { %v2250_v43 = vpop.eup %2249 }
 0x177   :  { %v3083_v63 = vmul.f32 %v2250_v43, %v3010_v28 }
 0x179   :  { %1168 = vadd.xlane.f32.xlu0 %v3083_v63  ;;  %1170 = vadd.xlane.f32.xlu1 %v3087_v27 }
 0x1c2   :  { %v1111_v7 = vpop.xlane.xlu0 %1110 }
 0x1c3   :  { %v1174_v60 = vmul.f32 0.0078125, %v1111_v7 }
 0x1c5   :  { %v3091_v0 = vsub.f32 %v2907_v49, %v1174_v60 }
 0x1c6   :  { %v1115_v14 = vpop.xlane.xlu1 %1114  ;;  %v1109_v40 = vpop.xlane.xlu0 %1108 }
 0x1c7   :  { %v1176_v5 = vmul.f32 0.0078125, %v1115_v14  ;;  %v1173_v45 = vmul.f32 0.0078125, %v1109_v40  ;;  %v1238_v28 = vmul.f32 %v3091_v0, %v3091_v0 }
 0x1c9   :  { %v3096_v32 = vsub.f32 %v2919_v1, %v1176_v5  ;;  %v3099_v50 = vsub.f32 %v2922_v2, %v1173_v45  ;;  %1271 = vadd.xlane.f32.xlu1 %v1238_v28 }
 0x1ca   :  { %v1113_v59 = vpop.xlane.xlu1 %1112 }
 0x1cb   :  { %v1175_v19 = vmul.f32 0.0078125, %v1113_v59  ;;  %v1240_v49 = vmul.f32 %v3096_v32, %v3096_v32  ;;  %v1237_v8 = vmul.f32 %v3099_v50, %v3099_v50 }
 0x1cc   :  { %v1117_v42 = vpop.xlane.xlu0 %1116 }
 0x1cd   :  { %v3106_v9 = vsub.f32 %v2935_v25, %v1175_v19  ;;  %v1177_v37 = vmul.f32 0.0078125, %v1117_v42  ;;  %1275 = vadd.xlane.f32.xlu1 %v1240_v49  ;;  %1269 = vadd.xlane.f32.xlu0 %v1237_v8 }
 0x1ce   :  { %v1119_v1 = vpop.xlane.xlu1 %1118 }
 0x1cf   :  { %v3109_v2 = vsub.f32 %v2943_v20, %v1177_v37  ;;  %v1178_v10 = vmul.f32 0.0078125, %v1119_v1  ;;  %v1239_v33 = vmul.f32 %v3106_v9, %v3106_v9 }
 0x1d0   :  { %v1121_v12 = vpop.xlane.xlu0 %1120 }
 0x1d1   :  { %v3114_v26 = vsub.f32 %v2951_v22, %v1178_v10  ;;  %v1179_v16 = vmul.f32 0.0078125, %v1121_v12  ;;  %1273 = vadd.xlane.f32.xlu0 %v1239_v33  ;;  %v1241_v20 = vmul.f32 %v3109_v2, %v3109_v2 }
 0x1d2   :  { %v1123_v44 = vpop.xlane.xlu1 %1122 }
 0x1d3   :  { %v3117_v25 = vsub.f32 %v2959_v62, %v1179_v16  ;;  %v1180_v53 = vmul.f32 0.0078125, %v1123_v44  ;;  %v1242_v15 = vmul.f32 %v3114_v26, %v3114_v26 }
 0x1d5   :  { %v3124_v46 = vsub.f32 %v2967_v39, %v1180_v53  ;;  %1279 = vadd.xlane.f32.xlu1 %v1242_v15  ;;  %1277 = vadd.xlane.f32.xlu0 %v1241_v20  ;;  %v1243_v57 = vmul.f32 %v3117_v25, %v3117_v25 }
 0x1d6   :  { %v1125_v4 = vpop.xlane.xlu0 %1124  ;;  %v1127_v22 = vpop.xlane.xlu1 %1126 }
 0x1d7   :  { %v1181_v51 = vmul.f32 0.0078125, %v1125_v4  ;;  %v1182_v62 = vmul.f32 0.0078125, %v1127_v22  ;;  %v1244_v41 = vmul.f32 %v3124_v46, %v3124_v46 }
 0x1d9   :  { %v3127_v31 = vsub.f32 %v2975_v29, %v1181_v51  ;;  %v3134_v43 = vsub.f32 %v2983_v52, %v1182_v62  ;;  %1283 = vadd.xlane.f32.xlu1 %v1244_v41  ;;  %1281 = vadd.xlane.f32.xlu0 %v1243_v57 }
 0x1da   :  { %v1129_v35 = vpop.xlane.xlu0 %1128  ;;  %v1131_v7 = vpop.xlane.xlu1 %1130 }
 0x1db   :  { %v1183_v39 = vmul.f32 0.0078125, %v1129_v35  ;;  %v1184_v29 = vmul.f32 0.0078125, %v1131_v7  ;;  %v1246_v14 = vmul.f32 %v3134_v43, %v3134_v43  ;;  %v1245_v40 = vmul.f32 %v3127_v31, %v3127_v31 }
 0x1dd   :  { %v3137_v60 = vsub.f32 %v2991_v6, %v1183_v39  ;;  %v3144_v45 = vsub.f32 %v2999_v34, %v1184_v29  ;;  %1287 = vadd.xlane.f32.xlu1 %v1246_v14  ;;  %1285 = vadd.xlane.f32.xlu0 %v1245_v40 }
 0x1de   :  { %v1133_v5 = vpop.xlane.xlu0 %1132  ;;  %v1135_v28 = vpop.xlane.xlu1 %1134 }
 0x1df   :  { %v1185_v52 = vmul.f32 0.0078125, %v1133_v5  ;;  %v1186_v6 = vmul.f32 0.0078125, %v1135_v28  ;;  %v1248_v19 = vmul.f32 %v3144_v45, %v3144_v45  ;;  %v1247_v49 = vmul.f32 %v3137_v60, %v3137_v60 }
 0x1e1   :  { %v3147_v59 = vsub.f32 %v3007_v18, %v1185_v52  ;;  %v3154_v42 = vsub.f32 %v3014_v23, %v1186_v6  ;;  %1291 = vadd.xlane.f32.xlu1 %v1248_v19  ;;  %1289 = vadd.xlane.f32.xlu0 %v1247_v49 }
 0x1e2   :  { %v1137_v8 = vpop.xlane.xlu0 %1136  ;;  %v1139_v37 = vpop.xlane.xlu1 %1138 }
 0x1e3   :  { %v1187_v34 = vmul.f32 0.0078125, %v1137_v8  ;;  %v1188_v18 = vmul.f32 0.0078125, %v1139_v37  ;;  %v1250_v10 = vmul.f32 %v3154_v42, %v3154_v42  ;;  %v1249_v33 = vmul.f32 %v3147_v59, %v3147_v59 }
 0x1e5   :  { %v3157_v1 = vsub.f32 %v3019_v3, %v1187_v34  ;;  %v3164_v16 = vsub.f32 %v3023_v21, %v1188_v18  ;;  %1295 = vadd.xlane.f32.xlu1 %v1250_v10  ;;  %1293 = vadd.xlane.f32.xlu0 %v1249_v33 }
 0x1e6   :  { %v1141_v12 = vpop.xlane.xlu0 %1140  ;;  %v1143_v44 = vpop.xlane.xlu1 %1142 }
 0x1e7   :  { %v1189_v23 = vmul.f32 0.0078125, %v1141_v12  ;;  %v1190_v3 = vmul.f32 0.0078125, %v1143_v44  ;;  %v1252_v15 = vmul.f32 %v3164_v16, %v3164_v16  ;;  %v1251_v20 = vmul.f32 %v3157_v1, %v3157_v1 }
 0x1e9   :  { %v3167_v53 = vsub.f32 %v3026_v61, %v1189_v23  ;;  %v3174_v51 = vsub.f32 %v3031_v55, %v1190_v3  ;;  %1299 = vadd.xlane.f32.xlu1 %v1252_v15  ;;  %1297 = vadd.xlane.f32.xlu0 %v1251_v20 }
 0x1ea   :  { %v1145_v4 = vpop.xlane.xlu0 %1144  ;;  %v1147_v22 = vpop.xlane.xlu1 %1146 }
 0x1eb   :  { %v1191_v21 = vmul.f32 0.0078125, %v1145_v4  ;;  %v1192_v61 = vmul.f32 0.0078125, %v1147_v22  ;;  %v1254_v41 = vmul.f32 %v3174_v51, %v3174_v51  ;;  %v1253_v57 = vmul.f32 %v3167_v53, %v3167_v53 }
 0x1ed   :  { %v3177_v62 = vsub.f32 %v3034_v47, %v1191_v21  ;;  %v3184_v39 = vsub.f32 %v3039_v11, %v1192_v61  ;;  %1303 = vadd.xlane.f32.xlu1 %v1254_v41  ;;  %1301 = vadd.xlane.f32.xlu0 %v1253_v57 }
 0x1ee   :  { %v1149_v35 = vpop.xlane.xlu0 %1148  ;;  %v1151_v7 = vpop.xlane.xlu1 %1150 }
 0x1ef   :  { %v1193_v55 = vmul.f32 0.0078125, %v1149_v35  ;;  %v1194_v47 = vmul.f32 0.0078125, %v1151_v7  ;;  %v1256_v14 = vmul.f32 %v3184_v39, %v3184_v39  ;;  %v1255_v40 = vmul.f32 %v3177_v62, %v3177_v62 }
 0x1f1   :  { %v3187_v29 = vsub.f32 %v3042_v13, %v1193_v55  ;;  %v3194_v52 = vsub.f32 %v3047_v17, %v1194_v47  ;;  %1307 = vadd.xlane.f32.xlu1 %v1256_v14  ;;  %1305 = vadd.xlane.f32.xlu0 %v1255_v40 }
 0x1f2   :  { %v1153_v5 = vpop.xlane.xlu0 %1152  ;;  %v1155_v28 = vpop.xlane.xlu1 %1154 }
 0x1f3   :  { %v1195_v11 = vmul.f32 0.0078125, %v1153_v5  ;;  %v1196_v13 = vmul.f32 0.0078125, %v1155_v28  ;;  %v1258_v19 = vmul.f32 %v3194_v52, %v3194_v52  ;;  %v1257_v49 = vmul.f32 %v3187_v29, %v3187_v29 }
 0x1f5   :  { %v3197_v6 = vsub.f32 %v3050_v36, %v1195_v11  ;;  %v3204_v34 = vsub.f32 %v3055_v48, %v1196_v13  ;;  %1311 = vadd.xlane.f32.xlu1 %v1258_v19  ;;  %1309 = vadd.xlane.f32.xlu0 %v1257_v49 }
 0x1f6   :  { %v1157_v8 = vpop.xlane.xlu0 %1156  ;;  %v1159_v37 = vpop.xlane.xlu1 %1158 }
 0x1f7   :  { %v1197_v17 = vmul.f32 0.0078125, %v1157_v8  ;;  %v1198_v36 = vmul.f32 0.0078125, %v1159_v37  ;;  %v1260_v10 = vmul.f32 %v3204_v34, %v3204_v34  ;;  %v1259_v33 = vmul.f32 %v3197_v6, %v3197_v6 }
 0x1f9   :  { %v3207_v18 = vsub.f32 %v3059_v24, %v1197_v17  ;;  %v3214_v23 = vsub.f32 %v3063_v58, %v1198_v36  ;;  %1315 = vadd.xlane.f32.xlu1 %v1260_v10  ;;  %1313 = vadd.xlane.f32.xlu0 %v1259_v33 }
 0x1fa   :  { %v1161_v12 = vpop.xlane.xlu0 %1160  ;;  %v1163_v44 = vpop.xlane.xlu1 %1162 }
 0x1fb   :  { %v1199_v48 = vmul.f32 0.0078125, %v1161_v12  ;;  %v1200_v24 = vmul.f32 0.0078125, %v1163_v44  ;;  %v1262_v15 = vmul.f32 %v3214_v23, %v3214_v23  ;;  %v1261_v20 = vmul.f32 %v3207_v18, %v3207_v18 }
 0x1fd   :  { %v3217_v3 = vsub.f32 %v3067_v54, %v1199_v48  ;;  %v3224_v21 = vsub.f32 %v3071_v38, %v1200_v24  ;;  %1319 = vadd.xlane.f32.xlu1 %v1262_v15  ;;  %1317 = vadd.xlane.f32.xlu0 %v1261_v20 }
 0x1fe   :  { %v1165_v4 = vpop.xlane.xlu0 %1164  ;;  %v1167_v22 = vpop.xlane.xlu1 %1166 }
 0x1ff   :  { %v1201_v58 = vmul.f32 0.0078125, %v1165_v4  ;;  %v1202_v54 = vmul.f32 0.0078125, %v1167_v22  ;;  %v1264_v41 = vmul.f32 %v3224_v21, %v3224_v21  ;;  %v1263_v57 = vmul.f32 %v3217_v3, %v3217_v3 }
 0x201   :  { %v3227_v61 = vsub.f32 %v3075_v56, %v1201_v58  ;;  %v3234_v55 = vsub.f32 %v3079_v30, %v1202_v54  ;;  %1323 = vadd.xlane.f32.xlu1 %v1264_v41  ;;  %1321 = vadd.xlane.f32.xlu0 %v1263_v57  ;;  %v3253_v57 = vld [vmem:[%s3650_s6] ss:$0 sm:$0xff] }
 0x202   :  { %v1169_v35 = vpop.xlane.xlu0 %1168  ;;  %v1171_v7 = vpop.xlane.xlu1 %1170 }
 0x203   :  { %v1203_v38 = vmul.f32 0.0078125, %v1169_v35  ;;  %v1204_v56 = vmul.f32 0.0078125, %v1171_v7  ;;  %v1266_v14 = vmul.f32 %v3234_v55, %v3234_v55  ;;  %v1265_v40 = vmul.f32 %v3227_v61, %v3227_v61 }
 0x205   :  { %v3237_v47 = vsub.f32 %v3083_v63, %v1203_v38  ;;  %v3244_v5 = vsub.f32 %v3087_v27, %v1204_v56  ;;  %1327 = vadd.xlane.f32.xlu1 %v1266_v14  ;;  %1325 = vadd.xlane.f32.xlu0 %v1265_v40  ;;  %v3259_v56 = vld [vmem:[%s3651_s7] ss:$0 sm:$0xff] }
 0x207   :  { %v1268_v30 = vmul.f32 %v3244_v5, %v3244_v5  ;;  %v1267_v11 = vmul.f32 %v3237_v47, %v3237_v47 }
 0x209   :  { %1331 = vadd.xlane.f32.xlu1 %v1268_v30  ;;  %1329 = vadd.xlane.f32.xlu0 %v1267_v11 }
 0x252   :  { %v1272_v63 = vpop.xlane.xlu1 %1271 }
 0x253   :  { %v1334_v28 = vmul.f32 0.0078125, %v1272_v63 }
 0x255   :  { %v1366_v13 = vadd.f32 1e-05, %v1334_v28 }
 0x256   :  { %v1276_v19 = vpop.xlane.xlu1 %1275  ;;  %v1270_v49 = vpop.xlane.xlu0 %1269 }
 0x257   :  { %2251 = vrsqrt.f32 %v1366_v13  ;;  %v1336_v8 = vmul.f32 0.0078125, %v1276_v19  ;;  %v1333_v17 = vmul.f32 0.0078125, %v1270_v49  ;;  %v1570_v13 = vld [vmem:[%s3649_s2 + $0x8] sm:$0xff] }
 0x259   :  { %v1368_v27 = vadd.f32 1e-05, %v1336_v8  ;;  %v1365_v37 = vadd.f32 1e-05, %v1333_v17 }
 0x25a   :  { %v1274_v36 = vpop.xlane.xlu0 %1273 }
 0x25b   :  { %2253 = vrsqrt.f32 %v1368_v27  ;;  %v1335_v10 = vmul.f32 0.0078125, %v1274_v36 }
 0x25c   :  { %2255 = vrsqrt.f32 %v1365_v37 }
 0x25d   :  { %v1367_v33 = vadd.f32 1e-05, %v1335_v10 }
 0x25e   :  { %v1280_v12 = vpop.xlane.xlu1 %1279  ;;  %v1278_v48 = vpop.xlane.xlu0 %1277 }
 0x25f   :  { %2257 = vrsqrt.f32 %v1367_v33  ;;  %v1338_v44 = vmul.f32 0.0078125, %v1280_v12  ;;  %v1337_v24 = vmul.f32 0.0078125, %v1278_v48 }
 0x261   :  { %v1370_v15 = vadd.f32 1e-05, %v1338_v44  ;;  %v1369_v20 = vadd.f32 1e-05, %v1337_v24 }
 0x262   :  { %v1284_v4 = vpop.xlane.xlu1 %1283  ;;  %v1282_v58 = vpop.xlane.xlu0 %1281 }
 0x263   :  { %2259 = vrsqrt.f32 %v1370_v15  ;;  %v1340_v22 = vmul.f32 0.0078125, %v1284_v4  ;;  %v1339_v54 = vmul.f32 0.0078125, %v1282_v58  ;;  %v1569_v15 = vld [vmem:[%s3649_s2] sm:$0xff] }
 0x264   :  { %v2252_v41 = vpop.eup %2251  ;;  %2261 = vrsqrt.f32 %v1369_v20 }
 0x265   :  { %v1430_v35 = vmul.f32 %v2252_v41, %v3091_v0  ;;  %v1372_v38 = vadd.f32 1e-05, %v1340_v22  ;;  %v1371_v7 = vadd.f32 1e-05, %v1339_v54 }
 0x266   :  { %v1288_v14 = vpop.xlane.xlu1 %1287  ;;  %v1286_v40 = vpop.xlane.xlu0 %1285 }
 0x267   :  { %v1468_v30 = vmul.f32 %v3253_v57, %v1430_v35  ;;  %2263 = vrsqrt.f32 %v1372_v38  ;;  %v1342_v11 = vmul.f32 0.0078125, %v1288_v14  ;;  %v1341_v63 = vmul.f32 0.0078125, %v1286_v40  ;;  %v1571_v40 = vld [vmem:[%s3649_s2 + $0x10] sm:$0xff] }
 0x268   :  { %v2254_v28 = vpop.eup %2253  ;;  %2265 = vrsqrt.f32 %v1371_v7 }
 0x269   :  { %v2256_v0 = vpop.eup %2255  ;;  %v1506_v19 = vadd.f32 %v3259_v56, %v1468_v30  ;;  %v1432_v49 = vmul.f32 %v2254_v28, %v3096_v32  ;;  %v1374_v8 = vadd.f32 1e-05, %v1342_v11  ;;  %v1373_v17 = vadd.f32 1e-05, %v1341_v63  ;;  %v1572_v32 = vld [vmem:[%s3649_s2 + $0x18] sm:$0xff] }
 0x26a   :  { %v1429_v27 = vmul.f32 %v2256_v0, %v3099_v50  ;;  %v1292_v37 = vpop.xlane.xlu1 %1291  ;;  %v1290_v36 = vpop.xlane.xlu0 %1289 }
 0x26b   :  { %1538 = vst [vmem:[%s3652_s8 + $0x8] sm:$0xff] %v1506_v19  ;;  %v1602_v10 = vadd.f32 %v1570_v13, %v1506_v19  ;;  %v1470_v33 = vmul.f32 %v3253_v57, %v1432_v49  ;;  %2267 = vrsqrt.f32 %v1374_v8  ;;  %v1344_v12 = vmul.f32 0.0078125, %v1292_v37 }
 0x26c   :  { %v2258_v48 = vpop.eup %2257  ;;  %v1467_v44 = vmul.f32 %v3253_v57, %v1429_v27  ;;  %2269 = vrsqrt.f32 %v1373_v17  ;;  %v1343_v50 = vmul.f32 0.0078125, %v1290_v36  ;;  %v1574_v36 = vld [vmem:[%s3649_s2 + $0x28] sm:$0xff] }
 0x26d   :  { %1634 = vst [vmem:[%s3653_s9 + $0x8] sm:$0xff] %v1602_v10  ;;  %v1508_v24 = vadd.f32 %v3259_v56, %v1470_v33  ;;  %v1431_v20 = vmul.f32 %v2258_v48, %v3106_v9  ;;  %v1376_v4 = vadd.f32 1e-05, %v1344_v12  ;;  %v1573_v48 = vld [vmem:[%s3649_s2 + $0x20] sm:$0xff] }
 0x26e   :  { %v1505_v58 = vadd.f32 %v3259_v56, %v1467_v44  ;;  %v1375_v22 = vadd.f32 1e-05, %v1343_v50  ;;  %v1296_v54 = vpop.xlane.xlu1 %1295  ;;  %v1294_v41 = vpop.xlane.xlu0 %1293 }
 0x26f   :  { %1540 = vst [vmem:[%s3652_s8 + $0x18] sm:$0xff] %v1508_v24  ;;  %v1604_v35 = vadd.f32 %v1572_v32, %v1508_v24  ;;  %v1469_v38 = vmul.f32 %v3253_v57, %v1431_v20  ;;  %2271 = vrsqrt.f32 %v1376_v4  ;;  %v1346_v7 = vmul.f32 0.0078125, %v1296_v54 }
 0x270   :  { %v2260_v14 = vpop.eup %2259  ;;  %1537 = vst [vmem:[%s3652_s8] sm:$0xff] %v1505_v58  ;;  %v1601_v9 = vadd.f32 %v1569_v15, %v1505_v58  ;;  %2273 = vrsqrt.f32 %v1375_v22  ;;  %v1345_v30 = vmul.f32 0.0078125, %v1294_v41 }
 0x271   :  { %v2262_v11 = vpop.eup %2261  ;;  %1636 = vst [vmem:[%s3653_s9 + $0x18] sm:$0xff] %v1604_v35  ;;  %v1507_v63 = vadd.f32 %v3259_v56, %v1469_v38  ;;  %v1434_v28 = vmul.f32 %v2260_v14, %v3114_v26  ;;  %v1378_v13 = vadd.f32 1e-05, %v1346_v7 }
 0x272   :  { %1633 = vst [vmem:[%s3653_s9] sm:$0xff] %v1601_v9  ;;  %v1433_v0 = vmul.f32 %v2262_v11, %v3109_v2  ;;  %v1377_v19 = vadd.f32 1e-05, %v1345_v30  ;;  %v1300_v49 = vpop.xlane.xlu1 %1299  ;;  %v1298_v8 = vpop.xlane.xlu0 %1297  ;;  %v1575_v9 = vld [vmem:[%s3649_s2 + $0x30] sm:$0xff] }
 0x273   :  { %1539 = vst [vmem:[%s3652_s8 + $0x10] sm:$0xff] %v1507_v63  ;;  %v1603_v17 = vadd.f32 %v1571_v40, %v1507_v63  ;;  %v1472_v27 = vmul.f32 %v3253_v57, %v1434_v28  ;;  %2275 = vrsqrt.f32 %v1378_v13  ;;  %v1348_v37 = vmul.f32 0.0078125, %v1300_v49 }
 0x274   :  { %v2264_v26 = vpop.eup %2263  ;;  %v1471_v10 = vmul.f32 %v3253_v57, %v1433_v0  ;;  %2277 = vrsqrt.f32 %v1377_v19  ;;  %v1347_v2 = vmul.f32 0.0078125, %v1298_v8 }
 0x275   :  { %v2266_v33 = vpop.eup %2265  ;;  %1635 = vst [vmem:[%s3653_s9 + $0x10] sm:$0xff] %v1603_v17  ;;  %v1510_v12 = vadd.f32 %v3259_v56, %v1472_v27  ;;  %v1436_v32 = vmul.f32 %v2264_v26, %v3124_v46  ;;  %v1380_v44 = vadd.f32 1e-05, %v1348_v37 }
 0x276   :  { %v1509_v50 = vadd.f32 %v3259_v56, %v1471_v10  ;;  %v1435_v24 = vmul.f32 %v2266_v33, %v3117_v25  ;;  %v1379_v15 = vadd.f32 1e-05, %v1347_v2  ;;  %v1304_v20 = vpop.xlane.xlu1 %1303  ;;  %v1302_v4 = vpop.xlane.xlu0 %1301  ;;  %v1576_v25 = vld [vmem:[%s3649_s2 + $0x38] sm:$0xff]  ;;  %v1577_v10 = vld [vmem:[%s3649_s2 + $0x40] sm:$0xff] }
 0x277   :  { %1542 = vst [vmem:[%s3652_s8 + $0x28] sm:$0xff] %v1510_v12  ;;  %v1606_v58 = vadd.f32 %v1574_v36, %v1510_v12  ;;  %v1474_v22 = vmul.f32 %v3253_v57, %v1436_v32  ;;  %2279 = vrsqrt.f32 %v1380_v44  ;;  %v1350_v54 = vmul.f32 0.0078125, %v1304_v20 }
 0x278   :  { %v2268_v41 = vpop.eup %2267  ;;  %1541 = vst [vmem:[%s3652_s8 + $0x20] sm:$0xff] %v1509_v50  ;;  %v1605_v46 = vadd.f32 %v1573_v48, %v1509_v50  ;;  %v1473_v35 = vmul.f32 %v3253_v57, %v1435_v24  ;;  %2281 = vrsqrt.f32 %v1379_v15  ;;  %v1349_v38 = vmul.f32 0.0078125, %v1302_v4 }
 0x279   :  { %v2270_v7 = vpop.eup %2269  ;;  %1638 = vst [vmem:[%s3653_s9 + $0x28] sm:$0xff] %v1606_v58  ;;  %v1512_v14 = vadd.f32 %v3259_v56, %v1474_v22  ;;  %v1438_v40 = vmul.f32 %v2268_v41, %v3134_v43  ;;  %v1382_v30 = vadd.f32 1e-05, %v1350_v54 }
 0x27a   :  { %1637 = vst [vmem:[%s3653_s9 + $0x20] sm:$0xff] %v1605_v46  ;;  %v1511_v11 = vadd.f32 %v3259_v56, %v1473_v35  ;;  %v1437_v63 = vmul.f32 %v2270_v7, %v3127_v31  ;;  %v1381_v28 = vadd.f32 1e-05, %v1349_v38  ;;  %v1308_v13 = vpop.xlane.xlu1 %1307  ;;  %v1306_v0 = vpop.xlane.xlu0 %1305  ;;  %v1578_v31 = vld [vmem:[%s3649_s2 + $0x48] sm:$0xff]  ;;  %v1579_v46 = vld [vmem:[%s3649_s2 + $0x50] sm:$0xff] }
 0x27b   :  { %1544 = vst [vmem:[%s3652_s8 + $0x38] sm:$0xff] %v1512_v14  ;;  %v1608_v19 = vadd.f32 %v1576_v25, %v1512_v14  ;;  %v1476_v49 = vmul.f32 %v3253_v57, %v1438_v40  ;;  %2283 = vrsqrt.f32 %v1382_v30  ;;  %v1352_v43 = vmul.f32 0.0078125, %v1308_v13 }
 0x27c   :  { %v2272_v8 = vpop.eup %2271  ;;  %1543 = vst [vmem:[%s3652_s8 + $0x30] sm:$0xff] %v1511_v11  ;;  %v1607_v17 = vadd.f32 %v1575_v9, %v1511_v11  ;;  %v1475_v27 = vmul.f32 %v3253_v57, %v1437_v63  ;;  %2285 = vrsqrt.f32 %v1381_v28  ;;  %v1351_v37 = vmul.f32 0.0078125, %v1306_v0 }
 0x27d   :  { %v2274_v26 = vpop.eup %2273  ;;  %1640 = vst [vmem:[%s3653_s9 + $0x38] sm:$0xff] %v1608_v19  ;;  %v1514_v36 = vadd.f32 %v3259_v56, %v1476_v49  ;;  %v1440_v2 = vmul.f32 %v2272_v8, %v3144_v45  ;;  %v1384_v33 = vadd.f32 1e-05, %v1352_v43  ;;  %v1581_v43 = vld [vmem:[%s3649_s2 + $0x60] sm:$0xff] }
 0x27e   :  { %1639 = vst [vmem:[%s3653_s9 + $0x30] sm:$0xff] %v1607_v17  ;;  %v1513_v12 = vadd.f32 %v3259_v56, %v1475_v27  ;;  %v1439_v48 = vmul.f32 %v2274_v26, %v3137_v60  ;;  %v1383_v32 = vadd.f32 1e-05, %v1351_v37  ;;  %v1312_v44 = vpop.xlane.xlu1 %1311  ;;  %v1310_v50 = vpop.xlane.xlu0 %1309  ;;  %v1580_v60 = vld [vmem:[%s3649_s2 + $0x58] sm:$0xff] }
 0x27f   :  { %1546 = vst [vmem:[%s3652_s8 + $0x48] sm:$0xff] %v1514_v36  ;;  %v1610_v24 = vadd.f32 %v1578_v31, %v1514_v36  ;;  %v1478_v15 = vmul.f32 %v3253_v57, %v1440_v2  ;;  %2287 = vrsqrt.f32 %v1384_v33  ;;  %v1354_v45 = vmul.f32 0.0078125, %v1312_v44 }
 0x280   :  { %v2276_v20 = vpop.eup %2275  ;;  %1545 = vst [vmem:[%s3652_s8 + $0x40] sm:$0xff] %v1513_v12  ;;  %v1609_v4 = vadd.f32 %v1577_v10, %v1513_v12  ;;  %v1477_v58 = vmul.f32 %v3253_v57, %v1439_v48  ;;  %2289 = vrsqrt.f32 %v1383_v32  ;;  %v1353_v22 = vmul.f32 0.0078125, %v1310_v50 }
 0x281   :  { %v2278_v54 = vpop.eup %2277  ;;  %1642 = vst [vmem:[%s3653_s9 + $0x48] sm:$0xff] %v1610_v24  ;;  %v1516_v41 = vadd.f32 %v3259_v56, %v1478_v15  ;;  %v1442_v25 = vmul.f32 %v2276_v20, %v3154_v42  ;;  %v1386_v35 = vadd.f32 1e-05, %v1354_v45  ;;  %v1583_v24 = vld [vmem:[%s3649_s2 + $0x70] sm:$0xff] }
 0x282   :  { %1641 = vst [vmem:[%s3653_s9 + $0x40] sm:$0xff] %v1609_v4  ;;  %v1515_v38 = vadd.f32 %v3259_v56, %v1477_v58  ;;  %v1441_v7 = vmul.f32 %v2278_v54, %v3147_v59  ;;  %v1385_v14 = vadd.f32 1e-05, %v1353_v22  ;;  %v1316_v9 = vpop.xlane.xlu1 %1315  ;;  %v1314_v40 = vpop.xlane.xlu0 %1313  ;;  %v1582_v59 = vld [vmem:[%s3649_s2 + $0x68] sm:$0xff] }
 0x283   :  { %1548 = vst [vmem:[%s3652_s8 + $0x58] sm:$0xff] %v1516_v41  ;;  %v1612_v30 = vadd.f32 %v1580_v60, %v1516_v41  ;;  %v1480_v11 = vmul.f32 %v3253_v57, %v1442_v25  ;;  %2291 = vrsqrt.f32 %v1386_v35  ;;  %v1356_v42 = vmul.f32 0.0078125, %v1316_v9  ;;  %v1585_v9 = vld [vmem:[%s3649_s2 + $0x80] sm:$0xff] }
 0x284   :  { %v2280_v63 = vpop.eup %2279  ;;  %1547 = vst [vmem:[%s3652_s8 + $0x50] sm:$0xff] %v1515_v38  ;;  %v1611_v28 = vadd.f32 %v1579_v46, %v1515_v38  ;;  %v1479_v13 = vmul.f32 %v3253_v57, %v1441_v7  ;;  %2293 = vrsqrt.f32 %v1385_v14  ;;  %v1355_v0 = vmul.f32 0.0078125, %v1314_v40 }
 0x285   :  { %v2282_v19 = vpop.eup %2281  ;;  %1644 = vst [vmem:[%s3653_s9 + $0x58] sm:$0xff] %v1612_v30  ;;  %v1518_v49 = vadd.f32 %v3259_v56, %v1480_v11  ;;  %v1444_v8 = vmul.f32 %v2280_v63, %v3164_v16  ;;  %v1388_v17 = vadd.f32 1e-05, %v1356_v42 }
 0x286   :  { %1643 = vst [vmem:[%s3653_s9 + $0x50] sm:$0xff] %v1611_v28  ;;  %v1517_v31 = vadd.f32 %v3259_v56, %v1479_v13  ;;  %v1443_v27 = vmul.f32 %v2282_v19, %v3157_v1  ;;  %v1387_v37 = vadd.f32 1e-05, %v1355_v0  ;;  %v1320_v26 = vpop.xlane.xlu1 %1319  ;;  %v1318_v36 = vpop.xlane.xlu0 %1317  ;;  %v1584_v1 = vld [vmem:[%s3649_s2 + $0x78] sm:$0xff] }
 0x287   :  { %1550 = vst [vmem:[%s3652_s8 + $0x68] sm:$0xff] %v1518_v49  ;;  %v1614_v10 = vadd.f32 %v1582_v59, %v1518_v49  ;;  %v1482_v2 = vmul.f32 %v3253_v57, %v1444_v8  ;;  %2295 = vrsqrt.f32 %v1388_v17  ;;  %v1358_v16 = vmul.f32 0.0078125, %v1320_v26 }
 0x288   :  { %v2284_v33 = vpop.eup %2283  ;;  %1549 = vst [vmem:[%s3652_s8 + $0x60] sm:$0xff] %v1517_v31  ;;  %v1613_v12 = vadd.f32 %v1581_v43, %v1517_v31  ;;  %v1481_v48 = vmul.f32 %v3253_v57, %v1443_v27  ;;  %2297 = vrsqrt.f32 %v1387_v37  ;;  %v1357_v32 = vmul.f32 0.0078125, %v1318_v36  ;;  %v1587_v27 = vld [vmem:[%s3649_s2 + $0x90] sm:$0xff] }
 0x289   :  { %v2286_v44 = vpop.eup %2285  ;;  %1646 = vst [vmem:[%s3653_s9 + $0x68] sm:$0xff] %v1614_v10  ;;  %v1520_v50 = vadd.f32 %v3259_v56, %v1482_v2  ;;  %v1446_v15 = vmul.f32 %v2284_v33, %v3174_v51  ;;  %v1390_v45 = vadd.f32 1e-05, %v1358_v16 }
 0x28a   :  { %1645 = vst [vmem:[%s3653_s9 + $0x60] sm:$0xff] %v1613_v12  ;;  %v1519_v20 = vadd.f32 %v3259_v56, %v1481_v48  ;;  %v1445_v4 = vmul.f32 %v2286_v44, %v3167_v53  ;;  %v1389_v60 = vadd.f32 1e-05, %v1357_v32  ;;  %v1324_v58 = vpop.xlane.xlu1 %1323  ;;  %v1322_v22 = vpop.xlane.xlu0 %1321  ;;  %v1586_v53 = vld [vmem:[%s3649_s2 + $0x88] sm:$0xff] }
 0x28b   :  { %1552 = vst [vmem:[%s3652_s8 + $0x78] sm:$0xff] %v1520_v50  ;;  %v1616_v54 = vadd.f32 %v1584_v1, %v1520_v50  ;;  %v1484_v41 = vmul.f32 %v3253_v57, %v1446_v15  ;;  %2299 = vrsqrt.f32 %v1390_v45  ;;  %v1360_v51 = vmul.f32 0.0078125, %v1324_v58  ;;  %v1589_v45 = vld [vmem:[%s3649_s2 + $0xa0] sm:$0xff] }
 0x28c   :  { %v2288_v46 = vpop.eup %2287  ;;  %1551 = vst [vmem:[%s3652_s8 + $0x70] sm:$0xff] %v1519_v20  ;;  %v1615_v25 = vadd.f32 %v1583_v24, %v1519_v20  ;;  %v1483_v35 = vmul.f32 %v3253_v57, %v1445_v4  ;;  %2301 = vrsqrt.f32 %v1389_v60  ;;  %v1359_v38 = vmul.f32 0.0078125, %v1322_v22 }
 0x28d   :  { %v2290_v7 = vpop.eup %2289  ;;  %1648 = vst [vmem:[%s3653_s9 + $0x78] sm:$0xff] %v1616_v54  ;;  %v1522_v14 = vadd.f32 %v3259_v56, %v1484_v41  ;;  %v1448_v40 = vmul.f32 %v2288_v46, %v3184_v39  ;;  %v1392_v30 = vadd.f32 1e-05, %v1360_v51  ;;  %v1592_v46 = vld [vmem:[%s3649_s2 + $0xb8] sm:$0xff] }
 0x28e   :  { %1647 = vst [vmem:[%s3653_s9 + $0x70] sm:$0xff] %v1615_v25  ;;  %v1521_v11 = vadd.f32 %v3259_v56, %v1483_v35  ;;  %v1447_v42 = vmul.f32 %v2290_v7, %v3177_v62  ;;  %v1391_v63 = vadd.f32 1e-05, %v1359_v38  ;;  %v1328_v28 = vpop.xlane.xlu1 %1327  ;;  %v1326_v59 = vpop.xlane.xlu0 %1325  ;;  %v1588_v62 = vld [vmem:[%s3649_s2 + $0x98] sm:$0xff]  ;;  %v1591_v35 = vld [vmem:[%s3649_s2 + $0xb0] sm:$0xff] }
 0x28f   :  { %1554 = vst [vmem:[%s3652_s8 + $0x88] sm:$0xff] %v1522_v14  ;;  %v1618_v13 = vadd.f32 %v1586_v53, %v1522_v14  ;;  %v1486_v0 = vmul.f32 %v3253_v57, %v1448_v40  ;;  %2303 = vrsqrt.f32 %v1392_v30  ;;  %v1362_v39 = vmul.f32 0.0078125, %v1328_v28  ;;  %v1593_v28 = vld [vmem:[%s3649_s2 + $0xc0] sm:$0xff] }
 0x290   :  { %v2292_v19 = vpop.eup %2291  ;;  %1553 = vst [vmem:[%s3652_s8 + $0x80] sm:$0xff] %v1521_v11  ;;  %v1617_v49 = vadd.f32 %v1585_v9, %v1521_v11  ;;  %v1485_v43 = vmul.f32 %v3253_v57, %v1447_v42  ;;  %2305 = vrsqrt.f32 %v1391_v63  ;;  %v1361_v8 = vmul.f32 0.0078125, %v1326_v59  ;;  %v1594_v11 = vld [vmem:[%s3649_s2 + $0xc8] sm:$0xff] }
 0x291   :  { %v2294_v17 = vpop.eup %2293  ;;  %1650 = vst [vmem:[%s3653_s9 + $0x88] sm:$0xff] %v1618_v13  ;;  %v1524_v31 = vadd.f32 %v3259_v56, %v1486_v0  ;;  %v1450_v37 = vmul.f32 %v2292_v19, %v3194_v52  ;;  %v1394_v26 = vadd.f32 1e-05, %v1362_v39 }
 0x292   :  { %1649 = vst [vmem:[%s3653_s9 + $0x80] sm:$0xff] %v1617_v49  ;;  %v1523_v36 = vadd.f32 %v3259_v56, %v1485_v43  ;;  %v1449_v10 = vmul.f32 %v2294_v17, %v3187_v29  ;;  %v1393_v2 = vadd.f32 1e-05, %v1361_v8  ;;  %v1332_v16 = vpop.xlane.xlu1 %1331  ;;  %v1330_v33 = vpop.xlane.xlu0 %1329  ;;  %v1590_v29 = vld [vmem:[%s3649_s2 + $0xa8] sm:$0xff]  ;;  %v1595_v17 = vld [vmem:[%s3649_s2 + $0xd0] sm:$0xff] }
 0x293   :  { %1556 = vst [vmem:[%s3652_s8 + $0x98] sm:$0xff] %v1524_v31  ;;  %v1620_v12 = vadd.f32 %v1588_v62, %v1524_v31  ;;  %v1488_v1 = vmul.f32 %v3253_v57, %v1450_v37  ;;  %2307 = vrsqrt.f32 %v1394_v26  ;;  %v1364_v52 = vmul.f32 0.0078125, %v1332_v16  ;;  %v1596_v62 = vld [vmem:[%s3649_s2 + $0xd8] sm:$0xff] }
 0x294   :  { %v2296_v48 = vpop.eup %2295  ;;  %1555 = vst [vmem:[%s3652_s8 + $0x90] sm:$0xff] %v1523_v36  ;;  %v1619_v32 = vadd.f32 %v1587_v27, %v1523_v36  ;;  %v1487_v44 = vmul.f32 %v3253_v57, %v1449_v10  ;;  %2309 = vrsqrt.f32 %v1393_v2  ;;  %v1363_v50 = vmul.f32 0.0078125, %v1330_v33  ;;  %v1598_v2 = vld [vmem:[%s3649_s2 + $0xe8] sm:$0xff] }
 0x295   :  { %v2298_v24 = vpop.eup %2297  ;;  %1652 = vst [vmem:[%s3653_s9 + $0x98] sm:$0xff] %v1620_v12  ;;  %v1526_v15 = vadd.f32 %v3259_v56, %v1488_v1  ;;  %v1452_v20 = vmul.f32 %v2296_v48, %v3204_v34  ;;  %v1396_v4 = vadd.f32 1e-05, %v1364_v52  ;;  %v1597_v12 = vld [vmem:[%s3649_s2 + $0xe0] sm:$0xff] }
 0x296   :  { %1651 = vst [vmem:[%s3653_s9 + $0x90] sm:$0xff] %v1619_v32  ;;  %v1525_v60 = vadd.f32 %v3259_v56, %v1487_v44  ;;  %v1451_v58 = vmul.f32 %v2298_v24, %v3197_v6  ;;  %v1395_v22 = vadd.f32 1e-05, %v1363_v50  ;;  %v1600_v44 = vld [vmem:[%s3649_s2 + $0xf8] sm:$0xff]  ;;  %v1599_v24 = vld [vmem:[%s3649_s2 + $0xf0] sm:$0xff] }
 0x297   :  { %1558 = vst [vmem:[%s3652_s8 + $0xa8] sm:$0xff] %v1526_v15  ;;  %v1622_v54 = vadd.f32 %v1590_v29, %v1526_v15  ;;  %v1490_v41 = vmul.f32 %v3253_v57, %v1452_v20  ;;  %2311 = vrsqrt.f32 %v1396_v4 }
 0x298   :  { %v2300_v51 = vpop.eup %2299  ;;  %1557 = vst [vmem:[%s3652_s8 + $0xa0] sm:$0xff] %v1525_v60  ;;  %v1621_v34 = vadd.f32 %v1589_v45, %v1525_v60  ;;  %v1489_v6 = vmul.f32 %v3253_v57, %v1451_v58  ;;  %2313 = vrsqrt.f32 %v1395_v22 }
 0x299   :  { %v2302_v25 = vpop.eup %2301  ;;  %1654 = vst [vmem:[%s3653_s9 + $0xa8] sm:$0xff] %v1622_v54  ;;  %v1528_v53 = vadd.f32 %v3259_v56, %v1490_v41  ;;  %v1454_v38 = vmul.f32 %v2300_v51, %v3214_v23 }
 0x29a   :  { %1653 = vst [vmem:[%s3653_s9 + $0xa0] sm:$0xff] %v1621_v34  ;;  %v1527_v7 = vadd.f32 %v3259_v56, %v1489_v6  ;;  %v1453_v14 = vmul.f32 %v2302_v25, %v3207_v18 }
 0x29b   :  { %1560 = vst [vmem:[%s3652_s8 + $0xb8] sm:$0xff] %v1528_v53  ;;  %v1624_v9 = vadd.f32 %v1592_v46, %v1528_v53  ;;  %v1492_v40 = vmul.f32 %v3253_v57, %v1454_v38 }
 0x29c   :  { %v2304_v30 = vpop.eup %2303  ;;  %1559 = vst [vmem:[%s3652_s8 + $0xb0] sm:$0xff] %v1527_v7  ;;  %v1623_v23 = vadd.f32 %v1591_v35, %v1527_v7  ;;  %v1491_v42 = vmul.f32 %v3253_v57, %v1453_v14 }
 0x29d   :  { %v2306_v18 = vpop.eup %2305  ;;  %1656 = vst [vmem:[%s3653_s9 + $0xb8] sm:$0xff] %v1624_v9  ;;  %v1530_v63 = vadd.f32 %v3259_v56, %v1492_v40  ;;  %v1456_v59 = vmul.f32 %v2304_v30, %v3224_v21 }
 0x29e   :  { %1655 = vst [vmem:[%s3653_s9 + $0xb0] sm:$0xff] %v1623_v23  ;;  %v1529_v13 = vadd.f32 %v3259_v56, %v1491_v42  ;;  %v1455_v0 = vmul.f32 %v2306_v18, %v3217_v3 }
 0x29f   :  { %1562 = vst [vmem:[%s3652_s8 + $0xc8] sm:$0xff] %v1530_v63  ;;  %v1626_v39 = vadd.f32 %v1594_v11, %v1530_v63  ;;  %v1494_v19 = vmul.f32 %v3253_v57, %v1456_v59 }
 0x2a0   :  { %v2308_v49 = vpop.eup %2307  ;;  %1561 = vst [vmem:[%s3652_s8 + $0xc0] sm:$0xff] %v1529_v13  ;;  %v1625_v21 = vadd.f32 %v1593_v28, %v1529_v13  ;;  %v1493_v43 = vmul.f32 %v3253_v57, %v1455_v0 }
 0x2a1   :  { %v2310_v3 = vpop.eup %2309  ;;  %1658 = vst [vmem:[%s3653_s9 + $0xc8] sm:$0xff] %v1626_v39  ;;  %v1532_v8 = vadd.f32 %v3259_v56, %v1494_v19  ;;  %v1458_v31 = vmul.f32 %v2308_v49, %v3234_v55 }
 0x2a2   :  { %1657 = vst [vmem:[%s3653_s9 + $0xc0] sm:$0xff] %v1625_v21  ;;  %v1531_v27 = vadd.f32 %v3259_v56, %v1493_v43  ;;  %v1457_v37 = vmul.f32 %v2310_v3, %v3227_v61 }
 0x2a3   :  { %1564 = vst [vmem:[%s3652_s8 + $0xd8] sm:$0xff] %v1532_v8  ;;  %v1628_v26 = vadd.f32 %v1596_v62, %v1532_v8  ;;  %v1496_v36 = vmul.f32 %v3253_v57, %v1458_v31 }
 0x2a4   :  { %v2312_v10 = vpop.eup %2311  ;;  %1563 = vst [vmem:[%s3652_s8 + $0xd0] sm:$0xff] %v1531_v27  ;;  %v1627_v55 = vadd.f32 %v1595_v17, %v1531_v27  ;;  %v1495_v16 = vmul.f32 %v3253_v57, %v1457_v37 }
 0x2a5   :  { %v2314_v61 = vpop.eup %2313  ;;  %1660 = vst [vmem:[%s3653_s9 + $0xd8] sm:$0xff] %v1628_v26  ;;  %v1534_v33 = vadd.f32 %v3259_v56, %v1496_v36  ;;  %v1460_v1 = vmul.f32 %v2312_v10, %v3244_v5 }
 0x2a6   :  { %1659 = vst [vmem:[%s3653_s9 + $0xd0] sm:$0xff] %v1627_v55  ;;  %v1533_v52 = vadd.f32 %v3259_v56, %v1495_v16  ;;  %v1459_v48 = vmul.f32 %v2314_v61, %v3237_v47 }
 0x2a7   :  { %1566 = vst [vmem:[%s3652_s8 + $0xe8] sm:$0xff] %v1534_v33  ;;  %v1630_v32 = vadd.f32 %v1598_v2, %v1534_v33  ;;  %v1498_v29 = vmul.f32 %v3253_v57, %v1460_v1 }
 0x2a8   :  { %1565 = vst [vmem:[%s3652_s8 + $0xe0] sm:$0xff] %v1533_v52  ;;  %v1629_v5 = vadd.f32 %v1597_v12, %v1533_v52  ;;  %v1497_v50 = vmul.f32 %v3253_v57, %v1459_v48 }
 0x2a9   :  { %1662 = vst [vmem:[%s3653_s9 + $0xe8] sm:$0xff] %v1630_v32  ;;  %v1536_v47 = vadd.f32 %v3259_v56, %v1498_v29 }
 0x2aa   :  { %1661 = vst [vmem:[%s3653_s9 + $0xe0] sm:$0xff] %v1629_v5  ;;  %v1535_v15 = vadd.f32 %v3259_v56, %v1497_v50 }
 0x2ab   :  { %1568 = vst [vmem:[%s3652_s8 + $0xf8] sm:$0xff] %v1536_v47  ;;  %v1632_v57 = vadd.f32 %v1600_v44, %v1536_v47 }
 0x2ac   :  { %1567 = vst [vmem:[%s3652_s8 + $0xf0] sm:$0xff] %v1535_v15  ;;  %v1631_v45 = vadd.f32 %v1599_v24, %v1535_v15 }
 0x2ad   :  { %1664 = vst [vmem:[%s3653_s9 + $0xf8] sm:$0xff] %v1632_v57 }
 0x2ae   :  { %1663 = vst [vmem:[%s3653_s9 + $0xf0] sm:$0xff] %v1631_v45 }

</bundles_post_ra>
